<compile_context>
chip_gen: v6e
topology: v6e:2x2x1
jax: 0.10.0
libtpu: 0.0.40
codegen_flags: <defaults>
</compile_context>

<pallas_src>
import functools

import jax
import jax.numpy as jnp
from jax import lax
from jax.experimental import pallas as pl
from jax.experimental.pallas import tpu as pltpu


def _round_up(x, m):
    return ((x + m - 1) // m) * m


# ----------------------------------------------------------------------------
# Fused analysis kernel (embed + anti-causal stack + relu + high-pass + up)
# ----------------------------------------------------------------------------

def _fused_analysis_kernel(x_ref, ew_ref, eb_ref, w01_ref, ab_ref, uw_ref, ub_ref,
                           x2_ref, z_ref, *,
                           dilations, pool_window, T, T_tile, T_work, C):
    T_win = T_work + 128                                   # lookahead for embed taps
    t0 = pl.multiple_of(pl.program_id(1) * T_tile, 128)    # global start of this tile

    p_idx = lax.broadcasted_iota(jnp.int32, (1, T_work), 1)  # window position (1,T)
    valid = T - t0                                            # #positions inside [0,T)

    # ---- embed: Conv1d(1, C, 7, padding=3) ---------------------------------
    # Shift the (1,.) input row per tap BEFORE the per-channel broadcast multiply
    # (C-fold less XLU/VPU shift work than shifting the (C,T) product).
    # x is host-padded with 3 zeros on the left, so window pos p, tap j reads
    # x[t0 + p + (j - 3)] == x_win[p + j]; no boundary masks needed.
    x_win = x_ref[0, :, pl.ds(t0, T_win)]                  # (1, T_win) f32
    acc = jnp.zeros((C, T_work), jnp.float32)
    for j in range(7):
        if j == 0:
            row = x_win[:, :T_work]
        else:
            row = pltpu.roll(x_win, shift=T_win - j, axis=1)[:, :T_work]
        acc = acc + ew_ref[:, j:j + 1] * row               # (C,1)*(1,T) broadcast
    h = acc + eb_ref[...]                                  # (C, T_work)

    def tap_left(v, d):
        """v[:, p] <- v[:, p+d]; zero where the window runs out OR global t+d >= T."""
        if d >= T_work:
            return jnp.zeros_like(v)
        rolled = pltpu.roll(v, shift=T_work - d, axis=1)
        lim = jnp.minimum(valid, T_work) - d
        return jnp.where(p_idx < lim, rolled, 0.0)

    # ---- anti-causal dilated stack (k=2, right zero-pad), residual + running sum
    # TODO(synk): AntiCausalStack is an external module; approximated as residual
    #             anti-causal dilated k=2 convs with leaky_relu(0.2), outputs summed.
    out_sum = jnp.zeros((C, T_work), jnp.float32)
    for l, d in enumerate(dilations):
        w01 = w01_ref[l]                                   # (2C, C) bf16 (packed w0;w1)
        y01 = jnp.dot(w01, h.astype(jnp.bfloat16),
                      preferred_element_type=jnp.float32)  # ONE MXU dot per layer
        y = y01[:C] + tap_left(y01[C:], d) + ab_ref[l]
        y = jnp.maximum(y, 0.2 * y)                        # leaky relu (2 VPU ops)
        h = h + y
        out_sum = out_sum + h

    x1 = jnp.maximum(out_sum, 0.0)                         # relu
    x1 = jnp.where(p_idx < valid, x1, 0.0)                 # zero beyond global T

    # per-tile partial channel sums for z, stored lane-dense (1,1,1,C)
    z_ref[...] = jnp.sum(x1[:, :T_tile], axis=1).reshape(1, 1, 1, C).astype(z_ref.dtype)

    # ---- high-pass: subtract right-zero-padded sliding mean (window=pool_window)
    # dyadic log2(W) roll-add; exact for all output positions p < T_tile.
    def win_left(v, d):
        rolled = pltpu.roll(v, shift=T_work - d, axis=1)
        return jnp.where(p_idx < T_work - d, rolled, 0.0)

    s = x1
    w = 1
    while w < pool_window:
        s = s + win_left(s, w)
        w *= 2
    x_hp = x1[:, :T_tile] - s[:, :T_tile] * (1.0 / pool_window)

    # ---- up: Conv1d(C, n_atoms, 1) == matmul (bf16 operands, f32 accumulation) ---
    x2 = jnp.dot(uw_ref[...], x_hp.astype(jnp.bfloat16),
                 preferred_element_type=jnp.float32) + ub_ref[...]
    x2_ref[0] = x2.astype(x2_ref.dtype)                    # full-width, lane-aligned store


def _vmem_limit_bytes(C, A, L, t_tile, T_work, T_padtot):
    """Rough double-buffered-blocks + live-temporaries estimate, clamped for v7x."""
    f32, bf16 = 4, 2
    io = 2 * (T_padtot * f32 + 7 * C * f32 + C * f32
              + L * 2 * C * C * bf16 + L * C * f32
              + A * C * bf16 + A * f32
              + A * t_tile * f32 + C * f32)
    live = (10 * C * T_work + 4 * C * T_work + 2 * A * t_tile + 4 * (T_work + 128)) * f32
    est = io + live
    return int(min(60 * 2**20, max(16 * 2**20, 2 * est)))


def fused_analysis(x, params, *, dilations, pool_window, t_tile=None):
    """x:(B,1,T) f32 -> (x2:(B,n_atoms,T), z:(B,C)).  One pallas_call, grid=(B, T//T_tile)."""
    B, _, T = x.shape
    C = params["embed_w"].shape[0]
    A = params["up_w"].shape[0]
    L = len(dilations)
    assert pool_window > 0 and pool_window & (pool_window - 1) == 0, \
        "pool_window must be a power of two"

    if t_tile is None:
        t_tile = min(T, 2048)
    t_tile = min(t_tile, T)
    assert T % t_tile == 0 and t_tile % 128 == 0
    NT = T // t_tile

    # receptive-field halo to the right: stack lookahead + pooling lookahead
    halo_needed = sum(dilations) + pool_window
    T_work = _round_up(t_tile + halo_needed, 128)
    T_win = T_work + 128
    # host-side pad: 3 zeros left (embed pad), zeros right to cover the last window
    T_padtot = _round_up(max(3 + T, (T - t_tile) + T_win), 128)
    x_pad = jnp.pad(x, ((0, 0), (0, 0), (3, T_padtot - T - 3)))

    ew = params["embed_w"]
    eb = params["embed_b"]
    w01 = params["ac_w"].astype(jnp.bfloat16)      # (L, 2C, C) packed [w0; w1]
    ab = params["ac_b"]
    uw = params["up_w"].astype(jnp.bfloat16)
    ub = params["up_b"]

    kernel = functools.partial(_fused_analysis_kernel, dilations=tuple(dilations),
                               pool_window=pool_window, T=T, T_tile=t_tile,
                               T_work=T_work, C=C)

    x2, zp = pl.pallas_call(
        kernel,
        out_shape=(jax.ShapeDtypeStruct((B, A, T), jnp.float32),
                   jax.ShapeDtypeStruct((B, NT, 1, C), jnp.float32)),
        grid_spec=pltpu.PrefetchScalarGridSpec(
            num_scalar_prefetch=0,
            grid=(B, NT),
            in_specs=[
                pl.BlockSpec((1, 1, T_padtot), lambda b, t: (b, 0, 0)),   # padded audio (resident)
                pl.BlockSpec((C, 7), lambda b, t: (0, 0)),                # embed taps
                pl.BlockSpec((C, 1), lambda b, t: (0, 0)),                # embed bias
                pl.BlockSpec((L, 2 * C, C), lambda b, t: (0, 0, 0)),      # packed stack weights
                pl.BlockSpec((L, C, 1), lambda b, t: (0, 0, 0)),          # stack biases
                pl.BlockSpec((A, C), lambda b, t: (0, 0)),                # up weight (bf16)
                pl.BlockSpec((A, 1), lambda b, t: (0, 0)),                # up bias
            ],
            out_specs=[
                pl.BlockSpec((1, A, t_tile), lambda b, t: (b, 0, t)),     # x2 time tile
                pl.BlockSpec((1, 1, 1, C), lambda b, t: (b, t, 0, 0)),    # z partial (lane-dense)
            ],
        ),
        compiler_params=pltpu.CompilerParams(
            dimension_semantics=("parallel", "parallel"),   # batch AND time shard across TCs
            vmem_limit_bytes=_vmem_limit_bytes(C, A, L, t_tile, T_work, T_padtot)),
    )(x_pad, ew, eb, w01, ab, uw, ub)

    z = jnp.sum(zp[:, :, 0, :], axis=1) * (1.0 / T)         # finish the global mean
    return x2, z


# ----------------------------------------------------------------------------
# JAX glue (top-k, gather, FFT, tiny per-vector linears)
# ----------------------------------------------------------------------------

def sparsify_topk(x, n_to_keep):
    """Hard top-k over flattened (channel, time): per-event dirac trains + channel ids."""
    # TODO(synk): original sparsify2 (external module) approximated by hard top-k.
    B, C, T = x.shape
    flat = x.reshape(B, C * T)
    values, indices = lax.top_k(flat, n_to_keep)
    ch_idx = indices // T
    t_idx = indices % T
    batch_idx = jnp.broadcast_to(jnp.arange(B)[:, None], (B, n_to_keep))
    ev_idx = jnp.broadcast_to(jnp.arange(n_to_keep)[None, :], (B, n_to_keep))
    packed = jnp.zeros((B, n_to_keep, T), x.dtype).at[batch_idx, ev_idx, t_idx].set(values)
    return packed, ch_idx


def fft_convolve(a, b):
    # TODO(synk): FFT has no clean Pallas equivalent; rfft/irfft stay in plain JAX.
    n = a.shape[-1]
    pad = [(0, 0)] * (a.ndim - 1) + [(0, n)]
    spec = jnp.fft.rfft(jnp.pad(a, pad), axis=-1) * jnp.fft.rfft(jnp.pad(b, pad), axis=-1)
    return jnp.fft.irfft(spec, axis=-1)[..., :n]


def _linear_stack(p, x):
    """LinearOutputStack analogue: [Linear -> leaky_relu -> LayerNorm] x layers -> Linear."""
    # TODO(synk): exact LinearOutputStack internals (external module) approximated.
    for w, b, g, bt in zip(p["ws"], p["bs"], p["gs"], p["bts"]):
        x = x @ w.T + b
        x = jnp.maximum(x, 0.2 * x)
        mu = jnp.mean(x, axis=-1, keepdims=True)
        var = jnp.var(x, axis=-1, keepdims=True)
        x = (x - mu) / jnp.sqrt(var + 1e-5) * g + bt
    return x @ p["fw"].T + p["fb"]


def reverb_forward(params, context, dry):
    """ReverbGenerator analogue: context -> room mix + dry/wet mix, wet = fft conv with RIR."""
    rm = jax.nn.softmax(_linear_stack(params["to_room"], context), axis=-1)   # (B, n_rooms)
    mx = jax.nn.sigmoid(_linear_stack(params["to_mix"], context)).reshape(-1, 1, 1)
    impulse = rm @ params["rooms"]                                            # (B, n_samples)
    wet = fft_convolve(dry, impulse[:, None, :])
    return dry * mx + wet * (1.0 - mx)


# ----------------------------------------------------------------------------
# Params & model
# ----------------------------------------------------------------------------

def init_params(key, channels, n_atoms, atom_size, n_samples, dilations,
                n_rooms, verb_layers, weight_init=0.1):
    keys = iter(jax.random.split(key, 256))
    u = lambda shape, lo=-weight_init, hi=weight_init: jax.random.uniform(
        next(keys), shape, jnp.float32, lo, hi)
    L = len(dilations)
    p = {}
    p["atoms"] = jax.random.uniform(next(keys), (n_atoms, atom_size), jnp.float32, -0.01, 0.01)
    p["embed_w"] = u((channels, 7))                  # Conv1d(1, C, 7) taps
    p["embed_b"] = u((channels, 1))
    p["ac_w"] = u((L, 2 * channels, channels))       # packed [tap-at-t ; tap-at-t+d]
    p["ac_b"] = u((L, channels, 1))
    p["up_w"] = u((n_atoms, channels))
    p["up_b"] = u((n_atoms, 1))

    def stack_params(out_dim):
        return dict(
            ws=[u((channels, channels)) for _ in range(verb_layers)],
            bs=[u((channels,)) for _ in range(verb_layers)],
            gs=[jnp.ones((channels,), jnp.float32) for _ in range(verb_layers)],
            bts=[jnp.zeros((channels,), jnp.float32) for _ in range(verb_layers)],
            fw=u((out_dim, channels)),
            fb=u((out_dim,)),
        )

    p["to_room"] = stack_params(n_rooms)
    p["to_mix"] = stack_params(1)

    # TODO(synk): NeuralReverb loads room impulse responses from disk; synthesize
    # deterministic exponentially-decaying noise RIRs instead.
    t = jnp.arange(n_samples, dtype=jnp.float32)
    noise = jax.random.normal(next(keys), (n_rooms, n_samples), jnp.float32)
    decays = jnp.linspace(0.01, 0.1, n_rooms)[:, None]
    rooms = noise * jnp.exp(-t[None, :] * decays)
    rooms = rooms / jnp.maximum(jnp.abs(rooms).max(axis=-1, keepdims=True), 1e-8)
    p["rooms"] = rooms
    return p


def make_forward(cfg):
    dilations = tuple(cfg["dilations"])
    n_samples = cfg["n_samples"]
    n_events = cfg["n_events"]
    atom_size = cfg["atom_size"]
    pool_window = cfg["pool_window"]
    t_tile = cfg.get("t_tile", None)

    def fwd(params, x):
        # x: (B, 1, T) NCT — the whole conv front-end is one time-tiled fused Pallas kernel
        x2, z = fused_analysis(x, params, dilations=dilations,
                               pool_window=pool_window, t_tile=t_tile)

        # hard top-k event selection -> dirac trains + channel (atom) indices
        packed, ch_idx = sparsify_topk(x2, n_events)

        # one_hot @ atoms is a row-select -> gather (no one_hot, no matmul launch)
        selected = jnp.take(params["atoms"], ch_idx, axis=0)          # (B, E, atom_size)
        selected = jnp.pad(selected, ((0, 0), (0, 0), (0, n_samples - atom_size)))

        # position events via FFT convolution with the dirac trains
        positioned = fft_convolve(selected, packed)                   # (B, E, n_samples)

        # reverb
        positioned = reverb_forward(params, z, positioned)
        return positioned

    return jax.jit(fwd)


# ----------------------------------------------------------------------------
# Demo
# ----------------------------------------------------------------------------

if __name__ == "__main__":
    # small shapes consistent with the module structure (scaled down)
    cfg = dict(
        channels=16,
        n_atoms=16,
        atom_size=64,       # scaled from 1024
        n_samples=256,      # scaled from 2**15
        n_events=8,         # scaled from 256
        pool_window=32,     # scaled from 512
        dilations=[1, 2, 4, 8, 16, 32, 64, 2],
        n_rooms=8,
        verb_layers=3,
        t_tile=128,         # exercises the time-tiled grid (NT=2)
    )

    key = jax.random.PRNGKey(0)
    pkey, xkey = jax.random.split(key)
    params = init_params(pkey, cfg["channels"], cfg["n_atoms"], cfg["atom_size"],
                         cfg["n_samples"], cfg["dilations"], cfg["n_rooms"],
                         cfg["verb_layers"])

    x = jax.random.uniform(xkey, (2, 1, cfg["n_samples"]), jnp.float32, -1.0, 1.0)

    forward = make_forward(cfg)
    out = forward(params, x)
    out = jax.block_until_ready(out)

    assert out.shape == (2, cfg["n_events"], cfg["n_samples"]), out.shape
    assert jnp.all(jnp.isfinite(out))
    print("KERNEL_OK")
</pallas_src>

<mosaic_0001>
module attributes {stable_mosaic.version = 11 : i64} {
  func.func @_fused_analysis_kernel(%arg0: i32, %arg1: i32, %arg2: memref<1x1x640xf32, #tpu.memory_space<vmem>>, %arg3: memref<16x7xf32, #tpu.memory_space<vmem>>, %arg4: memref<16x1xf32, #tpu.memory_space<vmem>>, %arg5: memref<8x32x16xbf16, #tpu.memory_space<vmem>>, %arg6: memref<8x16x1xf32, #tpu.memory_space<vmem>>, %arg7: memref<16x16xbf16, #tpu.memory_space<vmem>>, %arg8: memref<16x1xf32, #tpu.memory_space<vmem>>, %arg9: memref<1x16x128xf32, #tpu.memory_space<vmem>>, %arg10: memref<1x1x1x16xf32, #tpu.memory_space<vmem>>) attributes {dimension_semantics = [#tpu.dimension_semantics<parallel>, #tpu.dimension_semantics<parallel>], iteration_bounds = array<i64: 2, 2>, scalar_prefetch = 0 : i64, scratch_operands = 0 : i64, tpu.core_type = #tpu.core_type<tc>, window_params = [{transform_indices = @transform_0, window_bounds = array<i64: 1, 1, 640>}, {pipeline_mode = #tpu.pipeline_mode<synchronous>, transform_indices = @transform_1, window_bounds = array<i64: 16, 7>}, {pipeline_mode = #tpu.pipeline_mode<synchronous>, transform_indices = @transform_2, window_bounds = array<i64: 16, 1>}, {pipeline_mode = #tpu.pipeline_mode<synchronous>, transform_indices = @transform_3, window_bounds = array<i64: 8, 32, 16>}, {pipeline_mode = #tpu.pipeline_mode<synchronous>, transform_indices = @transform_4, window_bounds = array<i64: 8, 16, 1>}, {pipeline_mode = #tpu.pipeline_mode<synchronous>, transform_indices = @transform_5, window_bounds = array<i64: 16, 16>}, {pipeline_mode = #tpu.pipeline_mode<synchronous>, transform_indices = @transform_6, window_bounds = array<i64: 16, 1>}, {transform_indices = @transform_7, window_bounds = array<i64: 1, 16, 128>}, {transform_indices = @transform_8, window_bounds = array<i64: 1, 1, 1, 16>}]} {
    %c128_i32 = arith.constant 128 : i32
    %0 = arith.muli %arg1, %c128_i32 : i32
    %1 = tpu.assume_multiple %0, 128 : i32
    %2 = tpu.iota {dimensions = array<i32: 1>} : vector<1x384xi32>
    %c256_i32 = arith.constant 256 : i32
    %3 = arith.subi %c256_i32, %1 : i32
    %c0 = arith.constant 0 : index
    %c0_0 = arith.constant 0 : index
    %4 = arith.index_cast %1 : i32 to index
    %5 = vector.load %arg2[%c0, %c0_0, %4] : memref<1x1x640xf32, #tpu.memory_space<vmem>>, vector<1x1x512xf32>
    %6 = vector.shape_cast %5 : vector<1x1x512xf32> to vector<1x512xf32>
    %cst = arith.constant 0.000000e+00 : f32
    %7 = vector.broadcast %cst : f32 to vector<16x384xf32>
    %8 = vector.extract_strided_slice %6 {offsets = [0, 0], sizes = [1, 384], strides = [1, 1]} : vector<1x512xf32> to vector<1x384xf32>
    %c0_1 = arith.constant 0 : index
    %c0_2 = arith.constant 0 : index
    %9 = vector.load %arg3[%c0_1, %c0_2] : memref<16x7xf32, #tpu.memory_space<vmem>>, vector<16x1xf32>
    %10 = vector.broadcast %9 : vector<16x1xf32> to vector<16x384xf32>
    %11 = vector.broadcast %8 : vector<1x384xf32> to vector<16x384xf32>
    %12 = arith.mulf %10, %11 : vector<16x384xf32>
    %13 = arith.addf %7, %12 : vector<16x384xf32>
    %c511_i32 = arith.constant 511 : i32
    %14 = tpu.dynamic_rotate %6 by %c511_i32 dim 1 : vector<1x512xf32>, i32 -> vector<1x512xf32>
    %15 = vector.extract_strided_slice %14 {offsets = [0, 0], sizes = [1, 384], strides = [1, 1]} : vector<1x512xf32> to vector<1x384xf32>
    %c0_3 = arith.constant 0 : index
    %c1 = arith.constant 1 : index
    %16 = vector.load %arg3[%c0_3, %c1] : memref<16x7xf32, #tpu.memory_space<vmem>>, vector<16x1xf32>
    %17 = vector.broadcast %16 : vector<16x1xf32> to vector<16x384xf32>
    %18 = vector.broadcast %15 : vector<1x384xf32> to vector<16x384xf32>
    %19 = arith.mulf %17, %18 : vector<16x384xf32>
    %20 = arith.addf %13, %19 : vector<16x384xf32>
    %c510_i32 = arith.constant 510 : i32
    %21 = tpu.dynamic_rotate %6 by %c510_i32 dim 1 : vector<1x512xf32>, i32 -> vector<1x512xf32>
    %22 = vector.extract_strided_slice %21 {offsets = [0, 0], sizes = [1, 384], strides = [1, 1]} : vector<1x512xf32> to vector<1x384xf32>
    %c0_4 = arith.constant 0 : index
    %c2 = arith.constant 2 : index
    %23 = vector.load %arg3[%c0_4, %c2] : memref<16x7xf32, #tpu.memory_space<vmem>>, vector<16x1xf32>
    %24 = vector.broadcast %23 : vector<16x1xf32> to vector<16x384xf32>
    %25 = vector.broadcast %22 : vector<1x384xf32> to vector<16x384xf32>
    %26 = arith.mulf %24, %25 : vector<16x384xf32>
    %27 = arith.addf %20, %26 : vector<16x384xf32>
    %c509_i32 = arith.constant 509 : i32
    %28 = tpu.dynamic_rotate %6 by %c509_i32 dim 1 : vector<1x512xf32>, i32 -> vector<1x512xf32>
    %29 = vector.extract_strided_slice %28 {offsets = [0, 0], sizes = [1, 384], strides = [1, 1]} : vector<1x512xf32> to vector<1x384xf32>
    %c0_5 = arith.constant 0 : index
    %c3 = arith.constant 3 : index
    %30 = vector.load %arg3[%c0_5, %c3] : memref<16x7xf32, #tpu.memory_space<vmem>>, vector<16x1xf32>
    %31 = vector.broadcast %30 : vector<16x1xf32> to vector<16x384xf32>
    %32 = vector.broadcast %29 : vector<1x384xf32> to vector<16x384xf32>
    %33 = arith.mulf %31, %32 : vector<16x384xf32>
    %34 = arith.addf %27, %33 : vector<16x384xf32>
    %c508_i32 = arith.constant 508 : i32
    %35 = tpu.dynamic_rotate %6 by %c508_i32 dim 1 : vector<1x512xf32>, i32 -> vector<1x512xf32>
    %36 = vector.extract_strided_slice %35 {offsets = [0, 0], sizes = [1, 384], strides = [1, 1]} : vector<1x512xf32> to vector<1x384xf32>
    %c0_6 = arith.constant 0 : index
    %c4 = arith.constant 4 : index
    %37 = vector.load %arg3[%c0_6, %c4] : memref<16x7xf32, #tpu.memory_space<vmem>>, vector<16x1xf32>
    %38 = vector.broadcast %37 : vector<16x1xf32> to vector<16x384xf32>
    %39 = vector.broadcast %36 : vector<1x384xf32> to vector<16x384xf32>
    %40 = arith.mulf %38, %39 : vector<16x384xf32>
    %41 = arith.addf %34, %40 : vector<16x384xf32>
    %c507_i32 = arith.constant 507 : i32
    %42 = tpu.dynamic_rotate %6 by %c507_i32 dim 1 : vector<1x512xf32>, i32 -> vector<1x512xf32>
    %43 = vector.extract_strided_slice %42 {offsets = [0, 0], sizes = [1, 384], strides = [1, 1]} : vector<1x512xf32> to vector<1x384xf32>
    %c0_7 = arith.constant 0 : index
    %c5 = arith.constant 5 : index
    %44 = vector.load %arg3[%c0_7, %c5] : memref<16x7xf32, #tpu.memory_space<vmem>>, vector<16x1xf32>
    %45 = vector.broadcast %44 : vector<16x1xf32> to vector<16x384xf32>
    %46 = vector.broadcast %43 : vector<1x384xf32> to vector<16x384xf32>
    %47 = arith.mulf %45, %46 : vector<16x384xf32>
    %48 = arith.addf %41, %47 : vector<16x384xf32>
    %c506_i32 = arith.constant 506 : i32
    %49 = tpu.dynamic_rotate %6 by %c506_i32 dim 1 : vector<1x512xf32>, i32 -> vector<1x512xf32>
    %50 = vector.extract_strided_slice %49 {offsets = [0, 0], sizes = [1, 384], strides = [1, 1]} : vector<1x512xf32> to vector<1x384xf32>
    %c0_8 = arith.constant 0 : index
    %c6 = arith.constant 6 : index
    %51 = vector.load %arg3[%c0_8, %c6] : memref<16x7xf32, #tpu.memory_space<vmem>>, vector<16x1xf32>
    %52 = vector.broadcast %51 : vector<16x1xf32> to vector<16x384xf32>
    %53 = vector.broadcast %50 : vector<1x384xf32> to vector<16x384xf32>
    %54 = arith.mulf %52, %53 : vector<16x384xf32>
    %55 = arith.addf %48, %54 : vector<16x384xf32>
    %c0_9 = arith.constant 0 : index
    %c0_10 = arith.constant 0 : index
    %56 = vector.load %arg4[%c0_9, %c0_10] : memref<16x1xf32, #tpu.memory_space<vmem>>, vector<16x1xf32>
    %57 = vector.broadcast %56 : vector<16x1xf32> to vector<16x384xf32>
    %58 = arith.addf %55, %57 : vector<16x384xf32>
    %cst_11 = arith.constant 0.000000e+00 : f32
    %59 = vector.broadcast %cst_11 : f32 to vector<16x384xf32>
    %c0_12 = arith.constant 0 : index
    %c0_13 = arith.constant 0 : index
    %c0_14 = arith.constant 0 : index
    %60 = vector.load %arg5[%c0_12, %c0_13, %c0_14] : memref<8x32x16xbf16, #tpu.memory_space<vmem>>, vector<1x32x16xbf16>
    %61 = vector.shape_cast %60 : vector<1x32x16xbf16> to vector<32x16xbf16>
    %62 = arith.truncf %58 : vector<16x384xf32> to vector<16x384xbf16>
    %cst_15 = arith.constant dense<0.000000e+00> : vector<32x384xf32>
    %63 = tpu.matmul %61, %62, %cst_15 {dimension_numbers = #tpu.dot_dimension_numbers<[1], [0], [0], [1], [0, 0, 1, 1], [], []>} : vector<32x16xbf16>, vector<16x384xbf16>, vector<32x384xf32> -> vector<32x384xf32>
    %64 = vector.extract_strided_slice %63 {offsets = [0, 0], sizes = [16, 384], strides = [1, 1]} : vector<32x384xf32> to vector<16x384xf32>
    %65 = vector.extract_strided_slice %63 {offsets = [16, 0], sizes = [16, 384], strides = [1, 1]} : vector<32x384xf32> to vector<16x384xf32>
    %c383_i32 = arith.constant 383 : i32
    %66 = tpu.dynamic_rotate %65 by %c383_i32 dim 1 : vector<16x384xf32>, i32 -> vector<16x384xf32>
    %c384_i32 = arith.constant 384 : i32
    %67 = arith.minsi %3, %c384_i32 : i32
    %c1_i32 = arith.constant 1 : i32
    %68 = arith.subi %67, %c1_i32 : i32
    %69 = vector.broadcast %68 : i32 to vector<1x384xi32>
    %70 = arith.cmpi slt, %2, %69 : vector<1x384xi32>
    %cst_16 = arith.constant 0.000000e+00 : f32
    %71 = vector.shape_cast %70 : vector<1x384xi1> to vector<1x384xi1>
    %72 = vector.broadcast %71 : vector<1x384xi1> to vector<16x384xi1>
    %73 = vector.broadcast %cst_16 : f32 to vector<16x384xf32>
    %74 = arith.select %72, %66, %73 : vector<16x384xi1>, vector<16x384xf32>
    %75 = arith.addf %64, %74 : vector<16x384xf32>
    %c0_17 = arith.constant 0 : index
    %c0_18 = arith.constant 0 : index
    %c0_19 = arith.constant 0 : index
    %76 = vector.load %arg6[%c0_17, %c0_18, %c0_19] : memref<8x16x1xf32, #tpu.memory_space<vmem>>, vector<1x16x1xf32>
    %77 = vector.shape_cast %76 : vector<1x16x1xf32> to vector<16x1xf32>
    %78 = vector.broadcast %77 : vector<16x1xf32> to vector<16x384xf32>
    %79 = arith.addf %75, %78 : vector<16x384xf32>
    %cst_20 = arith.constant 2.000000e-01 : f32
    %80 = vector.broadcast %cst_20 : f32 to vector<16x384xf32>
    %81 = arith.mulf %80, %79 : vector<16x384xf32>
    %82 = arith.maximumf %79, %81 : vector<16x384xf32>
    %83 = arith.addf %58, %82 : vector<16x384xf32>
    %84 = arith.addf %59, %83 : vector<16x384xf32>
    %c1_21 = arith.constant 1 : index
    %c0_22 = arith.constant 0 : index
    %c0_23 = arith.constant 0 : index
    %85 = vector.load %arg5[%c1_21, %c0_22, %c0_23] : memref<8x32x16xbf16, #tpu.memory_space<vmem>>, vector<1x32x16xbf16>
    %86 = vector.shape_cast %85 : vector<1x32x16xbf16> to vector<32x16xbf16>
    %87 = arith.truncf %83 : vector<16x384xf32> to vector<16x384xbf16>
    %cst_24 = arith.constant dense<0.000000e+00> : vector<32x384xf32>
    %88 = tpu.matmul %86, %87, %cst_24 {dimension_numbers = #tpu.dot_dimension_numbers<[1], [0], [0], [1], [0, 0, 1, 1], [], []>} : vector<32x16xbf16>, vector<16x384xbf16>, vector<32x384xf32> -> vector<32x384xf32>
    %89 = vector.extract_strided_slice %88 {offsets = [0, 0], sizes = [16, 384], strides = [1, 1]} : vector<32x384xf32> to vector<16x384xf32>
    %90 = vector.extract_strided_slice %88 {offsets = [16, 0], sizes = [16, 384], strides = [1, 1]} : vector<32x384xf32> to vector<16x384xf32>
    %c382_i32 = arith.constant 382 : i32
    %91 = tpu.dynamic_rotate %90 by %c382_i32 dim 1 : vector<16x384xf32>, i32 -> vector<16x384xf32>
    %c384_i32_25 = arith.constant 384 : i32
    %92 = arith.minsi %3, %c384_i32_25 : i32
    %c2_i32 = arith.constant 2 : i32
    %93 = arith.subi %92, %c2_i32 : i32
    %94 = vector.broadcast %93 : i32 to vector<1x384xi32>
    %95 = arith.cmpi slt, %2, %94 : vector<1x384xi32>
    %cst_26 = arith.constant 0.000000e+00 : f32
    %96 = vector.shape_cast %95 : vector<1x384xi1> to vector<1x384xi1>
    %97 = vector.broadcast %96 : vector<1x384xi1> to vector<16x384xi1>
    %98 = vector.broadcast %cst_26 : f32 to vector<16x384xf32>
    %99 = arith.select %97, %91, %98 : vector<16x384xi1>, vector<16x384xf32>
    %100 = arith.addf %89, %99 : vector<16x384xf32>
    %c1_27 = arith.constant 1 : index
    %c0_28 = arith.constant 0 : index
    %c0_29 = arith.constant 0 : index
    %101 = vector.load %arg6[%c1_27, %c0_28, %c0_29] : memref<8x16x1xf32, #tpu.memory_space<vmem>>, vector<1x16x1xf32>
    %102 = vector.shape_cast %101 : vector<1x16x1xf32> to vector<16x1xf32>
    %103 = vector.broadcast %102 : vector<16x1xf32> to vector<16x384xf32>
    %104 = arith.addf %100, %103 : vector<16x384xf32>
    %cst_30 = arith.constant 2.000000e-01 : f32
    %105 = vector.broadcast %cst_30 : f32 to vector<16x384xf32>
    %106 = arith.mulf %105, %104 : vector<16x384xf32>
    %107 = arith.maximumf %104, %106 : vector<16x384xf32>
    %108 = arith.addf %83, %107 : vector<16x384xf32>
    %109 = arith.addf %84, %108 : vector<16x384xf32>
    %c2_31 = arith.constant 2 : index
    %c0_32 = arith.constant 0 : index
    %c0_33 = arith.constant 0 : index
    %110 = vector.load %arg5[%c2_31, %c0_32, %c0_33] : memref<8x32x16xbf16, #tpu.memory_space<vmem>>, vector<1x32x16xbf16>
    %111 = vector.shape_cast %110 : vector<1x32x16xbf16> to vector<32x16xbf16>
    %112 = arith.truncf %108 : vector<16x384xf32> to vector<16x384xbf16>
    %cst_34 = arith.constant dense<0.000000e+00> : vector<32x384xf32>
    %113 = tpu.matmul %111, %112, %cst_34 {dimension_numbers = #tpu.dot_dimension_numbers<[1], [0], [0], [1], [0, 0, 1, 1], [], []>} : vector<32x16xbf16>, vector<16x384xbf16>, vector<32x384xf32> -> vector<32x384xf32>
    %114 = vector.extract_strided_slice %113 {offsets = [0, 0], sizes = [16, 384], strides = [1, 1]} : vector<32x384xf32> to vector<16x384xf32>
    %115 = vector.extract_strided_slice %113 {offsets = [16, 0], sizes = [16, 384], strides = [1, 1]} : vector<32x384xf32> to vector<16x384xf32>
    %c380_i32 = arith.constant 380 : i32
    %116 = tpu.dynamic_rotate %115 by %c380_i32 dim 1 : vector<16x384xf32>, i32 -> vector<16x384xf32>
    %c384_i32_35 = arith.constant 384 : i32
    %117 = arith.minsi %3, %c384_i32_35 : i32
    %c4_i32 = arith.constant 4 : i32
    %118 = arith.subi %117, %c4_i32 : i32
    %119 = vector.broadcast %118 : i32 to vector<1x384xi32>
    %120 = arith.cmpi slt, %2, %119 : vector<1x384xi32>
    %cst_36 = arith.constant 0.000000e+00 : f32
    %121 = vector.shape_cast %120 : vector<1x384xi1> to vector<1x384xi1>
    %122 = vector.broadcast %121 : vector<1x384xi1> to vector<16x384xi1>
    %123 = vector.broadcast %cst_36 : f32 to vector<16x384xf32>
    %124 = arith.select %122, %116, %123 : vector<16x384xi1>, vector<16x384xf32>
    %125 = arith.addf %114, %124 : vector<16x384xf32>
    %c2_37 = arith.constant 2 : index
    %c0_38 = arith.constant 0 : index
    %c0_39 = arith.constant 0 : index
    %126 = vector.load %arg6[%c2_37, %c0_38, %c0_39] : memref<8x16x1xf32, #tpu.memory_space<vmem>>, vector<1x16x1xf32>
    %127 = vector.shape_cast %126 : vector<1x16x1xf32> to vector<16x1xf32>
    %128 = vector.broadcast %127 : vector<16x1xf32> to vector<16x384xf32>
    %129 = arith.addf %125, %128 : vector<16x384xf32>
    %cst_40 = arith.constant 2.000000e-01 : f32
    %130 = vector.broadcast %cst_40 : f32 to vector<16x384xf32>
    %131 = arith.mulf %130, %129 : vector<16x384xf32>
    %132 = arith.maximumf %129, %131 : vector<16x384xf32>
    %133 = arith.addf %108, %132 : vector<16x384xf32>
    %134 = arith.addf %109, %133 : vector<16x384xf32>
    %c3_41 = arith.constant 3 : index
    %c0_42 = arith.constant 0 : index
    %c0_43 = arith.constant 0 : index
    %135 = vector.load %arg5[%c3_41, %c0_42, %c0_43] : memref<8x32x16xbf16, #tpu.memory_space<vmem>>, vector<1x32x16xbf16>
    %136 = vector.shape_cast %135 : vector<1x32x16xbf16> to vector<32x16xbf16>
    %137 = arith.truncf %133 : vector<16x384xf32> to vector<16x384xbf16>
    %cst_44 = arith.constant dense<0.000000e+00> : vector<32x384xf32>
    %138 = tpu.matmul %136, %137, %cst_44 {dimension_numbers = #tpu.dot_dimension_numbers<[1], [0], [0], [1], [0, 0, 1, 1], [], []>} : vector<32x16xbf16>, vector<16x384xbf16>, vector<32x384xf32> -> vector<32x384xf32>
    %139 = vector.extract_strided_slice %138 {offsets = [0, 0], sizes = [16, 384], strides = [1, 1]} : vector<32x384xf32> to vector<16x384xf32>
    %140 = vector.extract_strided_slice %138 {offsets = [16, 0], sizes = [16, 384], strides = [1, 1]} : vector<32x384xf32> to vector<16x384xf32>
    %c376_i32 = arith.constant 376 : i32
    %141 = tpu.dynamic_rotate %140 by %c376_i32 dim 1 : vector<16x384xf32>, i32 -> vector<16x384xf32>
    %c384_i32_45 = arith.constant 384 : i32
    %142 = arith.minsi %3, %c384_i32_45 : i32
    %c8_i32 = arith.constant 8 : i32
    %143 = arith.subi %142, %c8_i32 : i32
    %144 = vector.broadcast %143 : i32 to vector<1x384xi32>
    %145 = arith.cmpi slt, %2, %144 : vector<1x384xi32>
    %cst_46 = arith.constant 0.000000e+00 : f32
    %146 = vector.shape_cast %145 : vector<1x384xi1> to vector<1x384xi1>
    %147 = vector.broadcast %146 : vector<1x384xi1> to vector<16x384xi1>
    %148 = vector.broadcast %cst_46 : f32 to vector<16x384xf32>
    %149 = arith.select %147, %141, %148 : vector<16x384xi1>, vector<16x384xf32>
    %150 = arith.addf %139, %149 : vector<16x384xf32>
    %c3_47 = arith.constant 3 : index
    %c0_48 = arith.constant 0 : index
    %c0_49 = arith.constant 0 : index
    %151 = vector.load %arg6[%c3_47, %c0_48, %c0_49] : memref<8x16x1xf32, #tpu.memory_space<vmem>>, vector<1x16x1xf32>
    %152 = vector.shape_cast %151 : vector<1x16x1xf32> to vector<16x1xf32>
    %153 = vector.broadcast %152 : vector<16x1xf32> to vector<16x384xf32>
    %154 = arith.addf %150, %153 : vector<16x384xf32>
    %cst_50 = arith.constant 2.000000e-01 : f32
    %155 = vector.broadcast %cst_50 : f32 to vector<16x384xf32>
    %156 = arith.mulf %155, %154 : vector<16x384xf32>
    %157 = arith.maximumf %154, %156 : vector<16x384xf32>
    %158 = arith.addf %133, %157 : vector<16x384xf32>
    %159 = arith.addf %134, %158 : vector<16x384xf32>
    %c4_51 = arith.constant 4 : index
    %c0_52 = arith.constant 0 : index
    %c0_53 = arith.constant 0 : index
    %160 = vector.load %arg5[%c4_51, %c0_52, %c0_53] : memref<8x32x16xbf16, #tpu.memory_space<vmem>>, vector<1x32x16xbf16>
    %161 = vector.shape_cast %160 : vector<1x32x16xbf16> to vector<32x16xbf16>
    %162 = arith.truncf %158 : vector<16x384xf32> to vector<16x384xbf16>
    %cst_54 = arith.constant dense<0.000000e+00> : vector<32x384xf32>
    %163 = tpu.matmul %161, %162, %cst_54 {dimension_numbers = #tpu.dot_dimension_numbers<[1], [0], [0], [1], [0, 0, 1, 1], [], []>} : vector<32x16xbf16>, vector<16x384xbf16>, vector<32x384xf32> -> vector<32x384xf32>
    %164 = vector.extract_strided_slice %163 {offsets = [0, 0], sizes = [16, 384], strides = [1, 1]} : vector<32x384xf32> to vector<16x384xf32>
    %165 = vector.extract_strided_slice %163 {offsets = [16, 0], sizes = [16, 384], strides = [1, 1]} : vector<32x384xf32> to vector<16x384xf32>
    %c368_i32 = arith.constant 368 : i32
    %166 = tpu.dynamic_rotate %165 by %c368_i32 dim 1 : vector<16x384xf32>, i32 -> vector<16x384xf32>
    %c384_i32_55 = arith.constant 384 : i32
    %167 = arith.minsi %3, %c384_i32_55 : i32
    %c16_i32 = arith.constant 16 : i32
    %168 = arith.subi %167, %c16_i32 : i32
    %169 = vector.broadcast %168 : i32 to vector<1x384xi32>
    %170 = arith.cmpi slt, %2, %169 : vector<1x384xi32>
    %cst_56 = arith.constant 0.000000e+00 : f32
    %171 = vector.shape_cast %170 : vector<1x384xi1> to vector<1x384xi1>
    %172 = vector.broadcast %171 : vector<1x384xi1> to vector<16x384xi1>
    %173 = vector.broadcast %cst_56 : f32 to vector<16x384xf32>
    %174 = arith.select %172, %166, %173 : vector<16x384xi1>, vector<16x384xf32>
    %175 = arith.addf %164, %174 : vector<16x384xf32>
    %c4_57 = arith.constant 4 : index
    %c0_58 = arith.constant 0 : index
    %c0_59 = arith.constant 0 : index
    %176 = vector.load %arg6[%c4_57, %c0_58, %c0_59] : memref<8x16x1xf32, #tpu.memory_space<vmem>>, vector<1x16x1xf32>
    %177 = vector.shape_cast %176 : vector<1x16x1xf32> to vector<16x1xf32>
    %178 = vector.broadcast %177 : vector<16x1xf32> to vector<16x384xf32>
    %179 = arith.addf %175, %178 : vector<16x384xf32>
    %cst_60 = arith.constant 2.000000e-01 : f32
    %180 = vector.broadcast %cst_60 : f32 to vector<16x384xf32>
    %181 = arith.mulf %180, %179 : vector<16x384xf32>
    %182 = arith.maximumf %179, %181 : vector<16x384xf32>
    %183 = arith.addf %158, %182 : vector<16x384xf32>
    %184 = arith.addf %159, %183 : vector<16x384xf32>
    %c5_61 = arith.constant 5 : index
    %c0_62 = arith.constant 0 : index
    %c0_63 = arith.constant 0 : index
    %185 = vector.load %arg5[%c5_61, %c0_62, %c0_63] : memref<8x32x16xbf16, #tpu.memory_space<vmem>>, vector<1x32x16xbf16>
    %186 = vector.shape_cast %185 : vector<1x32x16xbf16> to vector<32x16xbf16>
    %187 = arith.truncf %183 : vector<16x384xf32> to vector<16x384xbf16>
    %cst_64 = arith.constant dense<0.000000e+00> : vector<32x384xf32>
    %188 = tpu.matmul %186, %187, %cst_64 {dimension_numbers = #tpu.dot_dimension_numbers<[1], [0], [0], [1], [0, 0, 1, 1], [], []>} : vector<32x16xbf16>, vector<16x384xbf16>, vector<32x384xf32> -> vector<32x384xf32>
    %189 = vector.extract_strided_slice %188 {offsets = [0, 0], sizes = [16, 384], strides = [1, 1]} : vector<32x384xf32> to vector<16x384xf32>
    %190 = vector.extract_strided_slice %188 {offsets = [16, 0], sizes = [16, 384], strides = [1, 1]} : vector<32x384xf32> to vector<16x384xf32>
    %c352_i32 = arith.constant 352 : i32
    %191 = tpu.dynamic_rotate %190 by %c352_i32 dim 1 : vector<16x384xf32>, i32 -> vector<16x384xf32>
    %c384_i32_65 = arith.constant 384 : i32
    %192 = arith.minsi %3, %c384_i32_65 : i32
    %c32_i32 = arith.constant 32 : i32
    %193 = arith.subi %192, %c32_i32 : i32
    %194 = vector.broadcast %193 : i32 to vector<1x384xi32>
    %195 = arith.cmpi slt, %2, %194 : vector<1x384xi32>
    %cst_66 = arith.constant 0.000000e+00 : f32
    %196 = vector.shape_cast %195 : vector<1x384xi1> to vector<1x384xi1>
    %197 = vector.broadcast %196 : vector<1x384xi1> to vector<16x384xi1>
    %198 = vector.broadcast %cst_66 : f32 to vector<16x384xf32>
    %199 = arith.select %197, %191, %198 : vector<16x384xi1>, vector<16x384xf32>
    %200 = arith.addf %189, %199 : vector<16x384xf32>
    %c5_67 = arith.constant 5 : index
    %c0_68 = arith.constant 0 : index
    %c0_69 = arith.constant 0 : index
    %201 = vector.load %arg6[%c5_67, %c0_68, %c0_69] : memref<8x16x1xf32, #tpu.memory_space<vmem>>, vector<1x16x1xf32>
    %202 = vector.shape_cast %201 : vector<1x16x1xf32> to vector<16x1xf32>
    %203 = vector.broadcast %202 : vector<16x1xf32> to vector<16x384xf32>
    %204 = arith.addf %200, %203 : vector<16x384xf32>
    %cst_70 = arith.constant 2.000000e-01 : f32
    %205 = vector.broadcast %cst_70 : f32 to vector<16x384xf32>
    %206 = arith.mulf %205, %204 : vector<16x384xf32>
    %207 = arith.maximumf %204, %206 : vector<16x384xf32>
    %208 = arith.addf %183, %207 : vector<16x384xf32>
    %209 = arith.addf %184, %208 : vector<16x384xf32>
    %c6_71 = arith.constant 6 : index
    %c0_72 = arith.constant 0 : index
    %c0_73 = arith.constant 0 : index
    %210 = vector.load %arg5[%c6_71, %c0_72, %c0_73] : memref<8x32x16xbf16, #tpu.memory_space<vmem>>, vector<1x32x16xbf16>
    %211 = vector.shape_cast %210 : vector<1x32x16xbf16> to vector<32x16xbf16>
    %212 = arith.truncf %208 : vector<16x384xf32> to vector<16x384xbf16>
    %cst_74 = arith.constant dense<0.000000e+00> : vector<32x384xf32>
    %213 = tpu.matmul %211, %212, %cst_74 {dimension_numbers = #tpu.dot_dimension_numbers<[1], [0], [0], [1], [0, 0, 1, 1], [], []>} : vector<32x16xbf16>, vector<16x384xbf16>, vector<32x384xf32> -> vector<32x384xf32>
    %214 = vector.extract_strided_slice %213 {offsets = [0, 0], sizes = [16, 384], strides = [1, 1]} : vector<32x384xf32> to vector<16x384xf32>
    %215 = vector.extract_strided_slice %213 {offsets = [16, 0], sizes = [16, 384], strides = [1, 1]} : vector<32x384xf32> to vector<16x384xf32>
    %c320_i32 = arith.constant 320 : i32
    %216 = tpu.dynamic_rotate %215 by %c320_i32 dim 1 : vector<16x384xf32>, i32 -> vector<16x384xf32>
    %c384_i32_75 = arith.constant 384 : i32
    %217 = arith.minsi %3, %c384_i32_75 : i32
    %c64_i32 = arith.constant 64 : i32
    %218 = arith.subi %217, %c64_i32 : i32
    %219 = vector.broadcast %218 : i32 to vector<1x384xi32>
    %220 = arith.cmpi slt, %2, %219 : vector<1x384xi32>
    %cst_76 = arith.constant 0.000000e+00 : f32
    %221 = vector.shape_cast %220 : vector<1x384xi1> to vector<1x384xi1>
    %222 = vector.broadcast %221 : vector<1x384xi1> to vector<16x384xi1>
    %223 = vector.broadcast %cst_76 : f32 to vector<16x384xf32>
    %224 = arith.select %222, %216, %223 : vector<16x384xi1>, vector<16x384xf32>
    %225 = arith.addf %214, %224 : vector<16x384xf32>
    %c6_77 = arith.constant 6 : index
    %c0_78 = arith.constant 0 : index
    %c0_79 = arith.constant 0 : index
    %226 = vector.load %arg6[%c6_77, %c0_78, %c0_79] : memref<8x16x1xf32, #tpu.memory_space<vmem>>, vector<1x16x1xf32>
    %227 = vector.shape_cast %226 : vector<1x16x1xf32> to vector<16x1xf32>
    %228 = vector.broadcast %227 : vector<16x1xf32> to vector<16x384xf32>
    %229 = arith.addf %225, %228 : vector<16x384xf32>
    %cst_80 = arith.constant 2.000000e-01 : f32
    %230 = vector.broadcast %cst_80 : f32 to vector<16x384xf32>
    %231 = arith.mulf %230, %229 : vector<16x384xf32>
    %232 = arith.maximumf %229, %231 : vector<16x384xf32>
    %233 = arith.addf %208, %232 : vector<16x384xf32>
    %234 = arith.addf %209, %233 : vector<16x384xf32>
    %c7 = arith.constant 7 : index
    %c0_81 = arith.constant 0 : index
    %c0_82 = arith.constant 0 : index
    %235 = vector.load %arg5[%c7, %c0_81, %c0_82] : memref<8x32x16xbf16, #tpu.memory_space<vmem>>, vector<1x32x16xbf16>
    %236 = vector.shape_cast %235 : vector<1x32x16xbf16> to vector<32x16xbf16>
    %237 = arith.truncf %233 : vector<16x384xf32> to vector<16x384xbf16>
    %cst_83 = arith.constant dense<0.000000e+00> : vector<32x384xf32>
    %238 = tpu.matmul %236, %237, %cst_83 {dimension_numbers = #tpu.dot_dimension_numbers<[1], [0], [0], [1], [0, 0, 1, 1], [], []>} : vector<32x16xbf16>, vector<16x384xbf16>, vector<32x384xf32> -> vector<32x384xf32>
    %239 = vector.extract_strided_slice %238 {offsets = [0, 0], sizes = [16, 384], strides = [1, 1]} : vector<32x384xf32> to vector<16x384xf32>
    %240 = vector.extract_strided_slice %238 {offsets = [16, 0], sizes = [16, 384], strides = [1, 1]} : vector<32x384xf32> to vector<16x384xf32>
    %c382_i32_84 = arith.constant 382 : i32
    %241 = tpu.dynamic_rotate %240 by %c382_i32_84 dim 1 : vector<16x384xf32>, i32 -> vector<16x384xf32>
    %c384_i32_85 = arith.constant 384 : i32
    %242 = arith.minsi %3, %c384_i32_85 : i32
    %c2_i32_86 = arith.constant 2 : i32
    %243 = arith.subi %242, %c2_i32_86 : i32
    %244 = vector.broadcast %243 : i32 to vector<1x384xi32>
    %245 = arith.cmpi slt, %2, %244 : vector<1x384xi32>
    %cst_87 = arith.constant 0.000000e+00 : f32
    %246 = vector.shape_cast %245 : vector<1x384xi1> to vector<1x384xi1>
    %247 = vector.broadcast %246 : vector<1x384xi1> to vector<16x384xi1>
    %248 = vector.broadcast %cst_87 : f32 to vector<16x384xf32>
    %249 = arith.select %247, %241, %248 : vector<16x384xi1>, vector<16x384xf32>
    %250 = arith.addf %239, %249 : vector<16x384xf32>
    %c7_88 = arith.constant 7 : index
    %c0_89 = arith.constant 0 : index
    %c0_90 = arith.constant 0 : index
    %251 = vector.load %arg6[%c7_88, %c0_89, %c0_90] : memref<8x16x1xf32, #tpu.memory_space<vmem>>, vector<1x16x1xf32>
    %252 = vector.shape_cast %251 : vector<1x16x1xf32> to vector<16x1xf32>
    %253 = vector.broadcast %252 : vector<16x1xf32> to vector<16x384xf32>
    %254 = arith.addf %250, %253 : vector<16x384xf32>
    %cst_91 = arith.constant 2.000000e-01 : f32
    %255 = vector.broadcast %cst_91 : f32 to vector<16x384xf32>
    %256 = arith.mulf %255, %254 : vector<16x384xf32>
    %257 = arith.maximumf %254, %256 : vector<16x384xf32>
    %258 = arith.addf %233, %257 : vector<16x384xf32>
    %259 = arith.addf %234, %258 : vector<16x384xf32>
    %cst_92 = arith.constant 0.000000e+00 : f32
    %260 = vector.broadcast %cst_92 : f32 to vector<16x384xf32>
    %261 = arith.maximumf %259, %260 : vector<16x384xf32>
    %262 = vector.broadcast %3 : i32 to vector<1x384xi32>
    %263 = arith.cmpi slt, %2, %262 : vector<1x384xi32>
    %cst_93 = arith.constant 0.000000e+00 : f32
    %264 = vector.shape_cast %263 : vector<1x384xi1> to vector<1x384xi1>
    %265 = vector.broadcast %264 : vector<1x384xi1> to vector<16x384xi1>
    %266 = vector.broadcast %cst_93 : f32 to vector<16x384xf32>
    %267 = arith.select %265, %261, %266 : vector<16x384xi1>, vector<16x384xf32>
    %268 = vector.extract_strided_slice %267 {offsets = [0, 0], sizes = [16, 128], strides = [1, 1]} : vector<16x384xf32> to vector<16x128xf32>
    %cst_94 = arith.constant dense<0.000000e+00> : vector<16xf32>
    %269 = vector.multi_reduction <add>, %268, %cst_94 [1] : vector<16x128xf32> to vector<16xf32>
    %270 = vector.shape_cast %269 : vector<16xf32> to vector<1x1x1x16xf32>
    %c0_95 = arith.constant 0 : index
    %c0_96 = arith.constant 0 : index
    %c0_97 = arith.constant 0 : index
    %c0_98 = arith.constant 0 : index
    %271 = vector.load %arg10[%c0_95, %c0_96, %c0_97, %c0_98] : memref<1x1x1x16xf32, #tpu.memory_space<vmem>>, vector<1x1x1x16xf32>
    tpu.vector_store %arg10[%c0_95, %c0_96, %c0_97, %c0_98], %270 {strides = array<i32>} : memref<1x1x1x16xf32, #tpu.memory_space<vmem>>, vector<1x1x1x16xf32>,
    %c383_i32_99 = arith.constant 383 : i32
    %272 = tpu.dynamic_rotate %267 by %c383_i32_99 dim 1 : vector<16x384xf32>, i32 -> vector<16x384xf32>
    %c383_i32_100 = arith.constant 383 : i32
    %273 = vector.broadcast %c383_i32_100 : i32 to vector<1x384xi32>
    %274 = arith.cmpi slt, %2, %273 : vector<1x384xi32>
    %cst_101 = arith.constant 0.000000e+00 : f32
    %275 = vector.shape_cast %274 : vector<1x384xi1> to vector<1x384xi1>
    %276 = vector.broadcast %275 : vector<1x384xi1> to vector<16x384xi1>
    %277 = vector.broadcast %cst_101 : f32 to vector<16x384xf32>
    %278 = arith.select %276, %272, %277 : vector<16x384xi1>, vector<16x384xf32>
    %279 = arith.addf %267, %278 : vector<16x384xf32>
    %c382_i32_102 = arith.constant 382 : i32
    %280 = tpu.dynamic_rotate %279 by %c382_i32_102 dim 1 : vector<16x384xf32>, i32 -> vector<16x384xf32>
    %c382_i32_103 = arith.constant 382 : i32
    %281 = vector.broadcast %c382_i32_103 : i32 to vector<1x384xi32>
    %282 = arith.cmpi slt, %2, %281 : vector<1x384xi32>
    %cst_104 = arith.constant 0.000000e+00 : f32
    %283 = vector.shape_cast %282 : vector<1x384xi1> to vector<1x384xi1>
    %284 = vector.broadcast %283 : vector<1x384xi1> to vector<16x384xi1>
    %285 = vector.broadcast %cst_104 : f32 to vector<16x384xf32>
    %286 = arith.select %284, %280, %285 : vector<16x384xi1>, vector<16x384xf32>
    %287 = arith.addf %279, %286 : vector<16x384xf32>
    %c380_i32_105 = arith.constant 380 : i32
    %288 = tpu.dynamic_rotate %287 by %c380_i32_105 dim 1 : vector<16x384xf32>, i32 -> vector<16x384xf32>
    %c380_i32_106 = arith.constant 380 : i32
    %289 = vector.broadcast %c380_i32_106 : i32 to vector<1x384xi32>
    %290 = arith.cmpi slt, %2, %289 : vector<1x384xi32>
    %cst_107 = arith.constant 0.000000e+00 : f32
    %291 = vector.shape_cast %290 : vector<1x384xi1> to vector<1x384xi1>
    %292 = vector.broadcast %291 : vector<1x384xi1> to vector<16x384xi1>
    %293 = vector.broadcast %cst_107 : f32 to vector<16x384xf32>
    %294 = arith.select %292, %288, %293 : vector<16x384xi1>, vector<16x384xf32>
    %295 = arith.addf %287, %294 : vector<16x384xf32>
    %c376_i32_108 = arith.constant 376 : i32
    %296 = tpu.dynamic_rotate %295 by %c376_i32_108 dim 1 : vector<16x384xf32>, i32 -> vector<16x384xf32>
    %c376_i32_109 = arith.constant 376 : i32
    %297 = vector.broadcast %c376_i32_109 : i32 to vector<1x384xi32>
    %298 = arith.cmpi slt, %2, %297 : vector<1x384xi32>
    %cst_110 = arith.constant 0.000000e+00 : f32
    %299 = vector.shape_cast %298 : vector<1x384xi1> to vector<1x384xi1>
    %300 = vector.broadcast %299 : vector<1x384xi1> to vector<16x384xi1>
    %301 = vector.broadcast %cst_110 : f32 to vector<16x384xf32>
    %302 = arith.select %300, %296, %301 : vector<16x384xi1>, vector<16x384xf32>
    %303 = arith.addf %295, %302 : vector<16x384xf32>
    %c368_i32_111 = arith.constant 368 : i32
    %304 = tpu.dynamic_rotate %303 by %c368_i32_111 dim 1 : vector<16x384xf32>, i32 -> vector<16x384xf32>
    %c368_i32_112 = arith.constant 368 : i32
    %305 = vector.broadcast %c368_i32_112 : i32 to vector<1x384xi32>
    %306 = arith.cmpi slt, %2, %305 : vector<1x384xi32>
    %cst_113 = arith.constant 0.000000e+00 : f32
    %307 = vector.shape_cast %306 : vector<1x384xi1> to vector<1x384xi1>
    %308 = vector.broadcast %307 : vector<1x384xi1> to vector<16x384xi1>
    %309 = vector.broadcast %cst_113 : f32 to vector<16x384xf32>
    %310 = arith.select %308, %304, %309 : vector<16x384xi1>, vector<16x384xf32>
    %311 = arith.addf %303, %310 : vector<16x384xf32>
    %312 = vector.extract_strided_slice %267 {offsets = [0, 0], sizes = [16, 128], strides = [1, 1]} : vector<16x384xf32> to vector<16x128xf32>
    %313 = vector.extract_strided_slice %311 {offsets = [0, 0], sizes = [16, 128], strides = [1, 1]} : vector<16x384xf32> to vector<16x128xf32>
    %cst_114 = arith.constant 3.125000e-02 : f32
    %314 = vector.broadcast %cst_114 : f32 to vector<16x128xf32>
    %315 = arith.mulf %313, %314 : vector<16x128xf32>
    %316 = arith.subf %312, %315 : vector<16x128xf32>
    %c0_115 = arith.constant 0 : index
    %c0_116 = arith.constant 0 : index
    %317 = vector.load %arg7[%c0_115, %c0_116] : memref<16x16xbf16, #tpu.memory_space<vmem>>, vector<16x16xbf16>
    %318 = arith.truncf %316 : vector<16x128xf32> to vector<16x128xbf16>
    %cst_117 = arith.constant dense<0.000000e+00> : vector<16x128xf32>
    %319 = tpu.matmul %317, %318, %cst_117 {dimension_numbers = #tpu.dot_dimension_numbers<[1], [0], [0], [1], [0, 0, 1, 1], [], []>} : vector<16x16xbf16>, vector<16x128xbf16>, vector<16x128xf32> -> vector<16x128xf32>
    %c0_118 = arith.constant 0 : index
    %c0_119 = arith.constant 0 : index
    %320 = vector.load %arg8[%c0_118, %c0_119] : memref<16x1xf32, #tpu.memory_space<vmem>>, vector<16x1xf32>
    %321 = vector.broadcast %320 : vector<16x1xf32> to vector<16x128xf32>
    %322 = arith.addf %319, %321 : vector<16x128xf32>
    %c0_120 = arith.constant 0 : index
    %c0_121 = arith.constant 0 : index
    %c0_122 = arith.constant 0 : index
    %323 = vector.load %arg9[%c0_120, %c0_121, %c0_122] : memref<1x16x128xf32, #tpu.memory_space<vmem>>, vector<1x16x128xf32>
    %324 = vector.shape_cast %323 : vector<1x16x128xf32> to vector<16x128xf32>
    %325 = vector.shape_cast %322 : vector<16x128xf32> to vector<1x16x128xf32>
    tpu.vector_store %arg9[%c0_120, %c0_121, %c0_122], %325 {strides = array<i32>} : memref<1x16x128xf32, #tpu.memory_space<vmem>>, vector<1x16x128xf32>,
    return
  }
  func.func @transform_0(%arg0: i32, %arg1: i32) -> (i32, i32, i32) {
    %c0_i32 = arith.constant 0 : i32
    %c0_i32_0 = arith.constant 0 : i32
    %c0_i32_1 = arith.constant 0 : i32
    return %arg0, %c0_i32, %c0_i32_0 : i32, i32, i32
  }
  func.func @transform_1(%arg0: i32, %arg1: i32) -> (i32, i32) {
    %c0_i32 = arith.constant 0 : i32
    %c0_i32_0 = arith.constant 0 : i32
    %c0_i32_1 = arith.constant 0 : i32
    return %c0_i32, %c0_i32_0 : i32, i32
  }
  func.func @transform_2(%arg0: i32, %arg1: i32) -> (i32, i32) {
    %c0_i32 = arith.constant 0 : i32
    %c0_i32_0 = arith.constant 0 : i32
    %c0_i32_1 = arith.constant 0 : i32
    return %c0_i32, %c0_i32_0 : i32, i32
  }
  func.func @transform_3(%arg0: i32, %arg1: i32) -> (i32, i32, i32) {
    %c0_i32 = arith.constant 0 : i32
    %c0_i32_0 = arith.constant 0 : i32
    %c0_i32_1 = arith.constant 0 : i32
    %c0_i32_2 = arith.constant 0 : i32
    return %c0_i32, %c0_i32_0, %c0_i32_1 : i32, i32, i32
  }
  func.func @transform_4(%arg0: i32, %arg1: i32) -> (i32, i32, i32) {
    %c0_i32 = arith.constant 0 : i32
    %c0_i32_0 = arith.constant 0 : i32
    %c0_i32_1 = arith.constant 0 : i32
    %c0_i32_2 = arith.constant 0 : i32
    return %c0_i32, %c0_i32_0, %c0_i32_1 : i32, i32, i32
  }
  func.func @transform_5(%arg0: i32, %arg1: i32) -> (i32, i32) {
    %c0_i32 = arith.constant 0 : i32
    %c0_i32_0 = arith.constant 0 : i32
    %c0_i32_1 = arith.constant 0 : i32
    return %c0_i32, %c0_i32_0 : i32, i32
  }
  func.func @transform_6(%arg0: i32, %arg1: i32) -> (i32, i32) {
    %c0_i32 = arith.constant 0 : i32
    %c0_i32_0 = arith.constant 0 : i32
    %c0_i32_1 = arith.constant 0 : i32
    return %c0_i32, %c0_i32_0 : i32, i32
  }
  func.func @transform_7(%arg0: i32, %arg1: i32) -> (i32, i32, i32) {
    %c0_i32 = arith.constant 0 : i32
    %c0_i32_0 = arith.constant 0 : i32
    return %arg0, %c0_i32, %arg1 : i32, i32, i32
  }
  func.func @transform_8(%arg0: i32, %arg1: i32) -> (i32, i32, i32, i32) {
    %c0_i32 = arith.constant 0 : i32
    %c0_i32_0 = arith.constant 0 : i32
    %c0_i32_1 = arith.constant 0 : i32
    return %arg0, %arg1, %c0_i32, %c0_i32_0 : i32, i32, i32, i32
  }
}

</mosaic_0001>

<bundles_post_ra>
// kernel: custom-call
= control target key start
LH: loop header
LB: loop body
LE: loop exit
PB: predicated region body
PF: predicated region fallthrough
CT: control target
= control target key end

     0   :  { %v1241_v0 = vmov 2147483648   ;;  %v1242_v1 = vmov 2147483647   ;;  %s1385_s0 = inlined_call_operand.vmem [shape: f32[2,4096], index: 0, kind: input, shape index: {}]   ;;  %s1386_s1 = inlined_call_operand.vmem [shape: f32[2,8], index: 1, kind: output, shape index: {0}]   ;;  %s1387_s2 = inlined_call_operand.vmem [shape: s32[2,8], index: 2, kind: output, shape index: {1}]  }
   0x1   :  { %6 = vst [vmem:[#allocation11] sm:$0xff] %v1241_v0  ;;  %7 = vst [vmem:[#allocation13] sm:$0xff] %v1242_v1 }
   0x2   :  { %v24_v2 = vld [vmem:[%s1385_s0] sm:$0xff]  ;;  %v26_v3 = vld [vmem:[%s1385_s0 + $0x8] sm:$0xff]  ;;  %v45_v4 = vlaneseq  ;;  %v28_v5 = vld [vmem:[%s1385_s0 + $0x10] sm:$0xff]  ;;  %v1243_v7 = vmov 2147483648   ;;  %v1244_v8 = vmov 2147483647  }
   0x3   :  { %v30_v6 = vld [vmem:[%s1385_s0 + $0x18] sm:$0xff]  ;;  %158 = vst [vmem:[#allocation12] sm:$0xff] %v1243_v7  ;;  %159 = vst [vmem:[#allocation14] sm:$0xff] %v1244_v8  ;;  %v32_v9 = vld [vmem:[%s1385_s0 + $0x20] sm:$0xff]  ;;  %v56_v12 = vsub.s32 2147483647, %v24_v2 }
   0x4   :  { %v34_v10 = vld [vmem:[%s1385_s0 + $0x28] sm:$0xff]  ;;  %v1284_v11 = vshrl.u32 %v45_v4, 7  ;;  %v36_v13 = vld [vmem:[%s1385_s0 + $0x30] sm:$0xff]  ;;  %v38_v14 = vld [vmem:[%s1385_s0 + $0x38] sm:$0xff]  ;;  %v46_v15 = vand.u32 127, %v45_v4  ;;  %vm55_vm0 = vcmp.lt.s32.totalorder %v24_v2, 0 }
   0x5   :  { %v65_v16 = vsub.s32 2147483647, %v26_v3  ;;  %vm64_vm1 = vcmp.lt.s32.totalorder %v26_v3, 0  ;;  %v74_v18 = vsub.s32 2147483647, %v28_v5  ;;  %vm73_vm2 = vcmp.lt.s32.totalorder %v28_v5, 0 }
   0x6   :  { %v49_v17 = vshrl.u32 %v1284_v11, 1  ;;  %v83_v19 = vsub.s32 2147483647, %v30_v6  ;;  %vm82_vm3 = vcmp.lt.s32.totalorder %v30_v6, 0  ;;  %v92_v20 = vsub.s32 2147483647, %v32_v9 }
   0x7   :  { %v101_v21 = vsub.s32 2147483647, %v34_v10  ;;  %vm91_vm4 = vcmp.lt.s32.totalorder %v32_v9, 0  ;;  %vm100_vm5 = vcmp.lt.s32.totalorder %v34_v10, 0  ;;  %vm109_vm6 = vcmp.lt.s32.totalorder %v36_v13, 0  ;;  %s1295_s0 = smov 0  }
   0x8   :  { %v51_v22 = vmul.u32 128, %v49_v17  ;;  %v57_v23 = vsel %vm55_vm0, %v56_v12, %v24_v2  ;;  %v110_v24 = vsub.s32 2147483647, %v36_v13  ;;  %vm118_vm7 = vcmp.lt.s32.totalorder %v38_v14, 0 }
   0x9   :  { %v119_v25 = vsub.s32 2147483647, %v38_v14  ;;  %v66_v27 = vsel %vm64_vm1, %v65_v16, %v26_v3  ;;  %v75_v28 = vsel %vm73_vm2, %v74_v18, %v28_v5  ;;  %v84_v29 = vsel %vm82_vm3, %v83_v19, %v30_v6 }
   0xa   :  { %v52_v26 = vadd.s32 %v51_v22, %v46_v15  ;;  %v93_v30 = vsel %vm91_vm4, %v92_v20, %v32_v9  ;;  %v102_v31 = vsel %vm100_vm5, %v101_v21, %v34_v10  ;;  %v111_v32 = vsel %vm109_vm6, %v110_v24, %v36_v13 }
   0xb   :  { %v120_v33 = vsel %vm118_vm7, %v119_v25, %v38_v14 }
   0xc   :  { %vm59_vm8 = vcmp.lt.s32.totalorder %v52_v26, 4096  ;;  %v67_v34 = vadd.s32 512, %v52_v26  ;;  %v76_v35 = vadd.s32 1024, %v52_v26  ;;  %v85_v36 = vadd.s32 1536, %v52_v26  ;;  %135 = vst [vmem:[#allocation16] sm:$0xff] %v52_v26 }
   0xd   :  { %v60_v37 = vsel %vm59_vm8, %v57_v23, 2147483648  ;;  %v94_v38 = vadd.s32 2048, %v52_v26  ;;  %v103_v39 = vadd.s32 2560, %v52_v26  ;;  %v112_v40 = vadd.s32 3072, %v52_v26 }
   0xe   :  { %61 = vst [vmem:[#allocation15] sm:$0xff] %v60_v37  ;;  %vm68_vm9 = vcmp.lt.s32.totalorder %v67_v34, 4096  ;;  %vm77_vm10 = vcmp.lt.s32.totalorder %v76_v35, 4096  ;;  %vm86_vm11 = vcmp.lt.s32.totalorder %v85_v36, 4096  ;;  %v121_v41 = vadd.s32 3584, %v52_v26  ;;  %138 = vst [vmem:[#allocation16 + $0x8] sm:$0xff] %v67_v34 }
   0xf   :  { %141 = vst [vmem:[#allocation16 + $0x10] sm:$0xff] %v76_v35  ;;  %144 = vst [vmem:[#allocation16 + $0x18] sm:$0xff] %v85_v36  ;;  %v69_v42 = vsel %vm68_vm9, %v66_v27, 2147483648  ;;  %v78_v43 = vsel %vm77_vm10, %v75_v28, 2147483648  ;;  %v87_v44 = vsel %vm86_vm11, %v84_v29, 2147483648  ;;  %vm95_vm12 = vcmp.lt.s32.totalorder %v94_v38, 4096 }
  0x10   :  { %147 = vst [vmem:[#allocation16 + $0x20] sm:$0xff] %v94_v38  ;;  %150 = vst [vmem:[#allocation16 + $0x28] sm:$0xff] %v103_v39  ;;  %v96_v45 = vsel %vm95_vm12, %v93_v30, 2147483648  ;;  %vm104_vm13 = vcmp.lt.s32.totalorder %v103_v39, 4096  ;;  %vm113_vm14 = vcmp.lt.s32.totalorder %v112_v40, 4096  ;;  %vm122_vm15 = vcmp.lt.s32.totalorder %v121_v41, 4096 }
  0x11   :  { %153 = vst [vmem:[#allocation16 + $0x30] sm:$0xff] %v112_v40  ;;  %70 = vst [vmem:[#allocation15 + $0x8] sm:$0xff] %v69_v42  ;;  %v105_v46 = vsel %vm104_vm13, %v102_v31, 2147483648  ;;  %v114_v47 = vsel %vm113_vm14, %v111_v32, 2147483648  ;;  %v123_v48 = vsel %vm122_vm15, %v120_v33, 2147483648 }
  0x12   :  { %79 = vst [vmem:[#allocation15 + $0x10] sm:$0xff] %v78_v43  ;;  %88 = vst [vmem:[#allocation15 + $0x18] sm:$0xff] %v87_v44 }
  0x13   :  { %156 = vst [vmem:[#allocation16 + $0x38] sm:$0xff] %v121_v41  ;;  %97 = vst [vmem:[#allocation15 + $0x20] sm:$0xff] %v96_v45 }
  0x14   :  { %106 = vst [vmem:[#allocation15 + $0x28] sm:$0xff] %v105_v46  ;;  %115 = vst [vmem:[#allocation15 + $0x30] sm:$0xff] %v114_v47 }
  0x15   :  { %124 = vst [vmem:[#allocation15 + $0x38] sm:$0xff] %v123_v48 }
  0x16 LB: > { %v167_v49 = vld [vmem:[#allocation15] sm:$0xff]  ;;  %v173_v52 = vld [vmem:[#allocation16 + $0x8] sm:$0xff]  ;;  %v186_v54 = vld [vmem:[#allocation16 + $0x10] sm:$0xff]  ;;  %s571_s25 = scalar_lea.vmem [#allocation12], %s1239_s0  ;;  %s573_s26 = scalar_lea.vmem [#allocation14], %s1239_s0  ;;  %s1239_s0 = sphi %s1295_s0, %s166_s0  }
  0x17   : > { %v168_v50 = vld [vmem:[#allocation16] sm:$0xff]  ;;  %v199_v58 = vld [vmem:[#allocation16 + $0x18] sm:$0xff]  ;;  %v225_v2 = vld [vmem:[#allocation16 + $0x28] sm:$0xff]  ;;  %s166_s0 = sadd.s32 1, %s1239_s0  }
  0x18   : > { %v171_v51 = vld [vmem:[#allocation15 + $0x8] sm:$0xff]  ;;  %vm177_vm2 = vcmp.lt.s32.totalorder %v173_v52, %v168_v50  ;;  %v212_v62 = vld [vmem:[#allocation16 + $0x20] sm:$0xff]  ;;  %v238_v7 = vld [vmem:[#allocation16 + $0x30] sm:$0xff]  ;;  %p163_p2 = scmp.ge.s32.totalorder %s166_s0, 8  }
  0x19   : > { %vm175_vm0 = vcmp.gt.s32.totalorder %v171_v51, %v167_v49  ;;  %vm176_vm1 = vcmp.eq.s32.totalorder %v171_v51, %v167_v49  ;;  %v184_v53 = vld [vmem:[#allocation15 + $0x10] sm:$0xff]  ;;  %v197_v57 = vld [vmem:[#allocation15 + $0x18] sm:$0xff] }
  0x1a   : > { %vm178_vm3 = vmand %vm176_vm1, %vm177_vm2  ;;  %v210_v61 = vld [vmem:[#allocation15 + $0x20] sm:$0xff]  ;;  %v251_v12 = vld [vmem:[#allocation16 + $0x38] sm:$0xff] }
  0x1b   : > { %vm179_vm4 = vmor %vm175_vm0, %vm178_vm3  ;;  %v223_v1 = vld [vmem:[#allocation15 + $0x28] sm:$0xff]  ;;  %v236_v6 = vld [vmem:[#allocation15 + $0x30] sm:$0xff] }
  0x1c   : > { %v180_v55 = vsel %vm179_vm4, %v171_v51, %v167_v49  ;;  %v181_v56 = vsel %vm179_vm4, %v173_v52, %v168_v50  ;;  %v249_v10 = vld [vmem:[#allocation15 + $0x38] sm:$0xff] }
  0x1d   : > { %vm188_vm5 = vcmp.gt.s32.totalorder %v184_v53, %v180_v55  ;;  %vm189_vm6 = vcmp.eq.s32.totalorder %v184_v53, %v180_v55  ;;  %vm190_vm7 = vcmp.lt.s32.totalorder %v186_v54, %v181_v56 }
  0x1e   : > { %vm191_vm8 = vmand %vm189_vm6, %vm190_vm7 }
  0x1f   : > { %vm192_vm9 = vmor %vm188_vm5, %vm191_vm8 }
  0x20   : > { %v193_v59 = vsel %vm192_vm9, %v184_v53, %v180_v55  ;;  %v194_v60 = vsel %vm192_vm9, %v186_v54, %v181_v56 }
  0x21   : > { %vm201_vm10 = vcmp.gt.s32.totalorder %v197_v57, %v193_v59  ;;  %vm202_vm11 = vcmp.eq.s32.totalorder %v197_v57, %v193_v59  ;;  %vm203_vm12 = vcmp.lt.s32.totalorder %v199_v58, %v194_v60 }
  0x22   : > { %vm204_vm13 = vmand %vm202_vm11, %vm203_vm12 }
  0x23   : > { %vm205_vm14 = vmor %vm201_vm10, %vm204_vm13 }
  0x24   : > { %v206_v63 = vsel %vm205_vm14, %v197_v57, %v193_v59  ;;  %v207_v0 = vsel %vm205_vm14, %v199_v58, %v194_v60 }
  0x25   : > { %vm214_vm15 = vcmp.gt.s32.totalorder %v210_v61, %v206_v63  ;;  %vm215_vm0 = vcmp.eq.s32.totalorder %v210_v61, %v206_v63  ;;  %vm216_vm1 = vcmp.lt.s32.totalorder %v212_v62, %v207_v0 }
  0x26   : > { %vm217_vm2 = vmand %vm215_vm0, %vm216_vm1 }
  0x27   : > { %vm218_vm3 = vmor %vm214_vm15, %vm217_vm2 }
  0x28   : > { %v219_v3 = vsel %vm218_vm3, %v210_v61, %v206_v63  ;;  %v220_v5 = vsel %vm218_vm3, %v212_v62, %v207_v0 }
  0x29   : > { %vm227_vm4 = vcmp.gt.s32.totalorder %v223_v1, %v219_v3  ;;  %vm228_vm5 = vcmp.eq.s32.totalorder %v223_v1, %v219_v3  ;;  %vm229_vm6 = vcmp.lt.s32.totalorder %v225_v2, %v220_v5 }
  0x2a   : > { %vm230_vm7 = vmand %vm228_vm5, %vm229_vm6 }
  0x2b   : > { %vm231_vm8 = vmor %vm227_vm4, %vm230_vm7 }
  0x2c   : > { %v232_v8 = vsel %vm231_vm8, %v223_v1, %v219_v3  ;;  %v233_v9 = vsel %vm231_vm8, %v225_v2, %v220_v5 }
  0x2d   : > { %vm240_vm9 = vcmp.gt.s32.totalorder %v236_v6, %v232_v8  ;;  %vm241_vm10 = vcmp.eq.s32.totalorder %v236_v6, %v232_v8  ;;  %vm242_vm11 = vcmp.lt.s32.totalorder %v238_v7, %v233_v9 }
  0x2e   : > { %vm243_vm12 = vmand %vm241_vm10, %vm242_vm11 }
  0x2f   : > { %vm244_vm13 = vmor %vm240_vm9, %vm243_vm12 }
  0x30   : > { %v245_v13 = vsel %vm244_vm13, %v236_v6, %v232_v8  ;;  %v246_v14 = vsel %vm244_vm13, %v238_v7, %v233_v9 }
  0x31   : > { %vm253_vm14 = vcmp.gt.s32.totalorder %v249_v10, %v245_v13  ;;  %vm254_vm15 = vcmp.eq.s32.totalorder %v249_v10, %v245_v13  ;;  %vm255_vm0 = vcmp.lt.s32.totalorder %v251_v12, %v246_v14 }
  0x32   : > { %vm256_vm1 = vmand %vm254_vm15, %vm255_vm0 }
  0x33   : > { %vm257_vm2 = vmor %vm253_vm14, %vm256_vm1 }
  0x34   : > { %v258_v15 = vsel %vm257_vm2, %v249_v10, %v245_v13  ;;  %v259_v16 = vsel %vm257_vm2, %v251_v12, %v246_v14 }
  0x35   : > { %v261_v17 = vrot.slane %v258_v15, 2  ;;  %v262_v18 = vrot.slane %v259_v16, 2 }
  0x37   : > { %vm264_vm3 = vcmp.gt.s32.totalorder %v261_v17, %v258_v15  ;;  %vm265_vm4 = vcmp.eq.s32.totalorder %v261_v17, %v258_v15  ;;  %vm266_vm5 = vcmp.lt.s32.totalorder %v262_v18, %v259_v16 }
  0x38   : > { %vm267_vm6 = vmand %vm265_vm4, %vm266_vm5 }
  0x39   : > { %vm268_vm7 = vmor %vm264_vm3, %vm267_vm6 }
  0x3a   : > { %v269_v19 = vsel %vm268_vm7, %v261_v17, %v258_v15  ;;  %v270_v20 = vsel %vm268_vm7, %v262_v18, %v259_v16 }
  0x3b   : > { %v272_v21 = vrot.slane %v269_v19, 2  ;;  %v273_v22 = vrot.slane %v270_v20, 2 }
  0x3d   : > { %vm275_vm8 = vcmp.gt.s32.totalorder %v272_v21, %v269_v19  ;;  %vm276_vm9 = vcmp.eq.s32.totalorder %v272_v21, %v269_v19  ;;  %vm277_vm10 = vcmp.lt.s32.totalorder %v273_v22, %v270_v20 }
  0x3e   : > { %vm278_vm11 = vmand %vm276_vm9, %vm277_vm10 }
  0x3f   : > { %vm279_vm12 = vmor %vm275_vm8, %vm278_vm11 }
  0x40   : > { %v280_v23 = vsel %vm279_vm12, %v272_v21, %v269_v19  ;;  %v281_v24 = vsel %vm279_vm12, %v273_v22, %v270_v20 }
  0x41   : > { %v283_v25 = vrot.slane %v280_v23, 2  ;;  %v284_v26 = vrot.slane %v281_v24, 2 }
  0x43   : > { %vm286_vm13 = vcmp.gt.s32.totalorder %v283_v25, %v280_v23  ;;  %vm287_vm14 = vcmp.eq.s32.totalorder %v283_v25, %v280_v23  ;;  %vm288_vm15 = vcmp.lt.s32.totalorder %v284_v26, %v281_v24 }
  0x44   : > { %vm289_vm0 = vmand %vm287_vm14, %vm288_vm15 }
  0x45   : > { %vm290_vm1 = vmor %vm286_vm13, %vm289_vm0 }
  0x46   : > { %v292_v27 = vsel %vm290_vm1, %v284_v26, %v281_v24  ;;  %v291_v28 = vsel %vm290_vm1, %v283_v25, %v280_v23 }
  0x47   : > { %326 = vxpose.xlu1.b32.start [1/16] %v292_v27, 128  ;;  %294 = vxpose.xlu0.b32.start [1/16] %v291_v28, 128 }
  0x4b   : > { %327 = vxpose.xlu1.b32.cont [2/16] %v292_v27, 128  ;;  %295 = vxpose.xlu0.b32.cont [2/16] %v291_v28, 128 }
  0x4f   : > { %328 = vxpose.xlu1.b32.cont [3/16] %v292_v27, 128  ;;  %296 = vxpose.xlu0.b32.cont [3/16] %v291_v28, 128 }
  0x53   : > { %329 = vxpose.xlu1.b32.cont [4/16] %v292_v27, 128  ;;  %297 = vxpose.xlu0.b32.cont [4/16] %v291_v28, 128 }
  0x57   : > { %330 = vxpose.xlu1.b32.cont [5/16] %v292_v27, 128  ;;  %298 = vxpose.xlu0.b32.cont [5/16] %v291_v28, 128 }
  0x5b   : > { %331 = vxpose.xlu1.b32.cont [6/16] %v292_v27, 128  ;;  %299 = vxpose.xlu0.b32.cont [6/16] %v291_v28, 128 }
  0x5f   : > { %332 = vxpose.xlu1.b32.cont [7/16] %v292_v27, 128  ;;  %300 = vxpose.xlu0.b32.cont [7/16] %v291_v28, 128 }
  0x63   : > { %333 = vxpose.xlu1.b32.cont [8/16] %v292_v27, 128  ;;  %301 = vxpose.xlu0.b32.cont [8/16] %v291_v28, 128 }
  0x67   : > { %334 = vxpose.xlu1.b32.cont [9/16] %v292_v27, 128  ;;  %302 = vxpose.xlu0.b32.cont [9/16] %v291_v28, 128 }
  0x6b   : > { %335 = vxpose.xlu1.b32.cont [10/16] %v292_v27, 128  ;;  %303 = vxpose.xlu0.b32.cont [10/16] %v291_v28, 128 }
  0x6f   : > { %336 = vxpose.xlu1.b32.cont [11/16] %v292_v27, 128  ;;  %304 = vxpose.xlu0.b32.cont [11/16] %v291_v28, 128 }
  0x73   : > { %337 = vxpose.xlu1.b32.cont [12/16] %v292_v27, 128  ;;  %305 = vxpose.xlu0.b32.cont [12/16] %v291_v28, 128 }
  0x77   : > { %338 = vxpose.xlu1.b32.cont [13/16] %v292_v27, 128  ;;  %306 = vxpose.xlu0.b32.cont [13/16] %v291_v28, 128 }
  0x7b   : > { %339 = vxpose.xlu1.b32.cont [14/16] %v292_v27, 128  ;;  %307 = vxpose.xlu0.b32.cont [14/16] %v291_v28, 128 }
  0x7f   : > { %340 = vxpose.xlu1.b32.cont [15/16] %v292_v27, 128  ;;  %308 = vxpose.xlu0.b32.cont [15/16] %v291_v28, 128 }
  0x83   : > { %341 = vxpose.xlu1.b32.end [16/16] %v292_v27, 128  ;;  %309 = vxpose.xlu0.b32.end [16/16] %v291_v28, 128 }
  0xc3   : > { %v342_v29 = vpop.trf.xlu1  ;;  %v310_v30 = vpop.trf.xlu0 }
  0xc7   : > { %v343_v31 = vpop.trf.xlu1  ;;  %v311_v32 = vpop.trf.xlu0 }
  0xc8   : > { %vm362_vm2 = vcmp.lt.s32.totalorder %v343_v31, %v342_v29  ;;  %vm360_vm3 = vcmp.gt.s32.totalorder %v311_v32, %v310_v30  ;;  %vm361_vm4 = vcmp.eq.s32.totalorder %v311_v32, %v310_v30 }
  0xc9   : > { %vm363_vm5 = vmand %vm361_vm4, %vm362_vm2 }
  0xca   : > { %vm364_vm6 = vmor %vm360_vm3, %vm363_vm5 }
  0xcb   : > { %v365_v33 = vsel %vm364_vm6, %v311_v32, %v310_v30  ;;  %v344_v34 = vpop.trf.xlu1  ;;  %v366_v35 = vsel %vm364_vm6, %v343_v31, %v342_v29  ;;  %v312_v36 = vpop.trf.xlu0 }
  0xcc   : > { %vm371_vm7 = vcmp.lt.s32.totalorder %v344_v34, %v366_v35  ;;  %vm369_vm8 = vcmp.gt.s32.totalorder %v312_v36, %v365_v33  ;;  %vm370_vm9 = vcmp.eq.s32.totalorder %v312_v36, %v365_v33 }
  0xcd   : > { %vm372_vm10 = vmand %vm370_vm9, %vm371_vm7 }
  0xce   : > { %vm373_vm11 = vmor %vm369_vm8, %vm372_vm10 }
  0xcf   : > { %v374_v37 = vsel %vm373_vm11, %v312_v36, %v365_v33  ;;  %v345_v38 = vpop.trf.xlu1  ;;  %v375_v39 = vsel %vm373_vm11, %v344_v34, %v366_v35  ;;  %v313_v40 = vpop.trf.xlu0 }
  0xd0   : > { %vm380_vm12 = vcmp.lt.s32.totalorder %v345_v38, %v375_v39  ;;  %vm378_vm13 = vcmp.gt.s32.totalorder %v313_v40, %v374_v37  ;;  %vm379_vm14 = vcmp.eq.s32.totalorder %v313_v40, %v374_v37 }
  0xd1   : > { %vm381_vm15 = vmand %vm379_vm14, %vm380_vm12 }
  0xd2   : > { %vm382_vm0 = vmor %vm378_vm13, %vm381_vm15 }
  0xd3   : > { %v383_v41 = vsel %vm382_vm0, %v313_v40, %v374_v37  ;;  %v346_v42 = vpop.trf.xlu1  ;;  %v384_v43 = vsel %vm382_vm0, %v345_v38, %v375_v39  ;;  %v314_v44 = vpop.trf.xlu0 }
  0xd4   : > { %vm389_vm1 = vcmp.lt.s32.totalorder %v346_v42, %v384_v43  ;;  %vm387_vm2 = vcmp.gt.s32.totalorder %v314_v44, %v383_v41  ;;  %vm388_vm3 = vcmp.eq.s32.totalorder %v314_v44, %v383_v41 }
  0xd5   : > { %vm390_vm4 = vmand %vm388_vm3, %vm389_vm1 }
  0xd6   : > { %vm391_vm5 = vmor %vm387_vm2, %vm390_vm4 }
  0xd7   : > { %v392_v45 = vsel %vm391_vm5, %v314_v44, %v383_v41  ;;  %v347_v46 = vpop.trf.xlu1  ;;  %v393_v47 = vsel %vm391_vm5, %v346_v42, %v384_v43  ;;  %v315_v48 = vpop.trf.xlu0 }
  0xd8   : > { %vm398_vm6 = vcmp.lt.s32.totalorder %v347_v46, %v393_v47  ;;  %vm396_vm7 = vcmp.gt.s32.totalorder %v315_v48, %v392_v45  ;;  %vm397_vm8 = vcmp.eq.s32.totalorder %v315_v48, %v392_v45 }
  0xd9   : > { %vm399_vm9 = vmand %vm397_vm8, %vm398_vm6 }
  0xda   : > { %vm400_vm10 = vmor %vm396_vm7, %vm399_vm9 }
  0xdb   : > { %v401_v49 = vsel %vm400_vm10, %v315_v48, %v392_v45  ;;  %v348_v50 = vpop.trf.xlu1  ;;  %v402_v51 = vsel %vm400_vm10, %v347_v46, %v393_v47  ;;  %v316_v52 = vpop.trf.xlu0 }
  0xdc   : > { %vm407_vm11 = vcmp.lt.s32.totalorder %v348_v50, %v402_v51  ;;  %vm405_vm12 = vcmp.gt.s32.totalorder %v316_v52, %v401_v49  ;;  %vm406_vm13 = vcmp.eq.s32.totalorder %v316_v52, %v401_v49 }
  0xdd   : > { %vm408_vm14 = vmand %vm406_vm13, %vm407_vm11 }
  0xde   : > { %vm409_vm15 = vmor %vm405_vm12, %vm408_vm14 }
  0xdf   : > { %v410_v53 = vsel %vm409_vm15, %v316_v52, %v401_v49  ;;  %v349_v54 = vpop.trf.xlu1  ;;  %v411_v55 = vsel %vm409_vm15, %v348_v50, %v402_v51  ;;  %v317_v56 = vpop.trf.xlu0 }
  0xe0   : > { %vm416_vm0 = vcmp.lt.s32.totalorder %v349_v54, %v411_v55  ;;  %vm414_vm1 = vcmp.gt.s32.totalorder %v317_v56, %v410_v53  ;;  %vm415_vm2 = vcmp.eq.s32.totalorder %v317_v56, %v410_v53 }
  0xe1   : > { %vm417_vm3 = vmand %vm415_vm2, %vm416_vm0 }
  0xe2   : > { %vm418_vm4 = vmor %vm414_vm1, %vm417_vm3 }
  0xe3   : > { %v419_v57 = vsel %vm418_vm4, %v317_v56, %v410_v53  ;;  %v350_v58 = vpop.trf.xlu1  ;;  %v420_v59 = vsel %vm418_vm4, %v349_v54, %v411_v55  ;;  %v318_v60 = vpop.trf.xlu0 }
  0xe4   : > { %vm425_vm5 = vcmp.lt.s32.totalorder %v350_v58, %v420_v59  ;;  %vm423_vm6 = vcmp.gt.s32.totalorder %v318_v60, %v419_v57  ;;  %vm424_vm7 = vcmp.eq.s32.totalorder %v318_v60, %v419_v57 }
  0xe5   : > { %vm426_vm8 = vmand %vm424_vm7, %vm425_vm5 }
  0xe6   : > { %vm427_vm9 = vmor %vm423_vm6, %vm426_vm8 }
  0xe7   : > { %v428_v61 = vsel %vm427_vm9, %v318_v60, %v419_v57  ;;  %v351_v62 = vpop.trf.xlu1  ;;  %v429_v63 = vsel %vm427_vm9, %v350_v58, %v420_v59  ;;  %v319_v0 = vpop.trf.xlu0  ;;  %v1245_v60 = vmov 2147483648  }
  0xe8   : > { %vm434_vm10 = vcmp.lt.s32.totalorder %v351_v62, %v429_v63  ;;  %vm432_vm11 = vcmp.gt.s32.totalorder %v319_v0, %v428_v61  ;;  %vm433_vm12 = vcmp.eq.s32.totalorder %v319_v0, %v428_v61 }
  0xe9   : > { %vm435_vm13 = vmand %vm433_vm12, %vm434_vm10 }
  0xea   : > { %vm436_vm14 = vmor %vm432_vm11, %vm435_vm13 }
  0xeb   : > { %v437_v1 = vsel %vm436_vm14, %v319_v0, %v428_v61  ;;  %v352_v2 = vpop.trf.xlu1  ;;  %v438_v3 = vsel %vm436_vm14, %v351_v62, %v429_v63  ;;  %v320_v5 = vpop.trf.xlu0  ;;  %v1246_v61 = vmov 2147483647  }
  0xec   : > { %vm443_vm15 = vcmp.lt.s32.totalorder %v352_v2, %v438_v3  ;;  %vm441_vm0 = vcmp.gt.s32.totalorder %v320_v5, %v437_v1  ;;  %vm442_vm1 = vcmp.eq.s32.totalorder %v320_v5, %v437_v1 }
  0xed   : > { %vm444_vm2 = vmand %vm442_vm1, %vm443_vm15 }
  0xee   : > { %vm445_vm3 = vmor %vm441_vm0, %vm444_vm2 }
  0xef   : > { %v446_v6 = vsel %vm445_vm3, %v320_v5, %v437_v1  ;;  %v353_v7 = vpop.trf.xlu1  ;;  %v447_v8 = vsel %vm445_vm3, %v352_v2, %v438_v3  ;;  %v321_v9 = vpop.trf.xlu0  ;;  %v669_v2 = vld [vmem:[#allocation11] sm:$0xff] (%p163_p2)  ;;  %v670_v3 = vld [vmem:[#allocation13] sm:$0xff] (%p163_p2)  ;;  %v1247_v5 = vmov (%p163_p2), 839939668  }
  0xf0   : > { %vm452_vm4 = vcmp.lt.s32.totalorder %v353_v7, %v447_v8  ;;  %vm450_vm5 = vcmp.gt.s32.totalorder %v321_v9, %v446_v6  ;;  %vm451_vm6 = vcmp.eq.s32.totalorder %v321_v9, %v446_v6 }
  0xf1   : > { %vm453_vm7 = vmand %vm451_vm6, %vm452_vm4 }
  0xf2   : > { %vm454_vm8 = vmor %vm450_vm5, %vm453_vm7 }
  0xf3   : > { %v455_v10 = vsel %vm454_vm8, %v321_v9, %v446_v6  ;;  %v354_v12 = vpop.trf.xlu1  ;;  %v456_v13 = vsel %vm454_vm8, %v353_v7, %v447_v8  ;;  %v322_v14 = vpop.trf.xlu0  ;;  %v694_v6 = vunpack.c.l.s4 (%p163_p2), %v1247_v5  ;;  %v1248_v7 = vmov (%p163_p2), 1417023538  }
  0xf4   : > { %vm461_vm9 = vcmp.lt.s32.totalorder %v354_v12, %v456_v13  ;;  %vm459_vm10 = vcmp.gt.s32.totalorder %v322_v14, %v455_v10  ;;  %vm460_vm11 = vcmp.eq.s32.totalorder %v322_v14, %v455_v10  ;;  %v722_v8 = vunpack.c.l.s4 (%p163_p2), %v1248_v7 }
  0xf5   : > { %vm462_vm12 = vmand %vm460_vm11, %vm461_vm9  ;;  %v695_v9 = vunpack.c.0.s8 (%p163_p2), %v694_v6 }
  0xf6   : > { %vm463_vm13 = vmor %vm459_vm10, %vm462_vm12 }
  0xf7   : > { %v464_v15 = vsel %vm463_vm13, %v322_v14, %v455_v10  ;;  %v355_v16 = vpop.trf.xlu1  ;;  %v465_v17 = vsel %vm463_vm13, %v354_v12, %v456_v13  ;;  %v323_v18 = vpop.trf.xlu0  ;;  %v715_v14 = vand.u32 (%p163_p2), 4, %v1284_v11 }
  0xf8   : > { %vm470_vm14 = vcmp.lt.s32.totalorder %v355_v16, %v465_v17  ;;  %vm468_vm15 = vcmp.gt.s32.totalorder %v323_v18, %v464_v15  ;;  %vm469_vm0 = vcmp.eq.s32.totalorder %v323_v18, %v464_v15 }
  0xf9   : > { %vm471_vm1 = vmand %vm469_vm0, %vm470_vm14 }
  0xfa   : > { %vm472_vm2 = vmor %vm468_vm15, %vm471_vm1 }
  0xfb   : > { %v473_v19 = vsel %vm472_vm2, %v323_v18, %v464_v15  ;;  %v356_v20 = vpop.trf.xlu1  ;;  %v474_v21 = vsel %vm472_vm2, %v355_v16, %v465_v17  ;;  %v324_v22 = vpop.trf.xlu0  ;;  %v723_v16 = vunpack.c.0.s8 (%p163_p2), %v722_v8 }
  0xfc   : > { %vm479_vm3 = vcmp.lt.s32.totalorder %v356_v20, %v474_v21  ;;  %vm477_vm4 = vcmp.gt.s32.totalorder %v324_v22, %v473_v19  ;;  %vm478_vm5 = vcmp.eq.s32.totalorder %v324_v22, %v473_v19 }
  0xfd   : > { %vm480_vm6 = vmand %vm478_vm5, %vm479_vm3 }
  0xfe   : > { %vm481_vm7 = vmor %vm477_vm4, %vm480_vm6 }
  0xff   : > { %v482_v23 = vsel %vm481_vm7, %v324_v22, %v473_v19  ;;  %v357_v24 = vpop.trf.xlu1  ;;  %v483_v25 = vsel %vm481_vm7, %v356_v20, %v474_v21  ;;  %v325_v26 = vpop.trf.xlu0  ;;  %v1249_v22 = vmov (%p163_p2), 1732584193  }
 0x100   : > { %vm488_vm8 = vcmp.lt.s32.totalorder %v357_v24, %v483_v25  ;;  %vm486_vm9 = vcmp.gt.s32.totalorder %v325_v26, %v482_v23  ;;  %vm487_vm10 = vcmp.eq.s32.totalorder %v325_v26, %v482_v23 }
 0x101   : > { %vm489_vm11 = vmand %vm487_vm10, %vm488_vm8 }
 0x102   : > { %vm490_vm12 = vmor %vm486_vm9, %vm489_vm11 }
 0x103   : > { %v491_v27 = vsel %vm490_vm12, %v325_v26, %v482_v23  ;;  %v492_v28 = vsel %vm490_vm12, %v357_v24, %v483_v25  ;;  %v750_v23 = vunpack.c.l.s4 (%p163_p2), %v1249_v22  ;;  %v1320_v24 = vsub.s32 (%p163_p2), %v723_v16, %v1284_v11 }
 0x104   : > { %v494_v29 = vrot.slane %v491_v27, 1  ;;  %v495_v30 = vrot.slane %v492_v28, 1  ;;  %v743_v25 = vand.u32 (%p163_p2), 2, %v1284_v11 }
 0x106   : > { %vm497_vm13 = vcmp.gt.s32.totalorder %v494_v29, %v491_v27  ;;  %vm498_vm14 = vcmp.eq.s32.totalorder %v494_v29, %v491_v27  ;;  %vm499_vm15 = vcmp.lt.s32.totalorder %v495_v30, %v492_v28 }
 0x107   : > { %vm500_vm0 = vmand %vm498_vm14, %vm499_vm15 }
 0x108   : > { %vm501_vm1 = vmor %vm497_vm13, %vm500_vm0 }
 0x109   : > { %v502_v31 = vsel %vm501_vm1, %v494_v29, %v491_v27  ;;  %v503_v32 = vsel %vm501_vm1, %v495_v30, %v492_v28  ;;  %v751_v28 = vunpack.c.0.s8 (%p163_p2), %v750_v23 }
 0x10a   : > { %v505_v33 = vrot.slane %v502_v31, 1  ;;  %v506_v34 = vrot.slane %v503_v32, 1 }
 0x10c   : > { %vm508_vm2 = vcmp.gt.s32.totalorder %v505_v33, %v502_v31  ;;  %vm509_vm3 = vcmp.eq.s32.totalorder %v505_v33, %v502_v31  ;;  %vm510_vm4 = vcmp.lt.s32.totalorder %v506_v34, %v503_v32 }
 0x10d   : > { %vm511_vm5 = vmand %vm509_vm3, %vm510_vm4 }
 0x10e   : > { %vm512_vm6 = vmor %vm508_vm2, %vm511_vm5 }
 0x10f   : > { %v513_v35 = vsel %vm512_vm6, %v505_v33, %v502_v31  ;;  %v514_v36 = vsel %vm512_vm6, %v506_v34, %v503_v32  ;;  %v1334_v33 = vsub.s32 (%p163_p2), %v751_v28, %v1284_v11 }
 0x110   : > { %v516_v37 = vrot.slane %v513_v35, 1  ;;  %v517_v38 = vrot.slane %v514_v36, 1 }
 0x112   : > { %vm521_vm7 = vcmp.lt.s32.totalorder %v517_v38, %v514_v36  ;;  %vm519_vm8 = vcmp.gt.s32.totalorder %v516_v37, %v513_v35  ;;  %vm520_vm9 = vcmp.eq.s32.totalorder %v516_v37, %v513_v35 }
 0x113   : > { %vm522_vm10 = vmand %vm520_vm9, %vm521_vm7 }
 0x114   : > { %vm523_vm11 = vmor %vm519_vm8, %vm522_vm10 }
 0x115   : > { %v524_v39 = vsel %vm523_vm11, %v516_v37, %v513_v35  ;;  %v525_v40 = vsel %vm523_vm11, %v517_v38, %v514_v36  ;;  %v771_v37 = vand.u32 (%p163_p2), 1, %v1284_v11 }
 0x116   : > { %v527_v41 = vrot.slane %v524_v39, 1  ;;  %v528_v42 = vrot.slane %v525_v40, 1 }
 0x118   : > { %vm530_vm12 = vcmp.gt.s32.totalorder %v527_v41, %v524_v39  ;;  %vm531_vm13 = vcmp.eq.s32.totalorder %v527_v41, %v524_v39  ;;  %vm532_vm14 = vcmp.lt.s32.totalorder %v528_v42, %v525_v40 }
 0x119   : > { %vm533_vm15 = vmand %vm531_vm13, %vm532_vm14 }
 0x11a   : > { %vm534_vm0 = vmor %vm530_vm12, %vm533_vm15 }
 0x11b   : > { %v535_v43 = vsel %vm534_vm0, %v527_v41, %v524_v39  ;;  %v536_v44 = vsel %vm534_vm0, %v528_v42, %v525_v40 }
 0x11c   : > { %v538_v45 = vrot.slane %v535_v43, 1  ;;  %v539_v46 = vrot.slane %v536_v44, 1 }
 0x11e   : > { %vm541_vm1 = vcmp.gt.s32.totalorder %v538_v45, %v535_v43  ;;  %vm542_vm2 = vcmp.eq.s32.totalorder %v538_v45, %v535_v43  ;;  %vm543_vm3 = vcmp.lt.s32.totalorder %v539_v46, %v536_v44 }
 0x11f   : > { %vm544_vm4 = vmand %vm542_vm2, %vm543_vm3 }
 0x120   : > { %vm545_vm5 = vmor %vm541_vm1, %vm544_vm4 }
 0x121   : > { %v546_v47 = vsel %vm545_vm5, %v538_v45, %v535_v43  ;;  %v547_v48 = vsel %vm545_vm5, %v539_v46, %v536_v44 }
 0x122   : > { %v549_v49 = vrot.slane %v546_v47, 1  ;;  %v550_v50 = vrot.slane %v547_v48, 1 }
 0x124   : > { %vm552_vm6 = vcmp.gt.s32.totalorder %v549_v49, %v546_v47  ;;  %vm553_vm7 = vcmp.eq.s32.totalorder %v549_v49, %v546_v47  ;;  %vm554_vm8 = vcmp.lt.s32.totalorder %v550_v50, %v547_v48 }
 0x125   : > { %vm555_vm9 = vmand %vm553_vm7, %vm554_vm8  ;;  %vm1314_vm7 = vcmp.ne.s32.totalorder (%p163_p2), %v715_v14, 0 }
 0x126   : > { %vm556_vm10 = vmor %vm552_vm6, %vm555_vm9 }
 0x127   : > { %v557_v51 = vsel %vm556_vm10, %v549_v49, %v546_v47  ;;  %v558_v52 = vsel %vm556_vm10, %v550_v50, %v547_v48 }
 0x128   : > { %v560_v53 = vrot.slane %v557_v51, 1  ;;  %v561_v54 = vrot.slane %v558_v52, 1 }
 0x12a   : > { %vm563_vm11 = vcmp.gt.s32.totalorder %v560_v53, %v557_v51  ;;  %vm564_vm12 = vcmp.eq.s32.totalorder %v560_v53, %v557_v51  ;;  %vm565_vm13 = vcmp.lt.s32.totalorder %v561_v54, %v558_v52 }
 0x12b   : > { %vm566_vm14 = vmand %vm564_vm12, %vm565_vm13 }
 0x12c   : > { %vm567_vm15 = vmor %vm563_vm11, %vm566_vm14 }
 0x12d   : > { %v569_v55 = vsel %vm567_vm15, %v561_v54, %v558_v52  ;;  %v568_v56 = vsel %vm567_vm15, %v560_v53, %v557_v51 }
 0x12e   : > { %576 = vxpose.xlu0.b32.start.end [1/1] (short) (narrow) %v569_v55, 8  ;;  %572 = vst [vmem:[%s571_s25] sm:$0x1] %v568_v56  ;;  %574 = vst [vmem:[%s573_s26] sm:$0x1] %v569_v55 }
 0x135   :  { %v657_v0 = vld [vmem:[#allocation12 + $0x7] ss:$-1 sm:$0xff] (%p163_p2)  ;;  %v663_v1 = vld [vmem:[#allocation14 + $0x7] ss:$-1 sm:$0xff] (%p163_p2) }
 0x136   :  { %vm675_vm2 = vcmp.gt.s32.totalorder (%p163_p2), %v669_v2, %v657_v0  ;;  %vm676_vm3 = vcmp.eq.s32.totalorder (%p163_p2), %v669_v2, %v657_v0  ;;  %vm677_vm4 = vcmp.lt.s32.totalorder (%p163_p2), %v670_v3, %v663_v1 }
 0x137   :  { %vm678_vm5 = vmand (%p163_p2), %vm676_vm3, %vm677_vm4  ;;  %vm1327_vm3 = vcmp.ne.s32.totalorder (%p163_p2), %v743_v25, 0 }
 0x138   :  { %vm679_vm6 = vmor (%p163_p2), %vm675_vm2, %vm678_vm5 }
 0x139   :  { %v680_v10 = vsel (%p163_p2), %vm679_vm6, %v669_v2, %v657_v0  ;;  %v682_v12 = vsel (%p163_p2), %vm679_vm6, %v657_v0, %v669_v2  ;;  %v684_v13 = vsel (%p163_p2), %vm679_vm6, %v670_v3, %v663_v1  ;;  %v686_v15 = vsel (%p163_p2), %vm679_vm6, %v663_v1, %v670_v3 }
 0x1aa   : > { %v592_v57 = vpop.trf.xlu0 }
 0x1ab   : > { %v631_v58 = vrot.slane %v592_v57, 1  ;;  %1211 = vpush %v592_v57 }
 0x1ad   : > { %1213 = vpush %v631_v58 }
 0x1dc   : > { %s1212_s27 = spop %1211 }
 0x1dd   : > { %s609_s28 = sshrl.u32 %s1212_s27, 9  ;;  %s611_s29 = ssub.s32 0, %s1212_s27 }
 0x1de   : > { %p610_p0 = scmp.lt.s32.totalorder %s1212_s27, 0  ;;  %s1203_s30 = smin.u32 %s1212_s27, %s611_s29 }
 0x1df   : > { %s613_s3 = sand.u32 511, %s1203_s30   ;;  %s1205_s4 = sshll.u32 %s609_s28, 3 }
 0x1e0   : > { %s614_s5 = ssub.s32 0, %s613_s3  ;;  %s1214_s6 = spop %1213 }
 0x1e1   : > { %s1395_s5 = smov (!%p610_p0, %s614_s5), %s613_s3  ;;  %s635_s10 = ssub.s32 0, %s1214_s6 }
 0x1e2   : > { %s616_s7 = sshrl.u32 %s1395_s5, 7  ;;  %s618_s8 = sand.u32 127, %s1395_s5  }
 0x1e3   : > { %s1204_s9 = sshll.u32 %s616_s7, 8  ;;  %s1207_s12 = smin.u32 %s1214_s6, %s635_s10 }
 0x1e4   : > { %s619_s11 = sadd.s32 %s1204_s9, %s618_s8  ;;  %p634_p1 = scmp.lt.s32.totalorder %s1214_s6, 0 }
 0x1e5   : > { %v621_v59 = vstv %s619_s11  ;;  %s637_s13 = sand.u32 511, %s1207_s12   ;;  %s625_s15 = scalar_lea.vmem [#allocation15], %s1205_s4 }
 0x1e6   : > { %vm623_vm0 = vcmp.eq.s32.totalorder %v45_v4, %v621_v59  ;;  %s638_s14 = ssub.s32 0, %s637_s13  ;;  %s628_s16 = scalar_lea.vmem [#allocation16], %s1205_s4 }
 0x1e7   : > { %626 = vst.msk [vmem:[%s625_s15] sm:$0xff] %vm623_vm0, %v1245_v60  ;;  %629 = vst.msk [vmem:[%s628_s16] sm:$0xff] %vm623_vm0, %v1246_v61  ;;  %s1397_s14 = smov (!%p634_p1, %s638_s14), %s637_s13  ;;  %s633_s17 = sshrl.u32 %s1214_s6, 9 }
 0x1e8   : > { %s640_s18 = sshrl.u32 %s1397_s14, 7  ;;  %s642_s19 = sand.u32 127, %s1397_s14  }
 0x1e9   : > { %s1208_s20 = sshll.u32 %s640_s18, 8  ;;  %s1209_s22 = sshll.u32 %s633_s17, 3 }
 0x1ea   : > { %s643_s21 = sadd.s32 %s1208_s20, %s642_s19  ;;  %s649_s23 = scalar_lea.vmem [#allocation15], %s1209_s22 }
 0x1eb   : > { %v645_v62 = vstv %s643_s21  ;;  %s652_s24 = scalar_lea.vmem [#allocation16], %s1209_s22 }
 0x1ec   : > { %v646_v63 = vadd.s32 128, %v645_v62  ;;  %165 = sbr.rel (!%p163_p2) target bundleno = 22 (0x16), region = 156 }
 0x1ee   : > { %vm647_vm1 = vcmp.eq.s32.totalorder %v45_v4, %v646_v63  ;;  %v1309_v4 = vsub.s32 (%p163_p2), %v695_v9, %v1284_v11 }
 0x1ef   : > { %650 = vst.msk [vmem:[%s649_s23] sm:$0xff] %vm647_vm1, %v1245_v60  ;;  %653 = vst.msk [vmem:[%s652_s24] sm:$0xff] %vm647_vm1, %v1246_v61 }
 0x1f0   :  { %v699_v17 = vrot.slane (%p163_p2), %v680_v10, %v1309_v4  ;;  %v706_v18 = vrot.slane (%p163_p2), %v684_v13, %v1309_v4  ;;  %v880_v19 = vrot.slane (%p163_p2), %v682_v12, %v1309_v4  ;;  %v887_v21 = vrot.slane (%p163_p2), %v686_v15, %v1309_v4 }
 0x1f2   :  { %vm708_vm8 = vcmp.gt.s32.totalorder %v680_v10, %v699_v17  ;;  %vm709_vm9 = vcmp.eq.s32.totalorder %v680_v10, %v699_v17  ;;  %vm710_vm10 = vcmp.lt.s32.totalorder %v684_v13, %v706_v18  ;;  %vm890_vm12 = vcmp.eq.s32.totalorder %v682_v12, %v880_v19 }
 0x1f3   :  { %vm711_vm11 = vmand %vm709_vm9, %vm710_vm10  ;;  %vm891_vm13 = vcmp.lt.s32.totalorder %v686_v15, %v887_v21  ;;  %vm889_vm15 = vcmp.gt.s32.totalorder %v682_v12, %v880_v19 }
 0x1f4   :  { %vm712_vm14 = vmor %vm708_vm8, %vm711_vm11 }
 0x1f5   :  { %vm717_vm0 = vmxor %vm712_vm14, %vm1314_vm7 }
 0x1f6   :  { %v718_v26 = vsel %vm717_vm0, %v680_v10, %v699_v17  ;;  %v719_v27 = vsel %vm717_vm0, %v684_v13, %v706_v18  ;;  %vm892_vm1 = vmand %vm890_vm12, %vm891_vm13 }
 0x1f7   :  { %v727_v29 = vrot.slane %v718_v26, %v1320_v24  ;;  %v734_v30 = vrot.slane %v719_v27, %v1320_v24  ;;  %vm893_vm2 = vmor %vm889_vm15, %vm892_vm1 }
 0x1f8   :  { %vm898_vm4 = vmxor %vm893_vm2, %vm1314_vm7 }
 0x1f9   :  { %vm736_vm5 = vcmp.gt.s32.totalorder %v718_v26, %v727_v29  ;;  %vm737_vm6 = vcmp.eq.s32.totalorder %v718_v26, %v727_v29  ;;  %vm738_vm8 = vcmp.lt.s32.totalorder %v719_v27, %v734_v30  ;;  %v899_v32 = vsel %vm898_vm4, %v682_v12, %v880_v19 }
 0x1fa   :  { %vm739_vm9 = vmand %vm737_vm6, %vm738_vm8  ;;  %v900_v34 = vsel %vm898_vm4, %v686_v15, %v887_v21  ;;  %v908_v35 = vrot.slane %v899_v32, %v1320_v24 }
 0x1fb   :  { %vm740_vm10 = vmor %vm736_vm5, %vm739_vm9  ;;  %v915_v36 = vrot.slane %v900_v34, %v1320_v24  ;;  %vm1343_vm5 = vcmp.ne.s32.totalorder %v771_v37, 0 }
 0x1fc   :  { %vm745_vm11 = vmxor %vm740_vm10, %vm1327_vm3  ;;  %vm917_vm12 = vcmp.gt.s32.totalorder %v899_v32, %v908_v35  ;;  %vm918_vm13 = vcmp.eq.s32.totalorder %v899_v32, %v908_v35 }
 0x1fd   :  { %v746_v38 = vsel %vm745_vm11, %v718_v26, %v727_v29  ;;  %v747_v39 = vsel %vm745_vm11, %v719_v27, %v734_v30  ;;  %vm919_vm14 = vcmp.lt.s32.totalorder %v900_v34, %v915_v36 }
 0x1fe   :  { %v755_v40 = vrot.slane %v746_v38, %v1334_v33  ;;  %v762_v41 = vrot.slane %v747_v39, %v1334_v33  ;;  %vm920_vm15 = vmand %vm918_vm13, %vm919_vm14 }
 0x1ff   :  { %vm921_vm0 = vmor %vm917_vm12, %vm920_vm15 }
 0x200   :  { %vm764_vm1 = vcmp.gt.s32.totalorder %v746_v38, %v755_v40  ;;  %vm765_vm2 = vcmp.eq.s32.totalorder %v746_v38, %v755_v40  ;;  %vm766_vm4 = vcmp.lt.s32.totalorder %v747_v39, %v762_v41  ;;  %vm926_vm6 = vmxor %vm921_vm0, %vm1327_vm3 }
 0x201   :  { %vm767_vm8 = vmand %vm765_vm2, %vm766_vm4  ;;  %v927_v11 = vsel %vm926_vm6, %v899_v32, %v908_v35  ;;  %v928_v43 = vsel %vm926_vm6, %v900_v34, %v915_v36 }
 0x202   :  { %vm768_vm9 = vmor %vm764_vm1, %vm767_vm8  ;;  %v936_v44 = vrot.slane %v927_v11, %v1334_v33  ;;  %v943_v45 = vrot.slane %v928_v43, %v1334_v33 }
 0x203   :  { %vm773_vm10 = vmxor %vm768_vm9, %vm1343_vm5 }
 0x204   :  { %v774_v46 = vsel %vm773_vm10, %v746_v38, %v755_v40  ;;  %v775_v47 = vsel %vm773_vm10, %v747_v39, %v762_v41  ;;  %vm945_vm11 = vcmp.gt.s32.totalorder %v927_v11, %v936_v44  ;;  %vm946_vm12 = vcmp.eq.s32.totalorder %v927_v11, %v936_v44 }
 0x205   :  { %v789_v48 = vrot.slane %v774_v46, %v1309_v4  ;;  %v796_v49 = vrot.slane %v775_v47, %v1309_v4  ;;  %vm947_vm13 = vcmp.lt.s32.totalorder %v928_v43, %v943_v45 }
 0x206   :  { %vm948_vm14 = vmand %vm946_vm12, %vm947_vm13 }
 0x207   :  { %vm798_vm15 = vcmp.gt.s32.totalorder %v774_v46, %v789_v48  ;;  %vm799_vm0 = vcmp.eq.s32.totalorder %v774_v46, %v789_v48  ;;  %vm800_vm1 = vcmp.lt.s32.totalorder %v775_v47, %v796_v49  ;;  %vm949_vm2 = vmor %vm945_vm11, %vm948_vm14 }
 0x208   :  { %vm801_vm4 = vmand %vm799_vm0, %vm800_vm1 }
 0x209   :  { %vm802_vm6 = vmor %vm798_vm15, %vm801_vm4 }
 0x20a   :  { %vm807_vm8 = vmxor %vm802_vm6, %vm1314_vm7 }
 0x20b   :  { %v808_v50 = vsel %vm807_vm8, %v774_v46, %v789_v48  ;;  %v809_v51 = vsel %vm807_vm8, %v775_v47, %v796_v49  ;;  %vm954_vm9 = vmxor %vm949_vm2, %vm1343_vm5 }
 0x20c   :  { %v817_v52 = vrot.slane %v808_v50, %v1320_v24  ;;  %v824_v53 = vrot.slane %v809_v51, %v1320_v24  ;;  %v955_v54 = vsel %vm954_vm9, %v927_v11, %v936_v44  ;;  %v956_v55 = vsel %vm954_vm9, %v928_v43, %v943_v45 }
 0x20d   :  { %v970_v56 = vrot.slane %v955_v54, %v1309_v4  ;;  %v977_v57 = vrot.slane %v956_v55, %v1309_v4 }
 0x20e   :  { %vm826_vm10 = vcmp.gt.s32.totalorder %v808_v50, %v817_v52  ;;  %vm827_vm11 = vcmp.eq.s32.totalorder %v808_v50, %v817_v52  ;;  %vm828_vm12 = vcmp.lt.s32.totalorder %v809_v51, %v824_v53 }
 0x20f   :  { %vm829_vm13 = vmand %vm827_vm11, %vm828_vm12  ;;  %vm980_vm14 = vcmp.eq.s32.totalorder %v955_v54, %v970_v56  ;;  %vm981_vm15 = vcmp.lt.s32.totalorder %v956_v55, %v977_v57  ;;  %vm979_vm1 = vcmp.gt.s32.totalorder %v955_v54, %v970_v56 }
 0x210   :  { %vm830_vm0 = vmor %vm826_vm10, %vm829_vm13 }
 0x211   :  { %vm835_vm2 = vmxor %vm830_vm0, %vm1327_vm3 }
 0x212   :  { %v836_v58 = vsel %vm835_vm2, %v808_v50, %v817_v52  ;;  %v837_v59 = vsel %vm835_vm2, %v809_v51, %v824_v53  ;;  %vm982_vm4 = vmand %vm980_vm14, %vm981_vm15 }
 0x213   :  { %v845_v60 = vrot.slane %v836_v58, %v1334_v33  ;;  %v852_v61 = vrot.slane %v837_v59, %v1334_v33  ;;  %vm983_vm6 = vmor %vm979_vm1, %vm982_vm4 }
 0x214   :  { %vm988_vm8 = vmxor %vm983_vm6, %vm1314_vm7 }
 0x215   :  { %vm854_vm9 = vcmp.gt.s32.totalorder %v836_v58, %v845_v60  ;;  %vm855_vm11 = vcmp.eq.s32.totalorder %v836_v58, %v845_v60  ;;  %vm856_vm12 = vcmp.lt.s32.totalorder %v837_v59, %v852_v61  ;;  %v989_v62 = vsel %vm988_vm8, %v955_v54, %v970_v56 }
 0x216   :  { %vm857_vm10 = vmand %vm855_vm11, %vm856_vm12  ;;  %v990_v63 = vsel %vm988_vm8, %v956_v55, %v977_v57  ;;  %v998_v0 = vrot.slane %v989_v62, %v1320_v24 }
 0x217   :  { %vm858_vm13 = vmor %vm854_vm9, %vm857_vm10  ;;  %v1005_v1 = vrot.slane %v990_v63, %v1320_v24 }
 0x218   :  { %vm863_vm14 = vmxor %vm858_vm13, %vm1343_vm5  ;;  %vm1007_vm15 = vcmp.gt.s32.totalorder %v989_v62, %v998_v0  ;;  %vm1008_vm0 = vcmp.eq.s32.totalorder %v989_v62, %v998_v0 }
 0x219   :  { %v864_v2 = vsel %vm863_vm14, %v836_v58, %v845_v60  ;;  %v865_v3 = vsel %vm863_vm14, %v837_v59, %v852_v61  ;;  %vm1009_vm1 = vcmp.lt.s32.totalorder %v990_v63, %v1005_v1 }
 0x21a   :  { %867 = vst [vmem:[#allocation11] sm:$0xff] %v864_v2  ;;  %868 = vst [vmem:[#allocation13] sm:$0xff] %v865_v3 }
 0x21b   :  { %vm1010_vm7 = vmand %vm1008_vm0, %vm1009_vm1 }
 0x21c   :  { %vm1011_vm2 = vmor %vm1007_vm15, %vm1010_vm7 }
 0x21d   :  { %vm1016_vm4 = vmxor %vm1011_vm2, %vm1327_vm3 }
 0x21e   :  { %v1017_v5 = vsel %vm1016_vm4, %v989_v62, %v998_v0  ;;  %v1018_v6 = vsel %vm1016_vm4, %v990_v63, %v1005_v1 }
 0x21f   :  { %v1026_v7 = vrot.slane %v1017_v5, %v1334_v33  ;;  %v1033_v8 = vrot.slane %v1018_v6, %v1334_v33 }
 0x221   :  { %vm1035_vm6 = vcmp.gt.s32.totalorder %v1017_v5, %v1026_v7  ;;  %vm1036_vm8 = vcmp.eq.s32.totalorder %v1017_v5, %v1026_v7  ;;  %vm1037_vm9 = vcmp.lt.s32.totalorder %v1018_v6, %v1033_v8  ;;  %v1051_v12 = vld [vmem:[#allocation11] sm:$0xff]  ;;  %v1075_v15 = vld [vmem:[#allocation13] sm:$0xff] }
 0x222   :  { %vm1038_vm11 = vmand %vm1036_vm8, %vm1037_vm9  ;;  %vm1052_vm3 = vcmp.lt.s32.totalorder %v1051_v12, 0  ;;  %v1053_v13 = vsub.s32 2147483647, %v1051_v12 }
 0x223   :  { %vm1039_vm12 = vmor %vm1035_vm6, %vm1038_vm11 }
 0x224   :  { %vm1044_vm10 = vmxor %vm1039_vm12, %vm1343_vm5  ;;  %v1054_v14 = vsel %vm1052_vm3, %v1053_v13, %v1051_v12 }
 0x225   :  { %v1045_v9 = vsel %vm1044_vm10, %v1017_v5, %v1026_v7  ;;  %v1046_v10 = vsel %vm1044_vm10, %v1018_v6, %v1033_v8  ;;  %1055 = vst [vmem:[#allocation11] sm:$0xff] %v1054_v14  ;;  %1057 = vxpose.xlu0.b32.start.end [1/1] (short) (narrow) %v1054_v14, 8 }
 0x226   :  { %1048 = vst [vmem:[#allocation12] sm:$0xff] %v1045_v9  ;;  %1049 = vst [vmem:[#allocation14] sm:$0xff] %v1046_v10 }
 0x229   :  { %1076 = vxpose.xlu0.b32.start.end [1/1] (short) (narrow) %v1075_v15, 8 }
 0x2a1   :  { %v1058_v4 = vpop.trf.xlu0 }
 0x2a2   :  { %1074 = vst [vmem:[#allocation7] sm:$0xff] %v1058_v4 }
 0x2a5   :  { %v1077_v16 = vpop.trf.xlu0 }
 0x2a6   :  { %1093 = vst [vmem:[#allocation9] sm:$0xff] %v1077_v16 }
 0x2a9   :  { %v1098_v17 = vld [vmem:[#allocation7] sm:$0x3] }
 0x2aa   :  { %1101 = vst [vmem:[#allocation8] sm:$0x3] %v1098_v17 }
 0x2ad   :  { %v1106_v18 = vld [vmem:[#allocation9] sm:$0x3] }
 0x2ae   :  { %1109 = vst [vmem:[#allocation10] sm:$0x3] %v1106_v18 }
 0x2b1   :  { %v1126_v19 = vld [vmem:[#allocation8] sm:$0x3] }
 0x2b2   :  { %1127 = vst [vmem:[%s1386_s1] sm:$0x3] %v1126_v19 }
 0x2b5   :  { %v1159_v20 = vld [vmem:[#allocation10] sm:$0x3] }
 0x2b6   :  { %1160 = vst [vmem:[%s1387_s2] sm:$0x3] %v1159_v20 }

// kernel: fwd.1
= control target key start
LH: loop header
LB: loop body
LE: loop exit
PB: predicated region body
PF: predicated region fallthrough
CT: control target
= control target key end

     0   :  { %s4373_s0 = inlined_call_operand.vmem [shape: f32[2,1,640], index: 0, kind: input, shape index: {}]   ;;  %s4374_s1 = inlined_call_operand.vmem [shape: f32[16,7], index: 1, kind: input, shape index: {}]   ;;  %s4375_s2 = inlined_call_operand.vmem [shape: f32[16,1], index: 2, kind: input, shape index: {}]   ;;  %s4376_s3 = inlined_call_operand.vmem [shape: bf16[8,32,16], index: 3, kind: input, shape index: {}]   ;;  %s4377_s4 = inlined_call_operand.vmem [shape: f32[8,16,1], index: 4, kind: input, shape index: {}]   ;;  %s4378_s5 = inlined_call_operand.vmem [shape: bf16[16,16], index: 5, kind: input, shape index: {}]   ;;  %s4379_s6 = inlined_call_operand.vmem [shape: f32[16,1], index: 6, kind: input, shape index: {}]   ;;  %s4380_s7 = inlined_call_operand.vmem [shape: f32[2,16,256], index: 7, kind: output, shape index: {0}]   ;;  %s4381_s8 = inlined_call_operand.vmem [shape: f32[2,2,1,16], index: 8, kind: output, shape index: {1}]  }
   0x1   :  { %4400 = sst [smem:[#allocation8_spill]] %s4373_s0 }
   0x2   :  { %4401 = sst [smem:[#allocation9_spill]] %s4374_s1 }
   0x3   :  { %4402 = sst [smem:[#allocation10_spill]] %s4375_s2 }
   0x4   :  { %s3190_s27 = smov 0   ;;  %s3192_s28 = smov 0  }
   0x5   :  { %s3194_s29 = smov 0   ;;  %s3196_s30 = smov 0  }
   0x6   :  { %s3198_s9 = smov 0   ;;  %s3200_s10 = smov 0  }
   0x7   :  { %s3202_s11 = smov 0  }
   0x8 LB: > { %s28_s12 = sadd.s32 1, %s3116_s9  ;;  %s31_s13 = sadd.s32 1, %s3120_s10  ;;  %s3124_s11 = sphi %s3202_s11, %s19_s11   ;;  %s3120_s10 = sphi %s3200_s10, %s4429_s10   ;;  %s3116_s9 = sphi %s3198_s9, %s4428_s9   ;;  %s3112_s30 = sphi %s3196_s30, %s4427_s30   ;;  %s3108_s29 = sphi %s3194_s29, %s4426_s29   ;;  %s3104_s28 = sphi %s3192_s28, %s4425_s28   ;;  %s3100_s27 = sphi %s3190_s27, %s4424_s27  }
   0x9   : > { %p29_p0 = scmp.ge.s32.totalorder %s28_s12, 2  ;;  %s2772_s14 = sadd.s32 4294967295, %s3124_s11  }
   0xa   : > { %p202_p1 = scmp.ne.s32.totalorder %s3104_s28, %s3100_s27  ;;  %p203_p2 = scmp.eq.s32.totalorder %s2772_s14, 3 }
   0xb   : > { %s4431_s12 = smov (%p29_p0, %s28_s12), 0  ;;  %s4433_s13 = smov (!%p29_p0, %s31_s13), %s3120_s10 }
   0xc   : > { %s188_s15 = ssub.s32 %s3116_s9, %s4431_s12  ;;  %p33_p3 = scmp.ge.s32.totalorder %s4433_s13, 2 }
   0xd   : > { %p2776_p4 = scmp.ge.s32.totalorder %s3124_s11, 1  ;;  %p3236_p5 = por %p203_p2, %p202_p1 }
   0xe   : > { %p280_p6 = scmp.lt.s32.totalorder %s3124_s11, 5  ;;  %s4435_s13 = smov (%p33_p3, %s4433_s13), 0 }
   0xf   : > { %s187_s17 = ssub.s32 %s3120_s10, %s4435_s13  ;;  %s192_s19 = sadd.s32 1, %s3104_s28 }
  0x10   : > { %p281_p7 = pnand %p2776_p4, %p280_p6  ;;  %s189_s18 = sor.u32 %s188_s15, %s187_s17 }
  0x11   : > { %p190_p8 = scmp.eq.s32.totalorder %s189_s18, 0 }
  0x12   : > { %284 = sbr.rel (%p281_p7) target bundleno = 3839 (0xeff), region = 48 }
  0x13   : > { %s3247_s20 = scalar_select %p190_p8, %s3104_s28, %s192_s19  }
  0x17   : > { %s4404_s1 = sld [smem:[#allocation9_spill]]  ;;  %p319_p9 = scmp.lt.s32.totalorder %s3112_s30, 1  ;;  %v332_v1 = vlaneseq  ;;  %v3126_v2 = vmov 1   ;;  %v3127_v3 = vmov 2   ;;  %v4393_v6 = vmov 0   ;;  %v837_v22 = vld [vmem:[%s4377_s4] sm:$0xff] }
  0x18   : > { %3040 = vset.pattern.permute.xlu1 %v3126_v2  ;;  %s4382_s23 = sshll.u32 %s3108_s29, 7  ;;  %3041 = vset.pattern.permute.xlu0 %v3127_v3  ;;  %s4406_s0 = sld [smem:[#allocation8_spill]]  ;;  %v3131_v14 = vmov 3   ;;  %v3133_v15 = vmov 4   ;;  %v3135_v16 = vmov 5   ;;  %v3137_v17 = vmov 6  }
  0x19   : > { %s3258_s24 = scalar_select %p319_p9, %s3112_s30, 1  ;;  %v3261_v4 = vshrl.u32 %v332_v1, 7  ;;  %724 = vmatprep.mubr.bf16.mxu0 %v4393_v6  ;;  %v3340_v23 = vld [vmem:[%s4376_s3] sm:$0xff]   ;;  %vm685_vm0 = vcmask 130048   ;;  %v838_v24 = vld [vmem:[%s4377_s4 + $0x8] sm:$0xff]  ;;  %v3372_v45 = vand.u32 127, %v332_v1 }
  0x1a   : > { %s337_s15 = sshra.s32 %s4382_s23, 7  ;;  %s4383_s22 = smov 127   ;;  %2912 = vmatprep.mubr.msk.bf16.mxu1 %vm685_vm0, %v3340_v23 }
  0x1b   : > { %4405 = vst [vmem:[#allocation3_spill] sm:$0xff] %v3261_v4  ;;  %s2964_s14 = smul.u32 5, %s3258_s24  ;;  %v364_v7 = vsub.s32 2, %v3261_v4  ;;  %v360_v8 = vsub.s32 1, %v3261_v4  ;;  %v3280_v12 = vsub.s32 0, %v3261_v4  ;;  %s4387_s25 = smov 126  }
  0x1c   : > { %s3132_s26 = smov 125   ;;  %v383_v18 = vsub.s32 3, %v3261_v4  ;;  %s3138_s17 = smov 122   ;;  %vm394_vm1 = vcmp.lt.s32.totalorder %v3372_v45, 127  ;;  %vm438_vm2 = vcmp.lt.s32.totalorder %v3372_v45, 126  ;;  %vm482_vm3 = vcmp.lt.s32.totalorder %v3372_v45, 125 }
  0x1d   : > { %v3252_v0 = vld [vmem:[%s4404_s1] sm:$0xff]  ;;  %v342_v5 = vld [vmem:[%s4404_s1 + $0x8] sm:$0xff]  ;;  %s4407_s2 = sld [smem:[#allocation10_spill]]  ;;  %s4408_s18 = smov 124   ;;  %vm526_vm4 = vcmp.lt.s32.totalorder %v3372_v45, 124  ;;  %vm570_vm5 = vcmp.lt.s32.totalorder %v3372_v45, 123 }
  0x1e   : > { %399 = vperm.xlu1 %3040, %v3252_v0   ;;  %s322_s19 = scalar_lea.vmem %s4406_s0, %s2964_s14  ;;  %s4385_s14 = smov 124   ;;  %vm614_vm6 = vcmp.lt.s32.totalorder %v3372_v45, 122 }
  0x1f   : > { %s339_s21 = scalar_lea.vmem %s322_s19, %s337_s15  ;;  %s3136_s15 = smov 123  }
  0x20   : > { %v340_v9 = vld [vmem:[%s339_s21] sm:$0xf]  ;;  %s4411_s23 = smov 126   ;;  %s4391_s19 = smov 112  }
  0x21   : > { %v3275_v10 = vrot.slane %v340_v9, %v364_v7  ;;  %v3277_v11 = vrot.slane %v340_v9, %v360_v8  ;;  %v3288_v13 = vrot.slane %v340_v9, %v3280_v12  ;;  %v384_v19 = vrot.slane %v340_v9, %v383_v18  ;;  %p325_p11 = scmp.lt.s32.totalorder %s3108_s29, 1 }
  0x22   : > { %403 = vperm.xlu1 %3040, %v342_v5  }
  0x23   : > { %388 = vrot.lane.b32.xlu0 %v3277_v11, %s4383_s22  ;;  %v651_v20 = vld [vmem:[%s4407_s2 + $0x8] sm:$0xff]  ;;  %v650_v21 = vld [vmem:[%s4407_s2] sm:$0xff]  ;;  %s326_s0 = scalar_select %p325_p11, %s3108_s29, 1 }
  0x26   : > { %3042 = vset.pattern.permute.xlu1 %v3127_v3 }
  0x27   : > { %390 = vrot.lane.b32.xlu1 %v3275_v10, %s4383_s22  ;;  %443 = vperm.xlu0 %3041, %v3252_v0  }
  0x2b   : > { %447 = vperm.xlu1 %3042, %v342_v5   ;;  %432 = vrot.lane.b32.xlu0 %v3277_v11, %s4387_s25 }
  0x2c   : > { %3043 = vset.pattern.permute.xlu0 %v3131_v14 }
  0x2f   : > { %386 = vrot.lane.b32.xlu1 %v3288_v13, %s4383_s22  ;;  %487 = vperm.xlu0 %3043, %v3252_v0  }
  0x30   : > { %3044 = vset.pattern.permute.xlu1 %v3131_v14 }
  0x33   : > { %434 = vrot.lane.b32.xlu1 %v3275_v10, %s4387_s25  ;;  %476 = vrot.lane.b32.xlu0 %v3277_v11, %s3132_s26 }
  0x34   : > { %3045 = vset.pattern.permute.xlu0 %v3133_v15 }
  0x37   : > { %491 = vperm.xlu1 %3044, %v342_v5   ;;  %531 = vperm.xlu0 %3045, %v3252_v0  }
  0x3b   : > { %430 = vrot.lane.b32.xlu1 %v3288_v13, %s4387_s25  ;;  %520 = vrot.lane.b32.xlu0 %v3277_v11, %s4385_s14 }
  0x3c   : > { %3046 = vset.pattern.permute.xlu1 %v3133_v15  ;;  %3047 = vset.pattern.permute.xlu0 %v3135_v16 }
  0x3f   : > { %478 = vrot.lane.b32.xlu1 %v3275_v10, %s3132_s26  ;;  %575 = vperm.xlu0 %3047, %v3252_v0  }
  0x43   : > { %535 = vperm.xlu1 %3046, %v342_v5   ;;  %564 = vrot.lane.b32.xlu0 %v3277_v11, %s3136_s15 }
  0x44   : > { %3049 = vset.pattern.permute.xlu0 %v3137_v17 }
  0x47   : > { %474 = vrot.lane.b32.xlu1 %v3288_v13, %s3132_s26  ;;  %619 = vperm.xlu0 %3049, %v3252_v0  }
  0x48   : > { %3048 = vset.pattern.permute.xlu1 %v3135_v16 }
  0x4b   : > { %522 = vrot.lane.b32.xlu1 %v3275_v10, %s4385_s14  ;;  %3050 = vset.pattern.permute.xlu0 %v4393_v6 }
  0x4c   : > { %345 = vperm.xlu0 %3050, %v3252_v0  }
  0x4f   : > { %579 = vperm.xlu1 %3048, %v342_v5  }
  0x50   : > { %350 = vperm.xlu0 %3050, %v342_v5  }
  0x53   : > { %518 = vrot.lane.b32.xlu1 %v3288_v13, %s4385_s14 }
  0x54   : > { %3051 = vset.pattern.permute.xlu1 %v3137_v17  ;;  %392 = vrot.lane.b32.xlu0 %v384_v19, %s4383_s22  ;;  %s4410_s22 = sshll.u32 %s3108_s29, 7 }
  0x57   : > { %566 = vrot.lane.b32.xlu1 %v3275_v10, %s3136_s15 }
  0x58   : > { %610 = vrot.lane.b32.xlu0 %v3275_v10, %s3138_s17 }
  0x5b   : > { %623 = vperm.xlu1 %3051, %v342_v5  }
  0x5c   : > { %436 = vrot.lane.b32.xlu0 %v384_v19, %s4387_s25  ;;  %s3565_s25 = ssub.s32 256, %s4410_s22 }
  0x5d   : > { %p812_p10 = scmp.lt.s32.totalorder %s3565_s25, 384 }
  0x5f   : > { %562 = vrot.lane.b32.xlu1 %v3288_v13, %s3136_s15  ;;  %s3569_s14 = scalar_select %p812_p10, %s3565_s25, 384 }
  0x60   : > { %3052 = vset.pattern.permute.xlu1 %v4393_v6  ;;  %659 = vperm.xlu0 %3050, %v651_v20  }
  0x61   : > { %s2797_s1 = sadd.s32 4294967294, %s3569_s14  ;;  %s2823_s2 = sadd.s32 4294967288, %s3569_s14 }
  0x63   : > { %608 = vrot.lane.b32.xlu1 %v3277_v11, %s3138_s17 }
  0x64   : > { %568 = vrot.lane.b32.xlu0 %v384_v19, %s3136_s15  ;;  %s3142_s15 = smov 64  }
  0x67   : > { %606 = vrot.lane.b32.xlu1 %v3288_v13, %s3138_s17 }
  0x68   : > { %841 = vperm.xlu0 %3050, %v837_v22  }
  0x6b   : > { %654 = vperm.xlu1 %3052, %v650_v21  }
  0x6f   : > { %480 = vrot.lane.b32.xlu1 %v384_v19, %s3132_s26  ;;  %s4409_s26 = smov 127  }
  0x73   : > { %524 = vrot.lane.b32.xlu1 %v384_v19, %s4408_s18 }
  0x77   : > { %612 = vrot.lane.b32.xlu1 %v384_v19, %s3138_s17  ;;  %s2786_s17 = sadd.s32 4294967295, %s3569_s14 }
  0x7b   : > { %846 = vperm.xlu1 %3052, %v838_v24  }
  0x95   : > { %v389_v28 = vpop.permute.xlu0 %388 }
  0x99   : > { %v3347_v25 = vpop.permute.xlu1 %399 }
  0x9d   : > { %v3349_v26 = vpop.permute.xlu1 %403 }
  0xa1   : > { %v3351_v27 = vpop.permute.xlu1 %390 }
  0xa2   : > { %v3355_v30 = vpop.permute.xlu0 %443  ;;  %v396_v48 = vsel %vm394_vm1, %v389_v28, %v3351_v27 }
  0xa3   : > { %v413_v51 = vrot.slane %v396_v48, %v3280_v12 }
  0xa5   : > { %v419_v60 = vmul.f32 %v413_v51, %v3347_v25  ;;  %v422_v61 = vmul.f32 %v413_v51, %v3349_v26 }
  0xa6   : > { %v3353_v29 = vpop.permute.xlu1 %447  ;;  %v433_v32 = vpop.permute.xlu0 %432 }
  0xaa   : > { %v387_v31 = vpop.permute.xlu1 %386  ;;  %v3359_v34 = vpop.permute.xlu0 %487 }
  0xab   : > { %v397_v52 = vsel %vm394_vm1, %v387_v31, %v389_v28 }
  0xac   : > { %v409_v57 = vrot.slane %v397_v52, %v3280_v12 }
  0xae   : > { %v3357_v33 = vpop.permute.xlu1 %434  ;;  %v477_v36 = vpop.permute.xlu0 %476  ;;  %v418_v9 = vmul.f32 %v409_v57, %v3347_v25  ;;  %v421_v15 = vmul.f32 %v409_v57, %v3349_v26 }
  0xaf   : > { %v440_v53 = vsel %vm438_vm2, %v433_v32, %v3357_v33 }
  0xb0   : > { %v457_v58 = vrot.slane %v440_v53, %v3280_v12 }
  0xb2   : > { %v3361_v35 = vpop.permute.xlu1 %491  ;;  %v3363_v38 = vpop.permute.xlu0 %531  ;;  %v463_v16 = vmul.f32 %v457_v58, %v3355_v30 }
  0xb6   : > { %v431_v37 = vpop.permute.xlu1 %430  ;;  %v521_v40 = vpop.permute.xlu0 %520 }
  0xb7   : > { %v441_v59 = vsel %vm438_vm2, %v431_v37, %v433_v32 }
  0xb8   : > { %v453_v2 = vrot.slane %v441_v59, %v3280_v12 }
  0xba   : > { %v3365_v39 = vpop.permute.xlu1 %478  ;;  %v3369_v42 = vpop.permute.xlu0 %575  ;;  %v462_v22 = vmul.f32 %v453_v2, %v3355_v30  ;;  %v465_v48 = vmul.f32 %v453_v2, %v3353_v29 }
  0xbb   : > { %v484_v62 = vsel %vm482_vm3, %v477_v36, %v3365_v39 }
  0xbc   : > { %v501_v14 = vrot.slane %v484_v62, %v3280_v12 }
  0xbe   : > { %v3367_v41 = vpop.permute.xlu1 %535  ;;  %v565_v44 = vpop.permute.xlu0 %564  ;;  %v510_v32 = vmul.f32 %v501_v14, %v3361_v35  ;;  %v507_v51 = vmul.f32 %v501_v14, %v3359_v34 }
  0xc2   : > { %v475_v43 = vpop.permute.xlu1 %474  ;;  %v3376_v47 = vpop.permute.xlu0 %619 }
  0xc3   : > { %v485_v17 = vsel %vm482_vm3, %v475_v43, %v477_v36 }
  0xc4   : > { %v497_v36 = vrot.slane %v485_v17, %v3280_v12 }
  0xc6   : > { %v3374_v46 = vpop.permute.xlu1 %522  ;;  %v506_v62 = vmul.f32 %v497_v36, %v3359_v34 }
  0xc7   : > { %v3385_v50 = vpop.permute.xlu0 %345  ;;  %v528_v18 = vsel %vm526_vm4, %v521_v40, %v3374_v46 }
  0xc8   : > { %v370_v55 = vmul.f32 %v3277_v11, %v3385_v50  ;;  %v369_v0 = vmul.f32 %v3288_v13, %v3385_v50  ;;  %v545_v37 = vrot.slane %v528_v18, %v3280_v12 }
  0xca   : > { %v3383_v49 = vpop.permute.xlu1 %579  ;;  %v425_v3 = vadd.f32 %v419_v60, %v370_v55 }
  0xcb   : > { %v3396_v56 = vpop.permute.xlu0 %350 }
  0xcc   : > { %v373_v63 = vmul.f32 %v3277_v11, %v3396_v56  ;;  %v372_v5 = vmul.f32 %v3288_v13, %v3396_v56  ;;  %v466_v11 = vmul.f32 %v457_v58, %v3353_v29  ;;  %v424_v13 = vadd.f32 %v418_v9, %v369_v0 }
  0xcd   : > { %v469_v24 = vadd.f32 %v463_v16, %v425_v3 }
  0xce   : > { %v519_v54 = vpop.permute.xlu1 %518  ;;  %v428_v7 = vadd.f32 %v422_v61, %v373_v63  ;;  %v427_v28 = vadd.f32 %v421_v15, %v372_v5  ;;  %v468_v53 = vadd.f32 %v462_v22, %v424_v13  ;;  %v551_v63 = vmul.f32 %v545_v37, %v3363_v38 }
  0xcf   : > { %v393_v8 = vpop.permute.xlu0 %392  ;;  %v529_v43 = vsel %vm526_vm4, %v519_v54, %v521_v40  ;;  %v513_v61 = vadd.f32 %v507_v51, %v469_v24  ;;  %v554_v40 = vmul.f32 %v545_v37, %v3367_v41  ;;  %v509_v54 = vmul.f32 %v497_v36, %v3361_v35 }
  0xd0   : > { %v472_v19 = vadd.f32 %v466_v11, %v428_v7  ;;  %v541_v58 = vrot.slane %v529_v43, %v3280_v12  ;;  %v471_v59 = vadd.f32 %v465_v48, %v427_v28  ;;  %v512_v5 = vadd.f32 %v506_v62, %v468_v53 }
  0xd1   : > { %v557_v15 = vadd.f32 %v551_v63, %v513_v61  ;;  %v395_v13 = vsel %vm394_vm1, %v3351_v27, %v393_v8 }
  0xd2   : > { %v3413_v1 = vpop.permute.xlu1 %566  ;;  %v516_v57 = vadd.f32 %v510_v32, %v472_v19  ;;  %v515_v11 = vadd.f32 %v509_v54, %v471_v59  ;;  %v553_v18 = vmul.f32 %v541_v58, %v3367_v41 }
  0xd3   : > { %v572_v20 = vsel %vm570_vm5, %v565_v44, %v3413_v1  ;;  %v3434_v31 = vpop.permute.xlu0 %610 }
  0xd4   : > { %v589_v52 = vrot.slane %v572_v20, %v3280_v12  ;;  %v560_v9 = vadd.f32 %v554_v40, %v516_v57  ;;  %v559_v43 = vadd.f32 %v553_v18, %v515_v11 }
  0xd6   : > { %v3431_v21 = vpop.permute.xlu1 %623  ;;  %v595_v0 = vmul.f32 %v589_v52, %v3369_v42  ;;  %v598_v16 = vmul.f32 %v589_v52, %v3383_v49 }
  0xd7   : > { %v437_v3 = vpop.permute.xlu0 %436 }
  0xd8   : > { %v601_v20 = vadd.f32 %v595_v0, %v557_v15  ;;  %v604_v28 = vadd.f32 %v598_v16, %v560_v9  ;;  %v439_v27 = vsel %vm438_vm2, %v3357_v33, %v437_v3  ;;  %v371_v0 = vmul.f32 %v3275_v10, %v3385_v50 }
  0xd9   : > { %v461_v40 = vrot.slane %v439_v27, %v3280_v12 }
  0xda   : > { %v563_v55 = vpop.permute.xlu1 %562 }
  0xdb   : > { %v573_v60 = vsel %vm570_vm5, %v563_v55, %v565_v44  ;;  %v550_v44 = vmul.f32 %v541_v58, %v3363_v38  ;;  %v3468_v48 = vpop.permute.xlu0 %659  ;;  %v417_v55 = vrot.slane %v395_v13, %v3280_v12  ;;  %v464_v15 = vmul.f32 %v461_v40, %v3355_v30 }
  0xdc   : > { %v585_v2 = vrot.slane %v573_v60, %v3280_v12  ;;  %v467_v50 = vmul.f32 %v461_v40, %v3353_v29 }
  0xdd   : > { %v556_v37 = vadd.f32 %v550_v44, %v512_v5  ;;  %v423_v9 = vmul.f32 %v417_v55, %v3349_v26 }
  0xde   : > { %v609_v7 = vpop.permute.xlu1 %608  ;;  %v594_v19 = vmul.f32 %v585_v2, %v3369_v42  ;;  %v597_v22 = vmul.f32 %v585_v2, %v3383_v49  ;;  %v374_v2 = vmul.f32 %v3275_v10, %v3396_v56 }
  0xdf   : > { %v616_v14 = vsel %vm614_vm6, %v609_v7, %v3434_v31  ;;  %v569_v3 = vpop.permute.xlu0 %568 }
  0xe0   : > { %v633_v17 = vrot.slane %v616_v14, %v3280_v12  ;;  %v600_v57 = vadd.f32 %v594_v19, %v556_v37  ;;  %v603_v58 = vadd.f32 %v597_v22, %v559_v43 }
  0xe2   : > { %v607_v24 = vpop.permute.xlu1 %606  ;;  %v639_v32 = vmul.f32 %v633_v17, %v3376_v47  ;;  %v642_v36 = vmul.f32 %v633_v17, %v3431_v21  ;;  %v429_v17 = vadd.f32 %v423_v9, %v374_v2  ;;  %v815_v9 = vstv %s2786_s17  ;;  %s4389_s17 = smov 120  }
  0xe3   : > { %v617_v51 = vsel %vm614_vm6, %v607_v24, %v609_v7  ;;  %v420_v7 = vmul.f32 %v417_v55, %v3347_v25  ;;  %v571_v25 = vsel %vm570_vm5, %v3413_v1, %v569_v3  ;;  %v842_v2 = vpop.permute.xlu0 %841  ;;  %v3573_v3 = vadd.s32 128, %v3372_v45 }
  0xe4   : > { %v629_v8 = vrot.slane %v617_v51, %v3280_v12  ;;  %v645_v52 = vadd.f32 %v639_v32, %v601_v20  ;;  %v648_v53 = vadd.f32 %v642_v36, %v604_v28  ;;  %v473_v19 = vadd.f32 %v467_v50, %v429_v17 }
  0xe5   : > { %v426_v16 = vadd.f32 %v420_v7, %v371_v0  ;;  %v3559_v0 = vld [vmem:[%s4376_s3 + $0x10] sm:$0xff]   ;;  %vm817_vm7 = vcmp.lt.s32.totalorder %v3573_v3, %v815_v9  ;;  %vm816_vm8 = vcmp.lt.s32.totalorder %v3372_v45, %v815_v9 }
  0xe6   : > { %v638_v59 = vmul.f32 %v629_v8, %v3376_v47  ;;  %v641_v60 = vmul.f32 %v629_v8, %v3431_v21  ;;  %v655_v61 = vpop.permute.xlu1 %654  ;;  %v3480_v62 = vadd.f32 %v3468_v48, %v648_v53 }
  0xe7   : > { %v3483_v54 = vadd.f32 %v655_v61, %v645_v52  ;;  %v470_v1 = vadd.f32 %v464_v15, %v426_v16 }
  0xe8   : > { %v644_v33 = vadd.f32 %v638_v59, %v600_v57  ;;  %v647_v63 = vadd.f32 %v641_v60, %v603_v58 }
  0xe9   : > { %v673_v5 = vpack.c.bf16 %v3480_v62, %v3483_v54 }
  0xea   : > { %v481_v44 = vpop.permute.xlu1 %480  ;;  %v3493_v11 = vadd.f32 %v655_v61, %v644_v33  ;;  %v3496_v14 = vadd.f32 %v3468_v48, %v647_v63  ;;  %v2798_v33 = vld [vmem:[%s4377_s4 + $0x10] sm:$0xff]  ;;  %v2799_v63 = vld [vmem:[%s4377_s4 + $0x18] sm:$0xff] }
  0xeb   : > { %v483_v10 = vsel %vm482_vm3, %v3365_v39, %v481_v44  ;;  %706 = vmatprep.subr.bf16.mxu0 %v673_v5  ;;  %v593_v39 = vrot.slane %v571_v25, %v3280_v12  ;;  %v3577_v44 = vadd.s32 256, %v3372_v45  ;;  %vm1437_vm3 = vcmp.lt.s32.totalorder %v3372_v45, 120 }
  0xec   : > { %v505_v26 = vrot.slane %v483_v10, %v3280_v12  ;;  %v672_v56 = vpack.c.bf16 %v3496_v14, %v3493_v11 }
  0xed   : > { %v596_v32 = vmul.f32 %v593_v39, %v3369_v42  ;;  %v599_v36 = vmul.f32 %v593_v39, %v3383_v49  ;;  %vm818_vm9 = vcmp.lt.s32.totalorder %v3577_v44, %v815_v9 }
  0xee   : > { %v508_v30 = vmul.f32 %v505_v26, %v3359_v34  ;;  %v511_v18 = vmul.f32 %v505_v26, %v3361_v35  ;;  %v525_v13 = vpop.permute.xlu1 %524  ;;  %707 = vmatpush1.bf16.msra.mxu0 %v672_v56 }
  0xef   : > { %v527_v29 = vsel %vm526_vm4, %v3374_v46, %v525_v13 }
  0xf0   : > { %v549_v20 = vrot.slane %v527_v29, %v3280_v12  ;;  %v514_v22 = vadd.f32 %v508_v30, %v470_v1  ;;  %v517_v24 = vadd.f32 %v511_v18, %v473_v19 }
  0xf1   : > { %2782 = vmatmul.mubr.msk.bf16.vlgmr.msra.gmra.mxu0 %vm685_vm0, %v3340_v23 }
  0xf2   : > { %v552_v34 = vmul.f32 %v549_v20, %v3363_v38  ;;  %v555_v35 = vmul.f32 %v549_v20, %v3367_v41  ;;  %v613_v28 = vpop.permute.xlu1 %612  ;;  %734 = vmatprep.mubr.bf16.mxu0 %v4393_v6  ;;  %v3054_v38 = vld [vmem:[%s4376_s3 + $0x8] sm:$0xff]  }
  0xf3   : > { %v615_v46 = vsel %vm614_vm6, %v3434_v31, %v613_v28 }
  0xf4   : > { %v558_v37 = vadd.f32 %v552_v34, %v514_v22  ;;  %v561_v43 = vadd.f32 %v555_v35, %v517_v24  ;;  %v637_v23 = vrot.slane %v615_v46, %v3280_v12 }
  0xf6   : > { %v640_v41 = vmul.f32 %v637_v23, %v3376_v47  ;;  %v643_v51 = vmul.f32 %v637_v23, %v3431_v21  ;;  %v602_v27 = vadd.f32 %v596_v32, %v558_v37  ;;  %v605_v42 = vadd.f32 %v599_v36, %v561_v43  ;;  %v847_v5 = vpop.permute.xlu1 %846 }
  0xf8   : > { %v646_v8 = vadd.f32 %v640_v41, %v602_v27  ;;  %v649_v52 = vadd.f32 %v643_v51, %v605_v42 }
  0xf9   : > { %2783 = vmatmul.mubr.msk.bf16.gmra.mxu0 %vm685_vm0, %v3054_v38 }
  0xfa   : > { %v3533_v31 = vadd.f32 %v655_v61, %v646_v8  ;;  %v3536_v49 = vadd.f32 %v3468_v48, %v649_v52  ;;  %2918 = vmatprep.mubr.msk.bf16.mxu0 %vm685_vm0, %v3559_v0 }
  0xfc   : > { %v674_v12 = vpack.c.bf16 %v3536_v49, %v3533_v31 }
  0xfe   : > { %2910 = vmatprep.subr.bf16.mxu1 %v674_v12 }
  0xff   : > { %2911 = vmatpush3.bf16.msra.mxu1 %v674_v12 }
 0x102   : > { %2913 = vmatmul.mubr.msk.bf16.vlgmr.msra.gmra.mxu1 %vm685_vm0, %v3054_v38 }
 0x103   : > { %935 = vmatprep.mubr.bf16.mxu1 %v4393_v6 }
 0x1b1   : > { %v726_v47 = vpop.f32.mrf.mxu0 }
 0x1b3   : > { %v728_v21 = vpop.f32.mrf.mxu0 }
 0x1b5   : > { %v3542_v53 = vpop.f32.mrf.mxu0 }
 0x1b7   : > { %v732_v55 = vpop.f32.mrf.mxu0 }
 0x1b9   : > { %v736_v57 = vpop.f32.mrf.mxu0 }
 0x1bb   : > { %v738_v58 = vpop.f32.mrf.mxu0 }
 0x1bd   : > { %v740_v60 = vpop.f32.mrf.mxu0 }
 0x1bf   : > { %v742_v40 = vpop.f32.mrf.mxu0 }
 0x1c2   : > { %v2914_v59 = vpop.f32.mrf.mxu1 }
 0x1c3   : > { %802 = vrot.lane.b32.xlu0 %v2914_v59, %s4409_s26 }
 0x1c4   : > { %v779_v48 = vpop.f32.mrf.mxu1 }
 0x1c6   : > { %v2915_v61 = vpop.f32.mrf.mxu1 }
 0x1c7   : > { %804 = vrot.lane.b32.xlu1 %v2915_v61, %s4409_s26  ;;  %798 = vrot.lane.b32.xlu0 %v738_v58, %s4409_s26 }
 0x1c8   : > { %v782_v41 = vpop.f32.mrf.mxu1 }
 0x1cb   : > { %794 = vrot.lane.b32.xlu0 %v736_v57, %s4409_s26  ;;  %800 = vrot.lane.b32.xlu1 %v742_v40, %s4409_s26 }
 0x1cf   : > { %1051 = vperm.xlu0 %3050, %v2798_v33   ;;  %796 = vrot.lane.b32.xlu1 %v740_v60, %s4409_s26 }
 0x1d3   : > { %1056 = vperm.xlu1 %3052, %v2799_v63  }
 0x235   : > { %v803_v7 = vpop.permute.xlu0 %802 }
 0x239   : > { %v805_v15 = vpop.permute.xlu1 %804  ;;  %v799_v10 = vpop.permute.xlu0 %798 }
 0x23a   : > { %v806_v50 = vsel %vm394_vm1, %v799_v10, %v803_v7 }
 0x23b   : > { %v826_v25 = vsel %vm817_vm7, %v806_v50, 0.0 }
 0x23c   : > { %v832_v26 = vadd.f32 %v826_v25, %v728_v21 }
 0x23d   : > { %v795_v56 = vpop.permute.xlu0 %794  ;;  %v801_v16 = vpop.permute.xlu1 %800 }
 0x23e   : > { %v850_v17 = vadd.f32 %v842_v2, %v832_v26  ;;  %v808_v30 = vsel %vm394_vm1, %v795_v56, %v799_v10  ;;  %v810_v18 = vsel %vm394_vm1, %v803_v7, %v795_v56  ;;  %v807_v13 = vsel %vm394_vm1, %v801_v16, %v805_v15  ;;  %v2811_v26 = vld [vmem:[%s4377_s4 + $0x20] sm:$0xff]  ;;  %v2812_v56 = vld [vmem:[%s4377_s4 + $0x28] sm:$0xff] }
 0x23f   : > { %v825_v39 = vsel %vm816_vm8, %v808_v30, 0.0  ;;  %v827_v29 = vsel %vm818_vm9, %v810_v18, 0.0  ;;  %v829_v1 = vsel %vm817_vm7, %v807_v13, 0.0  ;;  %v3659_v13 = vstv %s2797_s1  ;;  %s2810_s1 = sadd.s32 4294967292, %s3569_s14 }
 0x240   : > { %v856_v19 = vmul.f32 0.2, %v850_v17  ;;  %v831_v20 = vadd.f32 %v825_v39, %v726_v47  ;;  %v833_v22 = vadd.f32 %v827_v29, %v779_v48  ;;  %v835_v24 = vadd.f32 %v829_v1, %v732_v55 }
 0x241   : > { %v797_v34 = vpop.permute.xlu1 %796  ;;  %vm1026_vm10 = vcmp.lt.s32.totalorder %v3573_v3, %v3659_v13  ;;  %vm1025_vm11 = vcmp.lt.s32.totalorder %v3372_v45, %v3659_v13  ;;  %vm1027_vm12 = vcmp.lt.s32.totalorder %v3577_v44, %v3659_v13 }
 0x242   : > { %v849_v35 = vadd.f32 %v842_v2, %v831_v20  ;;  %v853_v28 = vadd.f32 %v847_v5, %v835_v24  ;;  %v851_v32 = vadd.f32 %v842_v2, %v833_v22  ;;  %v809_v46 = vsel %vm394_vm1, %v797_v34, %v801_v16  ;;  %v3654_v16 = vld [vmem:[%s4376_s3 + $0x20] sm:$0xff]  }
 0x243   : > { %v811_v36 = vsel %vm394_vm1, %v805_v15, %v797_v34  ;;  %v862_v37 = vmax.f32 %v850_v17, %v856_v19  ;;  %v828_v23 = vsel %vm816_vm8, %v809_v46, 0.0  ;;  %vm1648_vm8 = vcmp.lt.s32.totalorder %v3372_v45, 112 }
 0x244   : > { %v859_v43 = vmul.f32 0.2, %v853_v28  ;;  %v830_v38 = vsel %vm818_vm9, %v811_v36, 0.0  ;;  %v855_v51 = vmul.f32 0.2, %v849_v35  ;;  %v834_v42 = vadd.f32 %v828_v23, %v3542_v53 }
 0x245   : > { %v857_v8 = vmul.f32 0.2, %v851_v32  ;;  %v836_v52 = vadd.f32 %v830_v38, %v782_v41  ;;  %v3607_v47 = vadd.f32 %v862_v37, %v3483_v54 }
 0x246   : > { %v865_v27 = vmax.f32 %v853_v28, %v859_v43  ;;  %v852_v12 = vadd.f32 %v847_v5, %v834_v42  ;;  %v861_v57 = vmax.f32 %v849_v35, %v855_v51 }
 0x247   : > { %v854_v55 = vadd.f32 %v847_v5, %v836_v52  ;;  %v863_v48 = vmax.f32 %v851_v32, %v857_v8 }
 0x248   : > { %v3610_v21 = vadd.f32 %v865_v27, %v3480_v62  ;;  %v858_v58 = vmul.f32 0.2, %v852_v12  ;;  %v3615_v40 = vadd.f32 %v861_v57, %v3493_v11  ;;  %v3056_v11 = vld [vmem:[%s4376_s3 + $0x18] sm:$0xff]  }
 0x249   : > { %v860_v60 = vmul.f32 0.2, %v854_v55  ;;  %v3621_v62 = vadd.f32 %v863_v48, %v3533_v31 }
 0x24a   : > { %v885_v59 = vpack.c.bf16 %v3610_v21, %v3607_v47  ;;  %v864_v61 = vmax.f32 %v852_v12, %v858_v58  ;;  %v1052_v17 = vpop.permute.xlu0 %1051 }
 0x24b   : > { %v866_v53 = vmax.f32 %v854_v55, %v860_v60 }
 0x24c   : > { %917 = vmatprep.subr.bf16.mxu1 %v885_v59  ;;  %v3618_v54 = vadd.f32 %v864_v61, %v3496_v14 }
 0x24d   : > { %v3624_v33 = vadd.f32 %v866_v53, %v3536_v49 }
 0x24e   : > { %v884_v63 = vpack.c.bf16 %v3618_v54, %v3615_v40  ;;  %v1057_v18 = vpop.permute.xlu1 %1056 }
 0x24f   : > { %v886_v2 = vpack.c.bf16 %v3624_v33, %v3621_v62 }
 0x250   : > { %918 = vmatpush1.bf16.msra.mxu1 %v884_v63 }
 0x251   : > { %2916 = vmatprep.subr.bf16.mxu0 %v886_v2 }
 0x252   : > { %2917 = vmatpush3.bf16.msra.mxu0 %v886_v2 }
 0x253   : > { %2793 = vmatmul.mubr.msk.bf16.vlgmr.msra.gmra.mxu1 %vm685_vm0, %v3559_v0 }
 0x254   : > { %945 = vmatprep.mubr.bf16.mxu1 %v4393_v6 }
 0x255   : > { %2919 = vmatmul.mubr.msk.bf16.vlgmr.msra.gmra.mxu0 %vm685_vm0, %v3056_v11 }
 0x256   : > { %1145 = vmatprep.mubr.bf16.mxu0 %v4393_v6 }
 0x25b   : > { %2794 = vmatmul.mubr.msk.bf16.gmra.mxu1 %vm685_vm0, %v3056_v11 }
 0x25c   : > { %2924 = vmatprep.mubr.msk.bf16.mxu1 %vm685_vm0, %v3654_v16 }
 0x313   : > { %v937_v14 = vpop.f32.mrf.mxu1 }
 0x315   : > { %v2920_v31 = vpop.f32.mrf.mxu0  ;;  %v939_v49 = vpop.f32.mrf.mxu1 }
 0x316   : > { %1013 = vrot.lane.b32.xlu0 %v2920_v31, %s4411_s23 }
 0x317   : > { %v990_v5 = vpop.f32.mrf.mxu0  ;;  %v941_v7 = vpop.f32.mrf.mxu1 }
 0x319   : > { %v2921_v9 = vpop.f32.mrf.mxu0  ;;  %v943_v15 = vpop.f32.mrf.mxu1 }
 0x31a   : > { %1015 = vrot.lane.b32.xlu1 %v2921_v9, %s4411_s23 }
 0x31b   : > { %v947_v0 = vpop.f32.mrf.mxu1  ;;  %v993_v48 = vpop.f32.mrf.mxu0 }
 0x31d   : > { %v949_v10 = vpop.f32.mrf.mxu1 }
 0x31e   : > { %1009 = vrot.lane.b32.xlu0 %v949_v10, %s4411_s23 }
 0x31f   : > { %v951_v50 = vpop.f32.mrf.mxu1 }
 0x321   : > { %v953_v25 = vpop.f32.mrf.mxu1 }
 0x322   : > { %1005 = vrot.lane.b32.xlu0 %v947_v0, %s4411_s23  ;;  %1011 = vrot.lane.b32.xlu1 %v953_v25, %s4411_s23 }
 0x326   : > { %1261 = vperm.xlu0 %3050, %v2811_v26   ;;  %1007 = vrot.lane.b32.xlu1 %v951_v50, %s4411_s23 }
 0x32a   : > { %1266 = vperm.xlu1 %3052, %v2812_v56  }
 0x388   : > { %v1014_v30 = vpop.permute.xlu0 %1013 }
 0x38c   : > { %v1016_v39 = vpop.permute.xlu1 %1015 }
 0x390   : > { %v1010_v29 = vpop.permute.xlu0 %1009 }
 0x391   : > { %v1017_v1 = vsel %vm438_vm2, %v1010_v29, %v1014_v30 }
 0x392   : > { %v1035_v19 = vsel %vm1026_vm10, %v1017_v1, 0.0 }
 0x393   : > { %v1041_v20 = vadd.f32 %v1035_v19, %v939_v49 }
 0x394   : > { %v1006_v22 = vpop.permute.xlu0 %1005  ;;  %v1012_v24 = vpop.permute.xlu1 %1011 }
 0x395   : > { %v1060_v34 = vadd.f32 %v1052_v17, %v1041_v20  ;;  %v1019_v35 = vsel %vm438_vm2, %v1006_v22, %v1010_v29  ;;  %v1021_v28 = vsel %vm438_vm2, %v1014_v30, %v1006_v22  ;;  %v1018_v32 = vsel %vm438_vm2, %v1012_v24, %v1016_v39 }
 0x396   : > { %v1034_v46 = vsel %vm1025_vm11, %v1019_v35, 0.0  ;;  %v1036_v36 = vsel %vm1027_vm12, %v1021_v28, 0.0  ;;  %v1038_v37 = vsel %vm1026_vm10, %v1018_v32, 0.0 }
 0x397   : > { %v1066_v43 = vmul.f32 0.2, %v1060_v34  ;;  %v1040_v23 = vadd.f32 %v1034_v46, %v937_v14  ;;  %v1042_v38 = vadd.f32 %v1036_v36, %v990_v5  ;;  %v1044_v41 = vadd.f32 %v1038_v37, %v943_v15  ;;  %v2824_v46 = vld [vmem:[%s4377_s4 + $0x30] sm:$0xff]  ;;  %v2825_v36 = vld [vmem:[%s4377_s4 + $0x38] sm:$0xff] }
 0x398   : > { %v1008_v51 = vpop.permute.xlu1 %1007  ;;  %v3745_v37 = vld [vmem:[%s4376_s3 + $0x30] sm:$0xff]  }
 0x399   : > { %v1059_v27 = vadd.f32 %v1052_v17, %v1040_v23  ;;  %v1063_v42 = vadd.f32 %v1057_v18, %v1044_v41  ;;  %v1061_v8 = vadd.f32 %v1052_v17, %v1042_v38  ;;  %v1020_v52 = vsel %vm438_vm2, %v1008_v51, %v1012_v24 }
 0x39a   : > { %v1022_v12 = vsel %vm438_vm2, %v1016_v39, %v1008_v51  ;;  %v1072_v55 = vmax.f32 %v1060_v34, %v1066_v43  ;;  %v1037_v58 = vsel %vm1025_vm11, %v1020_v52, 0.0  ;;  %v3058_v39 = vld [vmem:[%s4376_s3 + $0x28] sm:$0xff]   ;;  %v1234_v41 = vstv %s2810_s1  ;;  %s3141_s1 = smov 96  }
 0x39b   : > { %v1069_v57 = vmul.f32 0.2, %v1063_v42  ;;  %v1039_v59 = vsel %vm1027_vm12, %v1022_v12, 0.0  ;;  %v1065_v60 = vmul.f32 0.2, %v1059_v27  ;;  %v1043_v53 = vadd.f32 %v1037_v58, %v941_v7 }
 0x39c   : > { %v1067_v63 = vmul.f32 0.2, %v1061_v8  ;;  %v1045_v2 = vadd.f32 %v1039_v59, %v993_v48  ;;  %v3698_v14 = vadd.f32 %v1072_v55, %v3607_v47  ;;  %vm1236_vm13 = vcmp.lt.s32.totalorder %v3573_v3, %v1234_v41 }
 0x39d   : > { %v1075_v61 = vmax.f32 %v1063_v42, %v1069_v57  ;;  %v1062_v11 = vadd.f32 %v1057_v18, %v1043_v53  ;;  %v1071_v5 = vmax.f32 %v1059_v27, %v1065_v60  ;;  %vm1235_vm14 = vcmp.lt.s32.totalorder %v3372_v45, %v1234_v41 }
 0x39e   : > { %v1064_v49 = vadd.f32 %v1057_v18, %v1045_v2  ;;  %v1073_v0 = vmax.f32 %v1061_v8, %v1067_v63  ;;  %vm1237_vm15 = vcmp.lt.s32.totalorder %v3577_v44, %v1234_v41 }
 0x39f   : > { %v3701_v31 = vadd.f32 %v1075_v61, %v3610_v21  ;;  %v1068_v9 = vmul.f32 0.2, %v1062_v11  ;;  %v3706_v25 = vadd.f32 %v1071_v5, %v3615_v40 }
 0x3a0   : > { %v1070_v10 = vmul.f32 0.2, %v1064_v49  ;;  %v3712_v56 = vadd.f32 %v1073_v0, %v3621_v62 }
 0x3a1   : > { %v1095_v15 = vpack.c.bf16 %v3701_v31, %v3698_v14  ;;  %v1074_v50 = vmax.f32 %v1062_v11, %v1068_v9  ;;  %v1262_v43 = vpop.permute.xlu0 %1261 }
 0x3a2   : > { %v1076_v7 = vmax.f32 %v1064_v49, %v1070_v10 }
 0x3a3   : > { %1127 = vmatprep.subr.bf16.mxu0 %v1095_v15  ;;  %v3709_v26 = vadd.f32 %v1074_v50, %v3618_v54 }
 0x3a4   : > { %v3715_v17 = vadd.f32 %v1076_v7, %v3624_v33 }
 0x3a5   : > { %v1094_v30 = vpack.c.bf16 %v3709_v26, %v3706_v25  ;;  %v1267_v38 = vpop.permute.xlu1 %1266 }
 0x3a6   : > { %v1096_v18 = vpack.c.bf16 %v3715_v17, %v3712_v56 }
 0x3a7   : > { %1128 = vmatpush1.bf16.msra.mxu0 %v1094_v30 }
 0x3a8   : > { %2922 = vmatprep.subr.bf16.mxu1 %v1096_v18 }
 0x3a9   : > { %2923 = vmatpush3.bf16.msra.mxu1 %v1096_v18 }
 0x3aa   : > { %2806 = vmatmul.mubr.msk.bf16.vlgmr.msra.gmra.mxu0 %vm685_vm0, %v3654_v16 }
 0x3ab   : > { %1155 = vmatprep.mubr.bf16.mxu0 %v4393_v6 }
 0x3ac   : > { %2925 = vmatmul.mubr.msk.bf16.vlgmr.msra.gmra.mxu1 %vm685_vm0, %v3058_v39 }
 0x3ad   : > { %1355 = vmatprep.mubr.bf16.mxu1 %v4393_v6 }
 0x3b2   : > { %2807 = vmatmul.mubr.msk.bf16.gmra.mxu0 %vm685_vm0, %v3058_v39 }
 0x3b3   : > { %2930 = vmatprep.mubr.msk.bf16.mxu0 %vm685_vm0, %v3745_v37 }
 0x46a   : > { %v1147_v29 = vpop.f32.mrf.mxu0 }
 0x46c   : > { %v2926_v1 = vpop.f32.mrf.mxu1  ;;  %v1149_v19 = vpop.f32.mrf.mxu0 }
 0x46d   : > { %1223 = vrot.lane.b32.xlu0 %v2926_v1, %s4408_s18 }
 0x46e   : > { %v1200_v20 = vpop.f32.mrf.mxu1  ;;  %v1151_v22 = vpop.f32.mrf.mxu0 }
 0x470   : > { %v2927_v24 = vpop.f32.mrf.mxu1  ;;  %v1153_v34 = vpop.f32.mrf.mxu0 }
 0x471   : > { %1225 = vrot.lane.b32.xlu1 %v2927_v24, %s4408_s18 }
 0x472   : > { %v1157_v16 = vpop.f32.mrf.mxu0 }
 0x474   : > { %v1159_v35 = vpop.f32.mrf.mxu0 }
 0x475   : > { %1219 = vrot.lane.b32.xlu0 %v1159_v35, %s4408_s18 }
 0x476   : > { %v1161_v28 = vpop.f32.mrf.mxu0 }
 0x478   : > { %v1163_v32 = vpop.f32.mrf.mxu0 }
 0x479   : > { %1215 = vrot.lane.b32.xlu0 %v1157_v16, %s4408_s18  ;;  %1221 = vrot.lane.b32.xlu1 %v1163_v32, %s4408_s18 }
 0x47d   : > { %1472 = vperm.xlu0 %3050, %v2824_v46   ;;  %1217 = vrot.lane.b32.xlu1 %v1161_v28, %s4408_s18 }
 0x481   : > { %1477 = vperm.xlu1 %3052, %v2825_v36  }
 0x4df   : > { %v1224_v23 = vpop.permute.xlu0 %1223 }
 0x4e3   : > { %v1226_v51 = vpop.permute.xlu1 %1225 }
 0x4e7   : > { %v1220_v27 = vpop.permute.xlu0 %1219 }
 0x4e8   : > { %v1227_v42 = vsel %vm526_vm4, %v1220_v27, %v1224_v23 }
 0x4e9   : > { %v1245_v8 = vsel %vm1236_vm13, %v1227_v42, 0.0 }
 0x4ea   : > { %v1251_v52 = vadd.f32 %v1245_v8, %v1149_v19 }
 0x4eb   : > { %v1216_v12 = vpop.permute.xlu0 %1215  ;;  %v1222_v55 = vpop.permute.xlu1 %1221 }
 0x4ec   : > { %v1270_v57 = vadd.f32 %v1262_v43, %v1251_v52  ;;  %v1229_v58 = vsel %vm526_vm4, %v1216_v12, %v1220_v27  ;;  %v1231_v59 = vsel %vm526_vm4, %v1224_v23, %v1216_v12  ;;  %v1228_v48 = vsel %vm526_vm4, %v1222_v55, %v1226_v51 }
 0x4ed   : > { %v1244_v60 = vsel %vm1235_vm14, %v1229_v58, 0.0  ;;  %v1246_v61 = vsel %vm1237_vm15, %v1231_v59, 0.0  ;;  %v1248_v53 = vsel %vm1236_vm13, %v1228_v48, 0.0 }
 0x4ee   : > { %v1276_v63 = vmul.f32 0.2, %v1270_v57  ;;  %v1250_v2 = vadd.f32 %v1244_v60, %v1147_v29  ;;  %v1252_v11 = vadd.f32 %v1246_v61, %v1200_v20  ;;  %v1254_v49 = vadd.f32 %v1248_v53, %v1153_v34  ;;  %v1203_v29 = vpop.f32.mrf.mxu1 }
 0x4ef   : > { %v1218_v5 = vpop.permute.xlu1 %1217 }
 0x4f0   : > { %v1269_v9 = vadd.f32 %v1262_v43, %v1250_v2  ;;  %v1273_v15 = vadd.f32 %v1267_v38, %v1254_v49  ;;  %v1271_v0 = vadd.f32 %v1262_v43, %v1252_v11  ;;  %v1230_v10 = vsel %vm526_vm4, %v1218_v5, %v1222_v55  ;;  %v3060_v55 = vld [vmem:[%s4376_s3 + $0x38] sm:$0xff]   ;;  %v2837_v49 = vld [vmem:[%s4377_s4 + $0x40] sm:$0xff] }
 0x4f1   : > { %v1232_v50 = vsel %vm526_vm4, %v1226_v51, %v1218_v5  ;;  %v1282_v7 = vmax.f32 %v1270_v57, %v1276_v63  ;;  %v1247_v18 = vsel %vm1235_vm14, %v1230_v10, 0.0  ;;  %v2838_v5 = vld [vmem:[%s4377_s4 + $0x48] sm:$0xff] }
 0x4f2   : > { %v1279_v30 = vmul.f32 0.2, %v1273_v15  ;;  %v1249_v39 = vsel %vm1237_vm15, %v1232_v50, 0.0  ;;  %v1275_v1 = vmul.f32 0.2, %v1269_v9  ;;  %v1253_v20 = vadd.f32 %v1247_v18, %v1151_v22 }
 0x4f3   : > { %v1277_v24 = vmul.f32 0.2, %v1271_v0  ;;  %v1255_v34 = vadd.f32 %v1249_v39, %v1203_v29  ;;  %v3778_v35 = vadd.f32 %v1282_v7, %v3698_v14  ;;  %v1445_v50 = vstv %s2823_s2 }
 0x4f4   : > { %v1285_v19 = vmax.f32 %v1273_v15, %v1279_v30  ;;  %v1272_v16 = vadd.f32 %v1267_v38, %v1253_v20  ;;  %v1281_v46 = vmax.f32 %v1269_v9, %v1275_v1  ;;  %v3825_v9 = vld [vmem:[%s4376_s3 + $0x40] sm:$0xff]   ;;  %vm1447_vm5 = vcmp.lt.s32.totalorder %v3573_v3, %v1445_v50 }
 0x4f5   : > { %v1274_v32 = vadd.f32 %v1267_v38, %v1255_v34  ;;  %v1283_v23 = vmax.f32 %v1271_v0, %v1277_v24  ;;  %vm1446_vm6 = vcmp.lt.s32.totalorder %v3372_v45, %v1445_v50  ;;  %vm1448_vm7 = vcmp.lt.s32.totalorder %v3577_v44, %v1445_v50 }
 0x4f6   : > { %v3781_v28 = vadd.f32 %v1285_v19, %v3701_v31  ;;  %v1278_v36 = vmul.f32 0.2, %v1272_v16  ;;  %v3786_v27 = vadd.f32 %v1281_v46, %v3706_v25  ;;  %vm1859_vm15 = vcmp.lt.s32.totalorder %v3372_v45, 96 }
 0x4f7   : > { %v1280_v41 = vmul.f32 0.2, %v1274_v32  ;;  %v3792_v8 = vadd.f32 %v1283_v23, %v3712_v56 }
 0x4f8   : > { %v1305_v43 = vpack.c.bf16 %v3781_v28, %v3778_v35  ;;  %v1284_v51 = vmax.f32 %v1272_v16, %v1278_v36  ;;  %v1473_v15 = vpop.permute.xlu0 %1472 }
 0x4f9   : > { %v1286_v22 = vmax.f32 %v1274_v32, %v1280_v41 }
 0x4fa   : > { %1337 = vmatprep.subr.bf16.mxu1 %v1305_v43  ;;  %v3789_v42 = vadd.f32 %v1284_v51, %v3709_v26 }
 0x4fb   : > { %v3795_v38 = vadd.f32 %v1286_v22, %v3715_v17 }
 0x4fc   : > { %v1304_v52 = vpack.c.bf16 %v3789_v42, %v3786_v27  ;;  %v1478_v10 = vpop.permute.xlu1 %1477 }
 0x4fd   : > { %v1306_v12 = vpack.c.bf16 %v3795_v38, %v3792_v8 }
 0x4fe   : > { %1338 = vmatpush1.bf16.msra.mxu1 %v1304_v52 }
 0x4ff   : > { %2928 = vmatprep.subr.bf16.mxu0 %v1306_v12 }
 0x500   : > { %2929 = vmatpush3.bf16.msra.mxu0 %v1306_v12 }
 0x501   : > { %2819 = vmatmul.mubr.msk.bf16.vlgmr.msra.gmra.mxu1 %vm685_vm0, %v3745_v37 }
 0x502   : > { %1365 = vmatprep.mubr.bf16.mxu1 %v4393_v6 }
 0x503   : > { %2931 = vmatmul.mubr.msk.bf16.vlgmr.msra.gmra.mxu0 %vm685_vm0, %v3060_v55 }
 0x504   : > { %1566 = vmatprep.mubr.bf16.mxu0 %v4393_v6 }
 0x509   : > { %2820 = vmatmul.mubr.msk.bf16.gmra.mxu1 %vm685_vm0, %v3060_v55 }
 0x50a   : > { %2936 = vmatprep.mubr.msk.bf16.mxu1 %vm685_vm0, %v3825_v9 }
 0x5c1   : > { %v1357_v57 = vpop.f32.mrf.mxu1 }
 0x5c3   : > { %v2932_v58 = vpop.f32.mrf.mxu0  ;;  %v1359_v59 = vpop.f32.mrf.mxu1 }
 0x5c4   : > { %1433 = vrot.lane.b32.xlu0 %v2932_v58, %s4389_s17 }
 0x5c5   : > { %v1410_v48 = vpop.f32.mrf.mxu0  ;;  %v1361_v60 = vpop.f32.mrf.mxu1 }
 0x5c7   : > { %v2933_v61 = vpop.f32.mrf.mxu0  ;;  %v1363_v53 = vpop.f32.mrf.mxu1 }
 0x5c8   : > { %1435 = vrot.lane.b32.xlu1 %v2933_v61, %s4389_s17 }
 0x5c9   : > { %v1367_v37 = vpop.f32.mrf.mxu1 }
 0x5cb   : > { %v1369_v63 = vpop.f32.mrf.mxu1 }
 0x5cc   : > { %1429 = vrot.lane.b32.xlu0 %v1369_v63, %s4389_s17 }
 0x5cd   : > { %v1371_v2 = vpop.f32.mrf.mxu1 }
 0x5cf   : > { %v1373_v11 = vpop.f32.mrf.mxu1 }
 0x5d0   : > { %1425 = vrot.lane.b32.xlu0 %v1367_v37, %s4389_s17  ;;  %1431 = vrot.lane.b32.xlu1 %v1373_v11, %s4389_s17 }
 0x5d4   : > { %1683 = vperm.xlu0 %3050, %v2837_v49   ;;  %1427 = vrot.lane.b32.xlu1 %v1371_v2, %s4389_s17  ;;  %s2836_s17 = sadd.s32 4294967280, %s3569_s14 }
 0x5d8   : > { %1688 = vperm.xlu1 %3052, %v2838_v5  }
 0x636   : > { %v1434_v0 = vpop.permute.xlu0 %1433 }
 0x63a   : > { %v1436_v7 = vpop.permute.xlu1 %1435 }
 0x63e   : > { %v1430_v30 = vpop.permute.xlu0 %1429 }
 0x63f   : > { %v1438_v18 = vsel %vm1437_vm3, %v1430_v30, %v1434_v0 }
 0x640   : > { %v1456_v39 = vsel %vm1447_vm5, %v1438_v18, 0.0 }
 0x641   : > { %v1462_v29 = vadd.f32 %v1456_v39, %v1359_v59 }
 0x642   : > { %v1426_v1 = vpop.permute.xlu0 %1425  ;;  %v1432_v19 = vpop.permute.xlu1 %1431 }
 0x643   : > { %v1481_v20 = vadd.f32 %v1473_v15, %v1462_v29  ;;  %v1440_v24 = vsel %vm1437_vm3, %v1426_v1, %v1430_v30  ;;  %v1442_v34 = vsel %vm1437_vm3, %v1434_v0, %v1426_v1  ;;  %v1439_v16 = vsel %vm1437_vm3, %v1432_v19, %v1436_v7 }
 0x644   : > { %v1455_v32 = vsel %vm1446_vm6, %v1440_v24, 0.0  ;;  %v1457_v46 = vsel %vm1448_vm7, %v1442_v34, 0.0  ;;  %v1459_v36 = vsel %vm1447_vm5, %v1439_v16, 0.0 }
 0x645   : > { %v1487_v43 = vmul.f32 0.2, %v1481_v20  ;;  %v1461_v23 = vadd.f32 %v1455_v32, %v1357_v57  ;;  %v1463_v41 = vadd.f32 %v1457_v46, %v1410_v48  ;;  %v1465_v51 = vadd.f32 %v1459_v36, %v1363_v53  ;;  %v1413_v48 = vpop.f32.mrf.mxu0  ;;  %v3062_v46 = vld [vmem:[%s4376_s3 + $0x48] sm:$0xff]  }
 0x646   : > { %v1428_v22 = vpop.permute.xlu1 %1427 }
 0x647   : > { %v1480_v52 = vadd.f32 %v1473_v15, %v1461_v23  ;;  %v1484_v12 = vadd.f32 %v1478_v10, %v1465_v51  ;;  %v1482_v55 = vadd.f32 %v1473_v15, %v1463_v41  ;;  %v1441_v58 = vsel %vm1437_vm3, %v1428_v22, %v1432_v19 }
 0x648   : > { %v1443_v59 = vsel %vm1437_vm3, %v1436_v7, %v1428_v22  ;;  %v1493_v61 = vmax.f32 %v1481_v20, %v1487_v43  ;;  %v1458_v63 = vsel %vm1446_vm6, %v1441_v58, 0.0 }
 0x649   : > { %v1490_v37 = vmul.f32 0.2, %v1484_v12  ;;  %v1460_v57 = vsel %vm1448_vm7, %v1443_v59, 0.0  ;;  %v1486_v53 = vmul.f32 0.2, %v1480_v52  ;;  %v1464_v11 = vadd.f32 %v1458_v63, %v1361_v60  ;;  %v2850_v59 = vld [vmem:[%s4377_s4 + $0x50] sm:$0xff] }
 0x64a   : > { %v1488_v49 = vmul.f32 0.2, %v1482_v55  ;;  %v1466_v5 = vadd.f32 %v1460_v57, %v1413_v48  ;;  %v3859_v0 = vadd.f32 %v1493_v61, %v3778_v35  ;;  %v2851_v61 = vld [vmem:[%s4377_s4 + $0x58] sm:$0xff] }
 0x64b   : > { %v1496_v2 = vmax.f32 %v1484_v12, %v1490_v37  ;;  %v1483_v15 = vadd.f32 %v1478_v10, %v1464_v11  ;;  %v1492_v18 = vmax.f32 %v1480_v52, %v1486_v53  ;;  %v3906_v37 = vld [vmem:[%s4376_s3 + $0x50] sm:$0xff]   ;;  %v1656_v53 = vstv %s2836_s17 }
 0x64c   : > { %v1485_v30 = vadd.f32 %v1478_v10, %v1466_v5  ;;  %v1494_v29 = vmax.f32 %v1482_v55, %v1488_v49  ;;  %vm1658_vm9 = vcmp.lt.s32.totalorder %v3573_v3, %v1656_v53  ;;  %vm1657_vm13 = vcmp.lt.s32.totalorder %v3372_v45, %v1656_v53 }
 0x64d   : > { %v3862_v7 = vadd.f32 %v1496_v2, %v3781_v28  ;;  %v1489_v39 = vmul.f32 0.2, %v1483_v15  ;;  %v3867_v20 = vadd.f32 %v1492_v18, %v3786_v27  ;;  %vm1659_vm14 = vcmp.lt.s32.totalorder %v3577_v44, %v1656_v53 }
 0x64e   : > { %v1491_v1 = vmul.f32 0.2, %v1485_v30  ;;  %v3873_v34 = vadd.f32 %v1494_v29, %v3792_v8 }
 0x64f   : > { %4412 = vst [vmem:[#allocation4_spill] sm:$0xff] %v3862_v7  ;;  %v1516_v50 = vpack.c.bf16 %v3862_v7, %v3859_v0  ;;  %v1495_v19 = vmax.f32 %v1483_v15, %v1489_v39  ;;  %v1684_v63 = vpop.permute.xlu0 %1683 }
 0x650   : > { %v1497_v60 = vmax.f32 %v1485_v30, %v1491_v1 }
 0x651   : > { %1548 = vmatprep.subr.bf16.mxu0 %v1516_v50  ;;  %v3870_v24 = vadd.f32 %v1495_v19, %v3789_v42 }
 0x652   : > { %v3876_v10 = vadd.f32 %v1497_v60, %v3795_v38 }
 0x653   : > { %v1515_v16 = vpack.c.bf16 %v3870_v24, %v3867_v20  ;;  %v1689_v48 = vpop.permute.xlu1 %1688 }
 0x654   : > { %v1517_v32 = vpack.c.bf16 %v3876_v10, %v3873_v34 }
 0x655   : > { %1549 = vmatpush1.bf16.msra.mxu0 %v1515_v16 }
 0x656   : > { %2934 = vmatprep.subr.bf16.mxu1 %v1517_v32 }
 0x657   : > { %2935 = vmatpush3.bf16.msra.mxu1 %v1517_v32 }
 0x658   : > { %2832 = vmatmul.mubr.msk.bf16.vlgmr.msra.gmra.mxu0 %vm685_vm0, %v3825_v9 }
 0x659   : > { %1576 = vmatprep.mubr.bf16.mxu0 %v4393_v6 }
 0x65a   : > { %2937 = vmatmul.mubr.msk.bf16.vlgmr.msra.gmra.mxu1 %vm685_vm0, %v3062_v46 }
 0x65b   : > { %1777 = vmatprep.mubr.bf16.mxu1 %v4393_v6 }
 0x660   : > { %2833 = vmatmul.mubr.msk.bf16.gmra.mxu0 %vm685_vm0, %v3062_v46 }
 0x661   : > { %2942 = vmatprep.mubr.msk.bf16.mxu0 %vm685_vm0, %v3906_v37 }
 0x718   : > { %v1568_v36 = vpop.f32.mrf.mxu0 }
 0x71a   : > { %v2938_v43 = vpop.f32.mrf.mxu1  ;;  %v1570_v23 = vpop.f32.mrf.mxu0 }
 0x71b   : > { %1644 = vrot.lane.b32.xlu0 %v2938_v43, %s4391_s19 }
 0x71c   : > { %v1621_v41 = vpop.f32.mrf.mxu1  ;;  %v1572_v51 = vpop.f32.mrf.mxu0 }
 0x71e   : > { %v2939_v22 = vpop.f32.mrf.mxu1  ;;  %v1574_v52 = vpop.f32.mrf.mxu0 }
 0x71f   : > { %1646 = vrot.lane.b32.xlu1 %v2939_v22, %s4391_s19 }
 0x720   : > { %v1578_v9 = vpop.f32.mrf.mxu0 }
 0x722   : > { %v1580_v12 = vpop.f32.mrf.mxu0 }
 0x723   : > { %1640 = vrot.lane.b32.xlu0 %v1580_v12, %s4391_s19 }
 0x724   : > { %v1582_v55 = vpop.f32.mrf.mxu0 }
 0x726   : > { %v1584_v58 = vpop.f32.mrf.mxu0 }
 0x727   : > { %1636 = vrot.lane.b32.xlu0 %v1578_v9, %s4391_s19  ;;  %1642 = vrot.lane.b32.xlu1 %v1584_v58, %s4391_s19 }
 0x72b   : > { %1894 = vperm.xlu0 %3050, %v2850_v59   ;;  %1638 = vrot.lane.b32.xlu1 %v1582_v55, %s4391_s19  ;;  %s2849_s19 = sadd.s32 4294967264, %s3569_s14 }
 0x72f   : > { %1899 = vperm.xlu1 %3052, %v2851_v61  }
 0x78d   : > { %v1645_v57 = vpop.permute.xlu0 %1644 }
 0x791   : > { %v1647_v2 = vpop.permute.xlu1 %1646 }
 0x795   : > { %v1641_v11 = vpop.permute.xlu0 %1640 }
 0x796   : > { %v1649_v49 = vsel %vm1648_vm8, %v1641_v11, %v1645_v57 }
 0x797   : > { %v1667_v5 = vsel %vm1658_vm9, %v1649_v49, 0.0 }
 0x798   : > { %v1673_v15 = vadd.f32 %v1667_v5, %v1570_v23 }
 0x799   : > { %v1637_v30 = vpop.permute.xlu0 %1636  ;;  %v1643_v18 = vpop.permute.xlu1 %1642 }
 0x79a   : > { %v1692_v39 = vadd.f32 %v1684_v63, %v1673_v15  ;;  %v1651_v50 = vsel %vm1648_vm8, %v1637_v30, %v1641_v11  ;;  %v1653_v29 = vsel %vm1648_vm8, %v1645_v57, %v1637_v30  ;;  %v1650_v1 = vsel %vm1648_vm8, %v1643_v18, %v1647_v2 }
 0x79b   : > { %v1666_v19 = vsel %vm1657_vm13, %v1651_v50, 0.0  ;;  %v1668_v60 = vsel %vm1659_vm14, %v1653_v29, 0.0  ;;  %v1670_v16 = vsel %vm1658_vm9, %v1650_v1, 0.0  ;;  %vm2070_vm9 = vcmp.lt.s32.totalorder %v3372_v45, 64 }
 0x79c   : > { %v1698_v32 = vmul.f32 0.2, %v1692_v39  ;;  %v1672_v46 = vadd.f32 %v1666_v19, %v1568_v36  ;;  %v1674_v43 = vadd.f32 %v1668_v60, %v1621_v41  ;;  %v1676_v23 = vadd.f32 %v1670_v16, %v1574_v52  ;;  %v1624_v41 = vpop.f32.mrf.mxu1 }
 0x79d   : > { %v1639_v22 = vpop.permute.xlu1 %1638 }
 0x79e   : > { %v1691_v9 = vadd.f32 %v1684_v63, %v1672_v46  ;;  %v1695_v12 = vadd.f32 %v1689_v48, %v1676_v23  ;;  %v1693_v55 = vadd.f32 %v1684_v63, %v1674_v43  ;;  %v1652_v58 = vsel %vm1648_vm8, %v1639_v22, %v1643_v18 }
 0x79f   : > { %v1654_v59 = vsel %vm1648_vm8, %v1647_v2, %v1639_v22  ;;  %v1704_v61 = vmax.f32 %v1692_v39, %v1698_v32  ;;  %v1669_v11 = vsel %vm1657_vm13, %v1652_v58, 0.0  ;;  %v3064_v22 = vld [vmem:[%s4376_s3 + $0x58] sm:$0xff]  }
 0x7a0   : > { %v1701_v57 = vmul.f32 0.2, %v1695_v12  ;;  %v1671_v36 = vsel %vm1659_vm14, %v1654_v59, 0.0  ;;  %v1697_v52 = vmul.f32 0.2, %v1691_v9  ;;  %v1675_v5 = vadd.f32 %v1669_v11, %v1572_v51 }
 0x7a1   : > { %v1699_v15 = vmul.f32 0.2, %v1693_v55  ;;  %v1677_v63 = vadd.f32 %v1671_v36, %v1624_v41  ;;  %v3940_v18 = vadd.f32 %v1704_v61, %v3859_v0 }
 0x7a2   : > { %v1707_v49 = vmax.f32 %v1695_v12, %v1701_v57  ;;  %v1694_v30 = vadd.f32 %v1689_v48, %v1675_v5  ;;  %v1703_v50 = vmax.f32 %v1691_v9, %v1697_v52  ;;  %v2863_v52 = vld [vmem:[%s4377_s4 + $0x60] sm:$0xff] }
 0x7a3   : > { %v1696_v39 = vadd.f32 %v1689_v48, %v1677_v63  ;;  %v1705_v1 = vmax.f32 %v1693_v55, %v1699_v15  ;;  %v3981_v5 = vld [vmem:[%s4376_s3 + $0x60] sm:$0xff]  }
 0x7a4   : > { %v3943_v2 = vadd.f32 %v1707_v49, %v3862_v7  ;;  %v1700_v29 = vmul.f32 0.2, %v1694_v30  ;;  %v3948_v16 = vadd.f32 %v1703_v50, %v3867_v20  ;;  %v2864_v49 = vld [vmem:[%s4377_s4 + $0x68] sm:$0xff] }
 0x7a5   : > { %v1702_v19 = vmul.f32 0.2, %v1696_v39  ;;  %v3954_v46 = vadd.f32 %v1705_v1, %v3873_v34 }
 0x7a6   : > { %4413 = vst [vmem:[#allocation5_spill] sm:$0xff] %v3943_v2  ;;  %v1727_v53 = vpack.c.bf16 %v3943_v2, %v3940_v18  ;;  %v1706_v60 = vmax.f32 %v1694_v30, %v1700_v29  ;;  %v1895_v15 = vpop.permute.xlu0 %1894 }
 0x7a7   : > { %v1708_v51 = vmax.f32 %v1696_v39, %v1702_v19  ;;  %v1867_v39 = vstv %s2849_s19  ;;  %s2778_s19 = sshll.u32 %s3258_s24, 1 }
 0x7a8   : > { %1759 = vmatprep.subr.bf16.mxu1 %v1727_v53  ;;  %v3951_v32 = vadd.f32 %v1706_v60, %v3870_v24  ;;  %vm1869_vm5 = vcmp.lt.s32.totalorder %v3573_v3, %v1867_v39  ;;  %vm1868_vm6 = vcmp.lt.s32.totalorder %v3372_v45, %v1867_v39  ;;  %vm1870_vm7 = vcmp.lt.s32.totalorder %v3577_v44, %v1867_v39 }
 0x7a9   : > { %v3957_v48 = vadd.f32 %v1708_v51, %v3876_v10 }
 0x7aa   : > { %4414 = vst [vmem:[#allocation6_spill] sm:$0xff] %v3951_v32  ;;  %v1726_v43 = vpack.c.bf16 %v3951_v32, %v3948_v16  ;;  %v1900_v30 = vpop.permute.xlu1 %1899 }
 0x7ab   : > { %4415 = vst [vmem:[#allocation7_spill] sm:$0xff] %v3957_v48  ;;  %v1728_v23 = vpack.c.bf16 %v3957_v48, %v3954_v46 }
 0x7ac   : > { %1760 = vmatpush1.bf16.msra.mxu1 %v1726_v43 }
 0x7ad   : > { %2940 = vmatprep.subr.bf16.mxu0 %v1728_v23 }
 0x7ae   : > { %2941 = vmatpush3.bf16.msra.mxu0 %v1728_v23 }
 0x7af   : > { %2845 = vmatmul.mubr.msk.bf16.vlgmr.msra.gmra.mxu1 %vm685_vm0, %v3906_v37 }
 0x7b0   : > { %1787 = vmatprep.mubr.bf16.mxu1 %v4393_v6 }
 0x7b1   : > { %2943 = vmatmul.mubr.msk.bf16.vlgmr.msra.gmra.mxu0 %vm685_vm0, %v3064_v22 }
 0x7b2   : > { %1988 = vmatprep.mubr.bf16.mxu0 %v4393_v6 }
 0x7b7   : > { %2846 = vmatmul.mubr.msk.bf16.gmra.mxu1 %vm685_vm0, %v3064_v22 }
 0x7b8   : > { %2948 = vmatprep.mubr.msk.bf16.mxu1 %vm685_vm0, %v3981_v5 }
 0x86f   : > { %v1779_v9 = vpop.f32.mrf.mxu1 }
 0x871   : > { %v2944_v12 = vpop.f32.mrf.mxu0  ;;  %v1781_v55 = vpop.f32.mrf.mxu1 }
 0x872   : > { %1855 = vrot.lane.b32.xlu0 %v2944_v12, %s3141_s1 }
 0x873   : > { %v1832_v58 = vpop.f32.mrf.mxu0  ;;  %v1783_v59 = vpop.f32.mrf.mxu1 }
 0x875   : > { %v2945_v61 = vpop.f32.mrf.mxu0  ;;  %v1785_v57 = vpop.f32.mrf.mxu1 }
 0x876   : > { %1857 = vrot.lane.b32.xlu1 %v2945_v61, %s3141_s1 }
 0x877   : > { %v1789_v37 = vpop.f32.mrf.mxu1 }
 0x879   : > { %v1791_v11 = vpop.f32.mrf.mxu1 }
 0x87a   : > { %1851 = vrot.lane.b32.xlu0 %v1791_v11, %s3141_s1 }
 0x87b   : > { %v1793_v36 = vpop.f32.mrf.mxu1 }
 0x87d   : > { %v1795_v41 = vpop.f32.mrf.mxu1 }
 0x87e   : > { %1847 = vrot.lane.b32.xlu0 %v1789_v37, %s3141_s1  ;;  %1853 = vrot.lane.b32.xlu1 %v1795_v41, %s3141_s1 }
 0x882   : > { %2105 = vperm.xlu0 %3050, %v2863_v52   ;;  %1849 = vrot.lane.b32.xlu1 %v1793_v36, %s3141_s1  ;;  %s2862_s1 = sadd.s32 4294967232, %s3569_s14 }
 0x886   : > { %2110 = vperm.xlu1 %3052, %v2864_v49  }
 0x8e4   : > { %v1856_v63 = vpop.permute.xlu0 %1855 }
 0x8e8   : > { %v1858_v50 = vpop.permute.xlu1 %1857 }
 0x8ec   : > { %v1852_v29 = vpop.permute.xlu0 %1851 }
 0x8ed   : > { %v1860_v53 = vsel %vm1859_vm15, %v1852_v29, %v1856_v63 }
 0x8ee   : > { %v1878_v1 = vsel %vm1869_vm5, %v1860_v53, 0.0 }
 0x8ef   : > { %v1884_v19 = vadd.f32 %v1878_v1, %v1781_v55 }
 0x8f0   : > { %v1848_v60 = vpop.permute.xlu0 %1847  ;;  %v1854_v51 = vpop.permute.xlu1 %1853 }
 0x8f1   : > { %v1903_v43 = vadd.f32 %v1895_v15, %v1884_v19  ;;  %v1862_v23 = vsel %vm1859_vm15, %v1848_v60, %v1852_v29  ;;  %v1864_v22 = vsel %vm1859_vm15, %v1856_v63, %v1848_v60  ;;  %v1861_v12 = vsel %vm1859_vm15, %v1854_v51, %v1858_v50 }
 0x8f2   : > { %v1877_v61 = vsel %vm1868_vm6, %v1862_v23, 0.0  ;;  %v1879_v55 = vsel %vm1870_vm7, %v1864_v22, 0.0  ;;  %v1881_v37 = vsel %vm1869_vm5, %v1861_v12, 0.0  ;;  %vm2404_vm5 = vcmp.lt.s32.totalorder %v3577_v44, 383 }
 0x8f3   : > { %v1909_v11 = vmul.f32 0.2, %v1903_v43  ;;  %v1883_v36 = vadd.f32 %v1877_v61, %v1779_v9  ;;  %v1885_v41 = vadd.f32 %v1879_v55, %v1832_v58  ;;  %v1887_v52 = vadd.f32 %v1881_v37, %v1785_v57  ;;  %v1835_v58 = vpop.f32.mrf.mxu0 }
 0x8f4   : > { %v1850_v49 = vpop.permute.xlu1 %1849 }
 0x8f5   : > { %v1902_v29 = vadd.f32 %v1895_v15, %v1883_v36  ;;  %v1906_v53 = vadd.f32 %v1900_v30, %v1887_v52  ;;  %v1904_v63 = vadd.f32 %v1895_v15, %v1885_v41  ;;  %v1863_v1 = vsel %vm1859_vm15, %v1850_v49, %v1854_v51 }
 0x8f6   : > { %v1865_v19 = vsel %vm1859_vm15, %v1858_v50, %v1850_v49  ;;  %v1915_v60 = vmax.f32 %v1903_v43, %v1909_v11  ;;  %v1880_v22 = vsel %vm1868_vm6, %v1863_v1, 0.0  ;;  %vm2443_vm6 = vcmp.lt.s32.totalorder %v3577_v44, 382 }
 0x8f7   : > { %v1912_v23 = vmul.f32 0.2, %v1906_v53  ;;  %v1882_v9 = vsel %vm1870_vm7, %v1865_v19, 0.0  ;;  %v1908_v57 = vmul.f32 0.2, %v1902_v29  ;;  %v1886_v61 = vadd.f32 %v1880_v22, %v1783_v59 }
 0x8f8   : > { %v1910_v55 = vmul.f32 0.2, %v1904_v63  ;;  %v1888_v15 = vadd.f32 %v1882_v9, %v1835_v58  ;;  %v4015_v51 = vadd.f32 %v1915_v60, %v3940_v18  ;;  %v3066_v60 = vld [vmem:[%s4376_s3 + $0x68] sm:$0xff]  }
 0x8f9   : > { %v1918_v12 = vmax.f32 %v1906_v53, %v1912_v23  ;;  %v1905_v37 = vadd.f32 %v1900_v30, %v1886_v61  ;;  %v1914_v11 = vmax.f32 %v1902_v29, %v1908_v57 }
 0x8fa   : > { %v1907_v43 = vadd.f32 %v1900_v30, %v1888_v15  ;;  %v1916_v41 = vmax.f32 %v1904_v63, %v1910_v55 }
 0x8fb   : > { %v4018_v50 = vadd.f32 %v1918_v12, %v3943_v2  ;;  %v1911_v36 = vmul.f32 0.2, %v1905_v37  ;;  %v4023_v53 = vadd.f32 %v1914_v11, %v3948_v16  ;;  %v2876_v11 = vld [vmem:[%s4377_s4 + $0x78] sm:$0xff] }
 0x8fc   : > { %v1913_v52 = vmul.f32 0.2, %v1907_v43  ;;  %v4029_v19 = vadd.f32 %v1916_v41, %v3954_v46 }
 0x8fd   : > { %v1938_v39 = vpack.c.bf16 %v4018_v50, %v4015_v51  ;;  %v1917_v49 = vmax.f32 %v1905_v37, %v1911_v36  ;;  %v4056_v36 = vld [vmem:[%s4376_s3 + $0x70] sm:$0xff]  }
 0x8fe   : > { %v1919_v59 = vmax.f32 %v1907_v43, %v1913_v52  ;;  %v2875_v43 = vld [vmem:[%s4377_s4 + $0x70] sm:$0xff] }
 0x8ff   : > { %1970 = vmatprep.subr.bf16.mxu0 %v1938_v39  ;;  %v4026_v1 = vadd.f32 %v1917_v49, %v3951_v32  ;;  %v2106_v39 = vpop.permute.xlu0 %2105  ;;  %v2078_v49 = vstv %s2862_s1  ;;  %s328_s1 = sadd.s32 %s2778_s19, %s326_s0 }
 0x900   : > { %v4032_v30 = vadd.f32 %v1919_v59, %v3957_v48  ;;  %vm2080_vm13 = vcmp.lt.s32.totalorder %v3573_v3, %v2078_v49  ;;  %vm2079_vm14 = vcmp.lt.s32.totalorder %v3372_v45, %v2078_v49  ;;  %vm2081_vm15 = vcmp.lt.s32.totalorder %v3577_v44, %v2078_v49 }
 0x901   : > { %v1937_v29 = vpack.c.bf16 %v4026_v1, %v4023_v53  ;;  %v2111_v52 = vpop.permute.xlu1 %2110 }
 0x902   : > { %v1939_v63 = vpack.c.bf16 %v4032_v30, %v4029_v19 }
 0x903   : > { %1971 = vmatpush1.bf16.msra.mxu0 %v1937_v29 }
 0x904   : > { %2946 = vmatprep.subr.bf16.mxu1 %v1939_v63 }
 0x905   : > { %2947 = vmatpush3.bf16.msra.mxu1 %v1939_v63 }
 0x906   : > { %2858 = vmatmul.mubr.msk.bf16.vlgmr.msra.gmra.mxu0 %vm685_vm0, %v3981_v5 }
 0x907   : > { %1998 = vmatprep.mubr.bf16.mxu0 %v4393_v6 }
 0x908   : > { %2949 = vmatmul.mubr.msk.bf16.vlgmr.msra.gmra.mxu1 %vm685_vm0, %v3066_v60 }
 0x909   : > { %2199 = vmatprep.mubr.bf16.mxu1 %v4393_v6 }
 0x90e   : > { %2859 = vmatmul.mubr.msk.bf16.gmra.mxu0 %vm685_vm0, %v3066_v60 }
 0x90f   : > { %2954 = vmatprep.mubr.msk.bf16.mxu0 %vm685_vm0, %v4056_v36 }
 0x9c6   : > { %v1990_v23 = vpop.f32.mrf.mxu0 }
 0x9c8   : > { %v1992_v22 = vpop.f32.mrf.mxu0  ;;  %v2950_v9 = vpop.f32.mrf.mxu1 }
 0x9c9   : > { %2066 = vrot.lane.b32.xlu0 %v2950_v9, %s3142_s15 }
 0x9ca   : > { %v1994_v58 = vpop.f32.mrf.mxu0  ;;  %v2043_v57 = vpop.f32.mrf.mxu1 }
 0x9cc   : > { %v1996_v12 = vpop.f32.mrf.mxu0  ;;  %v2951_v61 = vpop.f32.mrf.mxu1 }
 0x9cd   : > { %2068 = vrot.lane.b32.xlu1 %v2951_v61, %s3142_s15 }
 0x9ce   : > { %v2000_v5 = vpop.f32.mrf.mxu0 }
 0x9d0   : > { %v2002_v55 = vpop.f32.mrf.mxu0 }
 0x9d1   : > { %2062 = vrot.lane.b32.xlu0 %v2002_v55, %s3142_s15 }
 0x9d2   : > { %v2004_v15 = vpop.f32.mrf.mxu0 }
 0x9d4   : > { %v2006_v37 = vpop.f32.mrf.mxu0 }
 0x9d5   : > { %2058 = vrot.lane.b32.xlu0 %v2000_v5, %s3142_s15  ;;  %2064 = vrot.lane.b32.xlu1 %v2006_v37, %s3142_s15 }
 0x9d9   : > { %2304 = vperm.xlu0 %3050, %v2875_v43   ;;  %2060 = vrot.lane.b32.xlu1 %v2004_v15, %s3142_s15 }
 0x9dd   : > { %2309 = vperm.xlu1 %3052, %v2876_v11  }
 0xa3b   : > { %v2067_v41 = vpop.permute.xlu0 %2066 }
 0xa3f   : > { %v2069_v59 = vpop.permute.xlu1 %2068 }
 0xa43   : > { %v2063_v29 = vpop.permute.xlu0 %2062 }
 0xa44   : > { %v2071_v63 = vsel %vm2070_vm9, %v2063_v29, %v2067_v41 }
 0xa45   : > { %v2089_v60 = vsel %vm2080_vm13, %v2071_v63, 0.0 }
 0xa46   : > { %v2095_v9 = vadd.f32 %v2089_v60, %v1992_v22 }
 0xa47   : > { %v2059_v61 = vpop.permute.xlu0 %2058  ;;  %v2065_v5 = vpop.permute.xlu1 %2064 }
 0xa48   : > { %v2114_v55 = vadd.f32 %v2106_v39, %v2095_v9  ;;  %v2073_v15 = vsel %vm2070_vm9, %v2059_v61, %v2063_v29  ;;  %v2075_v37 = vsel %vm2070_vm9, %v2067_v41, %v2059_v61  ;;  %v2072_v43 = vsel %vm2070_vm9, %v2065_v5, %v2069_v59 }
 0xa49   : > { %v2088_v11 = vsel %vm2079_vm14, %v2073_v15, 0.0  ;;  %v2090_v22 = vsel %vm2081_vm15, %v2075_v37, 0.0  ;;  %v2092_v63 = vsel %vm2080_vm13, %v2072_v43, 0.0 }
 0xa4a   : > { %v2120_v60 = vmul.f32 0.2, %v2114_v55  ;;  %v2094_v9 = vadd.f32 %v2088_v11, %v1990_v23  ;;  %v2096_v6 = vadd.f32 %v2090_v22, %v2043_v57  ;;  %v2098_v4 = vadd.f32 %v2092_v63, %v1996_v12  ;;  %v2046_v57 = vpop.f32.mrf.mxu1 }
 0xa4b   : > { %v2061_v29 = vpop.permute.xlu1 %2060 }
 0xa4c   : > { %v2113_v2 = vadd.f32 %v2106_v39, %v2094_v9  ;;  %v2117_v7 = vadd.f32 %v2111_v52, %v2098_v4  ;;  %v2115_v41 = vadd.f32 %v2106_v39, %v2096_v6  ;;  %v2074_v61 = vsel %vm2070_vm9, %v2061_v29, %v2065_v5 }
 0xa4d   : > { %v2076_v15 = vsel %vm2070_vm9, %v2069_v59, %v2061_v29  ;;  %v2126_v48 = vmax.f32 %v2114_v55, %v2120_v60  ;;  %v2091_v37 = vsel %vm2079_vm14, %v2074_v61, 0.0  ;;  %v3068_v61 = vld [vmem:[%s4376_s3 + $0x78] sm:$0xff]  }
 0xa4e   : > { %v2123_v32 = vmul.f32 0.2, %v2117_v7  ;;  %v2093_v23 = vsel %vm2081_vm15, %v2076_v15, 0.0  ;;  %v2119_v12 = vmul.f32 0.2, %v2113_v2  ;;  %v2097_v11 = vadd.f32 %v2091_v37, %v1994_v58 }
 0xa4f   : > { %v2121_v4 = vmul.f32 0.2, %v2115_v41  ;;  %v2099_v6 = vadd.f32 %v2093_v23, %v2046_v57  ;;  %v4090_v5 = vadd.f32 %v2126_v48, %v4015_v51  ;;  %v4416_v15 = vmov 0  }
 0xa50   : > { %v2129_v43 = vmax.f32 %v2117_v7, %v2123_v32  ;;  %v2116_v39 = vadd.f32 %v2111_v52, %v2097_v11  ;;  %v2125_v22 = vmax.f32 %v2113_v2, %v2119_v12 }
 0xa51   : > { %v2118_v55 = vadd.f32 %v2111_v52, %v2099_v6  ;;  %v2127_v60 = vmax.f32 %v2115_v41, %v2121_v4 }
 0xa52   : > { %v4093_v59 = vadd.f32 %v2129_v43, %v4018_v50  ;;  %v2122_v63 = vmul.f32 0.2, %v2116_v39  ;;  %v4098_v32 = vadd.f32 %v2125_v22, %v4023_v53 }
 0xa53   : > { %v2124_v9 = vmul.f32 0.2, %v2118_v55  ;;  %v4104_v58 = vadd.f32 %v2127_v60, %v4029_v19 }
 0xa54   : > { %v2149_v49 = vpack.c.bf16 %v4093_v59, %v4090_v5  ;;  %v2128_v29 = vmax.f32 %v2116_v39, %v2122_v63  ;;  %v2305_v22 = vpop.permute.xlu0 %2304 }
 0xa55   : > { %v2130_v7 = vmax.f32 %v2118_v55, %v2124_v9 }
 0xa56   : > { %2181 = vmatprep.subr.bf16.mxu1 %v2149_v49  ;;  %v4101_v48 = vadd.f32 %v2128_v29, %v4026_v1  ;;  %v1084_v29 = vadd.f32 %v3698_v14, %v3607_v47  ;;  %v1088_v47 = vadd.f32 %v3715_v17, %v3624_v33 }
 0xa57   : > { %v4107_v2 = vadd.f32 %v2130_v7, %v4032_v30 }
 0xa58   : > { %v2148_v52 = vpack.c.bf16 %v4101_v48, %v4098_v32  ;;  %v4129_v63 = vpop.permute.xlu1 %2309 }
 0xa59   : > { %v2150_v41 = vpack.c.bf16 %v4107_v2, %v4104_v58 }
 0xa5a   : > { %2182 = vmatpush1.bf16.msra.mxu1 %v2148_v52  ;;  %v1083_v52 = vadd.f32 %v3706_v25, %v3615_v40  ;;  %v1294_v40 = vadd.f32 %v3778_v35, %v1084_v29 }
 0xa5b   : > { %2952 = vmatprep.subr.bf16.mxu0 %v2150_v41 }
 0xa5c   : > { %2953 = vmatpush3.bf16.msra.mxu0 %v2150_v41  ;;  %v1087_v41 = vadd.f32 %v3701_v31, %v3610_v21 }
 0xa5d   : > { %2871 = vmatmul.mubr.msk.bf16.vlgmr.msra.gmra.mxu1 %vm685_vm0, %v4056_v36 }
 0xa5e   : > { %2209 = vmatprep.mubr.bf16.mxu1 %v4416_v15  ;;  %v1297_v21 = vadd.f32 %v3781_v28, %v1087_v41 }
 0xa5f   : > { %2955 = vmatmul.mubr.msk.bf16.vlgmr.msra.gmra.mxu0 %vm685_vm0, %v3068_v61 }
 0xa65   : > { %2872 = vmatmul.mubr.msk.bf16.gmra.mxu1 %vm685_vm0, %v3068_v61  ;;  %v1085_v61 = vadd.f32 %v3712_v56, %v3621_v62 }
 0xa67   : > { %v1295_v31 = vadd.f32 %v3792_v8, %v1085_v61  ;;  %v1505_v61 = vadd.f32 %v3859_v0, %v1294_v40 }
 0xa69   : > { %v1716_v40 = vadd.f32 %v3940_v18, %v1505_v61 }
 0xb1d   : > { %v2201_v37 = vpop.f32.mrf.mxu1 }
 0xb1f   : > { %v2203_v23 = vpop.f32.mrf.mxu1  ;;  %v2956_v4 = vpop.f32.mrf.mxu0 }
 0xb21   : > { %v2205_v57 = vpop.f32.mrf.mxu1  ;;  %v2254_v39 = vpop.f32.mrf.mxu0 }
 0xb23   : > { %v4121_v12 = vpop.f32.mrf.mxu1  ;;  %v2957_v55 = vpop.f32.mrf.mxu0 }
 0xb25   : > { %v2211_v43 = vpop.f32.mrf.mxu1 }
 0xb26   : > { %2269 = vrot.lane.b32.xlu0 %v2211_v43, %s4411_s23  ;;  %v1086_v43 = vadd.f32 %v3709_v26, %v3618_v54  ;;  %v1506_v26 = vadd.f32 %v3873_v34, %v1295_v31  ;;  %v1298_v34 = vadd.f32 %v3795_v38, %v1088_v47  ;;  %v4417_v31 = vld [vmem:[#allocation6_spill] sm:$0xff] }
 0xb27   : > { %v2213_v11 = vpop.f32.mrf.mxu1 }
 0xb29   : > { %v2215_v36 = vpop.f32.mrf.mxu1 }
 0xb2a   : > { %2273 = vrot.lane.b32.xlu0 %v2213_v11, %s4411_s23  ;;  %2271 = vrot.lane.b32.xlu1 %v2215_v36, %s4411_s23  ;;  %v1293_v11 = vadd.f32 %v3786_v27, %v1083_v52 }
 0xb2b   : > { %v2217_v6 = vpop.f32.mrf.mxu1 }
 0xb2e   : > { %2277 = vrot.lane.b32.xlu0 %v2956_v4, %s4411_s23  ;;  %2275 = vrot.lane.b32.xlu1 %v2217_v6, %s4411_s23  ;;  %v1296_v6 = vadd.f32 %v3789_v42, %v1086_v43 }
 0xb32   : > { %2279 = vrot.lane.b32.xlu1 %v2957_v55, %s4411_s23 }
 0xb98   : > { %v2270_v49 = vpop.permute.xlu0 %2269 }
 0xb9c   : > { %v2274_v60 = vpop.permute.xlu0 %2273  ;;  %v2272_v9 = vpop.permute.xlu1 %2271 }
 0xb9d   : > { %v2283_v7 = vsel %vm438_vm2, %v2270_v49, %v2274_v60 }
 0xb9e   : > { %v2287_v15 = vsel %vm1025_vm11, %v2283_v7, 0.0 }
 0xb9f   : > { %v2293_v14 = vadd.f32 %v2287_v15, %v2201_v37 }
 0xba0   : > { %v2278_v62 = vpop.permute.xlu0 %2277  ;;  %v2276_v25 = vpop.permute.xlu1 %2275 }
 0xba1   : > { %v2312_v56 = vadd.f32 %v2305_v22, %v2293_v14  ;;  %v2281_v36 = vsel %vm438_vm2, %v2274_v60, %v2278_v62  ;;  %v2285_v54 = vsel %vm438_vm2, %v2278_v62, %v2270_v49  ;;  %v2284_v33 = vsel %vm438_vm2, %v2272_v9, %v2276_v25 }
 0xba2   : > { %v2288_v17 = vsel %vm1026_vm10, %v2281_v36, 0.0  ;;  %v2289_v35 = vsel %vm1027_vm12, %v2285_v54, 0.0  ;;  %v2290_v28 = vsel %vm1025_vm11, %v2284_v33, 0.0  ;;  %v1717_v49 = vadd.f32 %v3954_v46, %v1506_v26 }
 0xba3   : > { %v2318_v27 = vmul.f32 0.2, %v2312_v56  ;;  %v2294_v8 = vadd.f32 %v2288_v17, %v2203_v23  ;;  %v2295_v37 = vadd.f32 %v2289_v35, %v2254_v39  ;;  %v2296_v4 = vadd.f32 %v2290_v28, %v2205_v57  ;;  %v4418_v28 = vld [vmem:[#allocation7_spill] sm:$0xff] }
 0xba4   : > { %v2280_v55 = vpop.permute.xlu1 %2279  ;;  %v1504_v60 = vadd.f32 %v3867_v20, %v1293_v11  ;;  %v1928_v46 = vadd.f32 %v4029_v19, %v1717_v49  ;;  %v1507_v20 = vadd.f32 %v3870_v24, %v1296_v6  ;;  %v1509_v24 = vadd.f32 %v3876_v10, %v1298_v34 }
 0xba5   : > { %v2324_v29 = vmax.f32 %v2312_v56, %v2318_v27  ;;  %v2313_v7 = vadd.f32 %v2305_v22, %v2294_v8  ;;  %v2314_v52 = vadd.f32 %v2305_v22, %v2295_v37  ;;  %v2315_v41 = vadd.f32 %v4129_v63, %v2296_v4  ;;  %v4419_v8 = vld [vmem:[#allocation4_spill] sm:$0xff] }
 0xba6   : > { %v2282_v23 = vsel %vm438_vm2, %v2276_v25, %v2280_v55  ;;  %v2286_v42 = vsel %vm438_vm2, %v2280_v55, %v2272_v9  ;;  %v1715_v38 = vadd.f32 %v3948_v16, %v1504_v60  ;;  %v2257_v9 = vpop.f32.mrf.mxu0  ;;  %v1718_v62 = vadd.f32 %v4417_v31, %v1507_v20 }
 0xba7   : > { %v2319_v57 = vmul.f32 0.2, %v2313_v7  ;;  %v2320_v39 = vmul.f32 0.2, %v2314_v52  ;;  %v2321_v15 = vmul.f32 0.2, %v2315_v41  ;;  %v2330_v19 = vadd.f32 %v2324_v29, %v4098_v32 }
 0xba8   : > { %v2291_v22 = vsel %vm1026_vm10, %v2282_v23, 0.0  ;;  %v2292_v0 = vsel %vm1027_vm12, %v2286_v42, 0.0  ;;  %v1926_v43 = vadd.f32 %v4023_v53, %v1715_v38  ;;  %v2139_v25 = vadd.f32 %v4104_v58, %v1928_v46  ;;  %v4420_v29 = vld [vmem:[#allocation5_spill] sm:$0xff] }
 0xba9   : > { %v2325_v16 = vmax.f32 %v2313_v7, %v2319_v57  ;;  %v2326_v47 = vmax.f32 %v2314_v52, %v2320_v39  ;;  %v2297_v14 = vadd.f32 %v2291_v22, %v4121_v12  ;;  %v2298_v11 = vadd.f32 %v2292_v0, %v2257_v9 }
 0xbaa   : > { %v2137_v56 = vadd.f32 %v4098_v32, %v1926_v43  ;;  %v2327_v36 = vmax.f32 %v2315_v41, %v2321_v15  ;;  %v2348_v54 = vstv %s3565_s25  ;;  %v1927_v33 = vadd.f32 %v4015_v51, %v1716_v40 }
 0xbab   : > { %v2316_v13 = vadd.f32 %v4129_v63, %v2297_v14  ;;  %v2332_v53 = vadd.f32 %v2326_v47, %v4104_v58  ;;  %v2317_v12 = vadd.f32 %v4129_v63, %v2298_v11  ;;  %v2331_v18 = vadd.f32 %v2325_v16, %v4090_v5 }
 0xbac   : > { %v2336_v17 = vadd.f32 %v2330_v19, %v2137_v56  ;;  %vm2351_vm10 = vcmp.lt.s32.totalorder %v3577_v44, %v2348_v54  ;;  %v1720_v27 = vadd.f32 %v4418_v28, %v1509_v24  ;;  %v1508_v58 = vadd.f32 %v4419_v8, %v1297_v21 }
 0xbad   : > { %v2322_v10 = vmul.f32 0.2, %v2316_v13  ;;  %v2338_v26 = vadd.f32 %v2332_v53, %v2139_v25  ;;  %v2323_v35 = vmul.f32 0.2, %v2317_v12  ;;  %v2138_v32 = vadd.f32 %v4090_v5, %v1927_v33 }
 0xbae   : > { %v1929_v63 = vadd.f32 %v4026_v1, %v1718_v62  ;;  %v1931_v51 = vadd.f32 %v4032_v30, %v1720_v27  ;;  %v2333_v34 = vadd.f32 %v2327_v36, %v4101_v48  ;;  %v2342_v49 = vmax.f32 %v2336_v17, 0.0 }
 0xbaf   : > { %v2344_v37 = vmax.f32 %v2338_v26, 0.0  ;;  %v2328_v4 = vmax.f32 %v2316_v13, %v2322_v10  ;;  %v2329_v6 = vmax.f32 %v2317_v12, %v2323_v35  ;;  %v2337_v60 = vadd.f32 %v2331_v18, %v2138_v32 }
 0xbb0   : > { %v1719_v7 = vadd.f32 %v4420_v29, %v1508_v58  ;;  %vm2349_vm11 = vcmp.lt.s32.totalorder %v3372_v45, %v2348_v54  ;;  %v2142_v5 = vadd.f32 %v4107_v2, %v1931_v51  ;;  %v2140_v21 = vadd.f32 %v4101_v48, %v1929_v63 }
 0xbb1   : > { %v2360_v55 = vsel %vm2351_vm10, %v2344_v37, 0.0  ;;  %v2335_v1 = vadd.f32 %v2329_v6, %v4107_v2  ;;  %v2334_v61 = vadd.f32 %v2328_v4, %v4093_v59  ;;  %v4220_v23 = vsel %vm2349_vm11, %v2342_v49, 0.0 }
 0xbb2   : > { %2392 = vrot.lane.b32.xlu0 %v2360_v55, %s4409_s26  ;;  %v2339_v52 = vadd.f32 %v2333_v34, %v2140_v21  ;;  %v1930_v41 = vadd.f32 %v4018_v50, %v1719_v7  ;;  %v2343_v42 = vmax.f32 %v2337_v60, 0.0  ;;  %vm2350_vm12 = vcmp.lt.s32.totalorder %v3573_v3, %v2348_v54 }
 0xbb3   : > { %v2341_v30 = vadd.f32 %v2335_v1, %v2142_v5 }
 0xbb4   : > { %v2141_v2 = vadd.f32 %v4093_v59, %v1930_v41  ;;  %v2345_v57 = vmax.f32 %v2339_v52, 0.0  ;;  %v2359_v39 = vsel %vm2350_vm12, %v2343_v42, 0.0 }
 0xbb5   : > { %v2347_v38 = vmax.f32 %v2341_v30, 0.0 }
 0xbb6   : > { %2384 = vrot.lane.b32.xlu0 %v4220_v23, %s4409_s26  ;;  %v2340_v50 = vadd.f32 %v2334_v61, %v2141_v2  ;;  %v4232_v46 = vsel %vm2349_vm11, %v2345_v57, 0.0 }
 0xbb7   : > { %v2363_v48 = vsel %vm2351_vm10, %v2347_v38, 0.0 }
 0xbb8   : > { %2394 = vrot.lane.b32.xlu1 %v2363_v48, %s4409_s26  ;;  %v2346_v20 = vmax.f32 %v2340_v50, 0.0 }
 0xbba   : > { %2388 = vrot.lane.b32.xlu0 %v2359_v39, %s4409_s26  ;;  %v2362_v3 = vsel %vm2350_vm12, %v2346_v20, 0.0 }
 0xbbc   : > { %2386 = vrot.lane.b32.xlu1 %v4232_v46, %s4409_s26 }
 0xbc0   : > { %2390 = vrot.lane.b32.xlu1 %v2362_v3, %s4409_s26  ;;  %s4421_s26 = smov 120  }
 0xc24   : > { %v2393_v59 = vpop.permute.xlu0 %2392 }
 0xc28   : > { %v2385_v15 = vpop.permute.xlu0 %2384 }
 0xc29   : > { %v2400_v0 = vsel %vm394_vm1, %v2393_v59, %v2385_v15 }
 0xc2a   : > { %v2395_v22 = vpop.permute.xlu1 %2394  ;;  %v2413_v47 = vsel %vm2404_vm5, %v2400_v0, 0.0 }
 0xc2b   : > { %v2419_v19 = vadd.f32 %v2413_v47, %v2360_v55 }
 0xc2c   : > { %v2389_v43 = vpop.permute.xlu0 %2388 }
 0xc2d   : > { %v2398_v9 = vsel %vm394_vm1, %v2385_v15, %v2389_v43  ;;  %v2396_v24 = vsel %vm394_vm1, %v2389_v43, %v2393_v59 }
 0xc2e   : > { %v2417_v16 = vadd.f32 %v2398_v9, %v4220_v23  ;;  %v2387_v14 = vpop.permute.xlu1 %2386  ;;  %v2418_v13 = vadd.f32 %v2396_v24, %v2359_v39  ;;  %v3143_v24 = vmov 0.0  }
 0xc2f   : > { %v2401_v11 = vsel %vm394_vm1, %v2395_v22, %v2387_v14  ;;  %2958 = vmatprep.subr.bf16.mxu0 %v3143_v24 }
 0xc30   : > { %2423 = vrot.lane.b32.xlu0 %v2417_v16, %s4411_s23  ;;  %v2416_v25 = vsel %vm2404_vm5, %v2401_v11, 0.0 }
 0xc31   : > { %v2422_v53 = vadd.f32 %v2416_v25, %v2363_v48 }
 0xc32   : > { %v2391_v40 = vpop.permute.xlu1 %2390 }
 0xc33   : > { %v2399_v31 = vsel %vm394_vm1, %v2387_v14, %v2391_v40  ;;  %v2397_v56 = vsel %vm394_vm1, %v2391_v40, %v2395_v22  ;;  %vm2482_vm1 = vcmp.lt.s32.totalorder %v3577_v44, 380 }
 0xc34   : > { %2431 = vrot.lane.b32.xlu0 %v2419_v19, %s4411_s23  ;;  %v2420_v62 = vadd.f32 %v2399_v31, %v4232_v46  ;;  %v2421_v36 = vadd.f32 %v2397_v56, %v2362_v3 }
 0xc36   : > { %2425 = vrot.lane.b32.xlu1 %v2420_v62, %s4411_s23 }
 0xc38   : > { %2427 = vrot.lane.b32.xlu0 %v2418_v13, %s4411_s23 }
 0xc3a   : > { %2433 = vrot.lane.b32.xlu1 %v2422_v53, %s4411_s23 }
 0xc3e   : > { %2429 = vrot.lane.b32.xlu1 %v2421_v36, %s4411_s23  ;;  %s2880_s23 = sshll.u32 (%p3236_p5), %s3112_s30, 2 }
 0xc3f   : > { %s2633_s22 = sadd.s32 (%p3236_p5), %s3108_s29, %s2880_s23 }
 0xca2   : > { %v2424_v12 = vpop.permute.xlu0 %2423 }
 0xca6   : > { %v2432_v54 = vpop.permute.xlu0 %2431 }
 0xca7   : > { %v2439_v10 = vsel %vm438_vm2, %v2432_v54, %v2424_v12 }
 0xca8   : > { %v2426_v33 = vpop.permute.xlu1 %2425  ;;  %v2452_v35 = vsel %vm2443_vm6, %v2439_v10, 0.0 }
 0xca9   : > { %v2458_v27 = vadd.f32 %v2452_v35, %v2419_v19 }
 0xcaa   : > { %v2428_v26 = vpop.permute.xlu0 %2427 }
 0xcab   : > { %v2437_v17 = vsel %vm438_vm2, %v2424_v12, %v2428_v26  ;;  %v2435_v8 = vsel %vm438_vm2, %v2428_v26, %v2432_v54 }
 0xcac   : > { %v2456_v18 = vadd.f32 %v2437_v17, %v2417_v16  ;;  %v2434_v28 = vpop.permute.xlu1 %2433  ;;  %v2457_v4 = vadd.f32 %v2435_v8, %v2418_v13  ;;  %v2556_v13 = vld [vmem:[%s4379_s6 + $0x8] sm:$0xff]  ;;  %v2374_v8 = vadd.s32 4294967288, %v3372_v45 }
 0xcad   : > { %v2440_v58 = vsel %vm438_vm2, %v2434_v28, %v2426_v33 }
 0xcae   : > { %2462 = vrot.lane.b32.xlu0 %v2456_v18, %s4408_s18  ;;  %v2455_v6 = vsel %vm2443_vm6, %v2440_v58, 0.0  ;;  %v4423_v58 = vld [vmem:[#allocation3_spill] sm:$0xff] }
 0xcaf   : > { %v2461_v51 = vadd.f32 %v2455_v6, %v2422_v53 }
 0xcb0   : > { %v2430_v37 = vpop.permute.xlu1 %2429 }
 0xcb1   : > { %v2438_v32 = vsel %vm438_vm2, %v2426_v33, %v2430_v37  ;;  %v2436_v34 = vsel %vm438_vm2, %v2430_v37, %v2434_v28  ;;  %vm3144_vm2 = vmmov 0   ;;  %v2372_v37 = vsub.s32 %v3372_v45, %v4423_v58 }
 0xcb2   : > { %2470 = vrot.lane.b32.xlu0 %v2458_v27, %s4408_s18  ;;  %v2459_v63 = vadd.f32 %v2438_v32, %v2420_v62  ;;  %v2460_v55 = vadd.f32 %v2436_v34, %v2421_v36  ;;  %2960 = vmatprep.mubr.msk.bf16.mxu0 %vm3144_vm2, %v3143_v24  ;;  %v2555_v62 = vld [vmem:[%s4379_s6] sm:$0xff] }
 0xcb4   : > { %2464 = vrot.lane.b32.xlu1 %v2459_v63, %s4408_s18 }
 0xcb6   : > { %2466 = vrot.lane.b32.xlu0 %v2457_v4, %s4408_s18 }
 0xcb8   : > { %2472 = vrot.lane.b32.xlu1 %v2461_v51, %s4408_s18 }
 0xcbc   : > { %2468 = vrot.lane.b32.xlu1 %v2460_v55, %s4408_s18  ;;  %s4422_s18 = smov 112  }
 0xd20   : > { %v2463_v49 = vpop.permute.xlu0 %2462 }
 0xd24   : > { %v2471_v60 = vpop.permute.xlu0 %2470 }
 0xd25   : > { %v2478_v52 = vsel %vm526_vm4, %v2471_v60, %v2463_v49 }
 0xd26   : > { %v2465_v29 = vpop.permute.xlu1 %2464  ;;  %v2491_v61 = vsel %vm2482_vm1, %v2478_v52, 0.0 }
 0xd27   : > { %v2497_v48 = vadd.f32 %v2491_v61, %v2458_v27  ;;  %v3069_v27 = vld [vmem:[%s4378_s5] sm:$0xff]  }
 0xd28   : > { %v2467_v7 = vpop.permute.xlu0 %2466 }
 0xd29   : > { %v2476_v5 = vsel %vm526_vm4, %v2463_v49, %v2467_v7  ;;  %v2474_v21 = vsel %vm526_vm4, %v2467_v7, %v2471_v60 }
 0xd2a   : > { %v2495_v1 = vadd.f32 %v2476_v5, %v2456_v18  ;;  %v2473_v30 = vpop.permute.xlu1 %2472  ;;  %v2496_v41 = vadd.f32 %v2474_v21, %v2457_v4 }
 0xd2b   : > { %v2479_v44 = vsel %vm526_vm4, %v2473_v30, %v2465_v29 }
 0xd2c   : > { %2501 = vrot.lane.b32.xlu0 %v2495_v1, %s4421_s26  ;;  %v2494_v39 = vsel %vm2482_vm1, %v2479_v44, 0.0 }
 0xd2d   : > { %v2500_v20 = vadd.f32 %v2494_v39, %v2461_v51 }
 0xd2e   : > { %v2469_v42 = vpop.permute.xlu1 %2468 }
 0xd2f   : > { %v2477_v38 = vsel %vm526_vm4, %v2465_v29, %v2469_v42  ;;  %v2475_v57 = vsel %vm526_vm4, %v2469_v42, %v2473_v30  ;;  %vm2379_vm4 = vcmask 130112  }
 0xd30   : > { %2505 = vrot.lane.b32.xlu0 %v2496_v41, %s4421_s26  ;;  %v2498_v2 = vadd.f32 %v2477_v38, %v2459_v63  ;;  %v2499_v50 = vadd.f32 %v2475_v57, %v2460_v55 }
 0xd32   : > { %2503 = vrot.lane.b32.xlu1 %v2498_v2, %s4421_s26 }
 0xd34   : > { %2509 = vrot.lane.b32.xlu0 %v2497_v48, %s4421_s26 }
 0xd36   : > { %2507 = vrot.lane.b32.xlu1 %v2499_v50, %s4421_s26 }
 0xd3a   : > { %2511 = vrot.lane.b32.xlu1 %v2500_v20, %s4421_s26  ;;  %s329_s26 = scalar_lea.vmem %s4381_s8, %s328_s1 }
 0xd9e   : > { %v2502_v3 = vpop.permute.xlu0 %2501 }
 0xda2   : > { %v2506_v59 = vpop.permute.xlu0 %2505 }
 0xda3   : > { %v2515_v15 = vsel %vm1437_vm3, %v2502_v3, %v2506_v59 }
 0xda4   : > { %v2527_v22 = vadd.f32 %v2515_v15, %v2495_v1  ;;  %v2504_v0 = vpop.permute.xlu1 %2503 }
 0xda6   : > { %2531 = vrot.lane.b32.xlu0 %v2527_v22, %s4422_s18  ;;  %v2510_v43 = vpop.permute.xlu0 %2509 }
 0xda7   : > { %v2513_v9 = vsel %vm1437_vm3, %v2506_v59, %v2510_v43 }
 0xda8   : > { %v2528_v16 = vadd.f32 %v2513_v9, %v2496_v41  ;;  %v2508_v47 = vpop.permute.xlu1 %2507 }
 0xda9   : > { %v2516_v14 = vsel %vm1437_vm3, %v2504_v0, %v2508_v47 }
 0xdaa   : > { %2535 = vrot.lane.b32.xlu0 %v2528_v16, %s4422_s18  ;;  %v2529_v19 = vadd.f32 %v2516_v14, %v2498_v2 }
 0xdac   : > { %2533 = vrot.lane.b32.xlu1 %v2529_v19, %s4422_s18  ;;  %v2512_v11 = vpop.permute.xlu1 %2511 }
 0xdad   : > { %v2514_v40 = vsel %vm1437_vm3, %v2508_v47, %v2512_v11 }
 0xdae   : > { %v2530_v31 = vadd.f32 %v2514_v40, %v2499_v50 }
 0xdb0   : > { %2537 = vrot.lane.b32.xlu1 %v2530_v31, %s4422_s18  ;;  %s307_s18 = sand.u32 1, %s3100_s27   ;;  %s2881_s27 = sshll.u32 (%p3236_p5), %s2633_s22, 3 }
 0xdb1   : > { %s2777_s24 = sshll.u32 %s307_s18, 4  ;;  %s2635_s17 = scalar_lea.vmem (%p3236_p5), %s4380_s7, %s2881_s27 }
 0xdb2   : > { %s309_s25 = scalar_lea.vmem [#allocation2], %s2777_s24 }
 0xdc9   : > { %2364 = vadd.xlane.f32.xlu0 %v4220_v23 }
 0xdd4   : > { %2366 = vadd.xlane.f32.xlu1 %v4232_v46 }
 0xddf   : > { %2559 = vperm.xlu0 %3050, %v2555_v62  }
 0xde5   : > { %2564 = vperm.xlu1 %3052, %v2556_v13  }
 0xe18   : > { %v2532_v25 = vpop.permute.xlu0 %2531 }
 0xe1c   : > { %v2536_v53 = vpop.permute.xlu0 %2535 }
 0xe1d   : > { %v2539_v56 = vsel %vm1648_vm8, %v2532_v25, %v2536_v53 }
 0xe1e   : > { %v2534_v36 = vpop.permute.xlu1 %2533  ;;  %v2546_v12 = vadd.f32 %v2539_v56, %v2527_v22 }
 0xe20   : > { %v2548_v10 = vmul.f32 0.03125, %v2546_v12 }
 0xe22   : > { %v2538_v54 = vpop.permute.xlu1 %2537  ;;  %v2550_v18 = vsub.f32 %v4220_v23, %v2548_v10  ;;  %v2377_v23 = vsub.s32 %v2374_v8, %v4423_v58 }
 0xe23   : > { %v2540_v33 = vsel %vm1648_vm8, %v2534_v36, %v2538_v54 }
 0xe24   : > { %v2547_v26 = vadd.f32 %v2540_v33, %v2529_v19 }
 0xe26   : > { %v2549_v17 = vmul.f32 0.03125, %v2547_v26 }
 0xe28   : > { %v2551_v35 = vsub.f32 %v4232_v46, %v2549_v17 }
 0xe2a   : > { %v2554_v28 = vpack.c.bf16 %v2551_v35, %v2550_v18 }
 0xe2c   : > { %2959 = vmatpush3.bf16.msra.mxu0 %v2554_v28 }
 0xe2f   : > { %2961 = vmatmul.mubr.msk.bf16.vlgmr.msra.gmra.mxu0 %vm685_vm0, %v3069_v27  ;;  %vm2382_vm0 = vcmask 122880  }
 0xe52   : > { %v2365_v46 = vpop.xlane.xlu0 %2364 }
 0xe53   : > { %v2373_v63 = vrot.slane %v2365_v46, %v2372_v37 }
 0xe5a   : > { %v2560_v51 = vpop.permute.xlu0 %2559 }
 0xe5d   : > { %v2367_v32 = vpop.xlane.xlu1 %2366 }
 0xe5e   : > { %v2378_v4 = vrot.slane %v2367_v32, %v2377_v23 }
 0xe60   : > { %v2380_v6 = vsel %vm2379_vm4, %v2378_v4, %v2373_v63 }
 0xe61   : > { %2383 = vst.msk [vmem:[%s329_s26] sm:$0x1] %vm2382_vm0, %v2380_v6  ;;  %v2565_v49 = vpop.permute.xlu1 %2564 }
 0xeef   : > { %v2609_v34 = vpop.f32.mrf.mxu0 }
 0xef0   : > { %v2610_v45 = vadd.f32 %v2609_v34, %v2560_v51 }
 0xef1   : > { %v2962_v55 = vpop.f32.mrf.mxu0 }
 0xef2   : > { %2616 = vst [vmem:[%s309_s25] sm:$0xff] %v2610_v45  ;;  %2631 = sbr.rel (!%p3236_p5) target bundleno = 3839 (0xeff), region = 52 }
 0xef3   : > { %v2612_v60 = vpop.f32.mrf.mxu0 }
 0xef4   : > { %v2613_v29 = vadd.f32 %v2612_v60, %v2565_v49 }
 0xef5   : > { %v2963_v7 = vpop.f32.mrf.mxu0 }
 0xef6   : > { %2617 = vst [vmem:[%s309_s25 + $0x8] sm:$0xff] %v2613_v29 }
 0xef9   : > { %v2666_v5 = vld [vmem:[%s309_s25] sm:$0xff] }
 0xefa   : > { %2667 = vst [vmem:[%s2635_s17] sm:$0xff] %v2666_v5 }
 0xefd   : > { %v2668_v1 = vld [vmem:[%s309_s25 + $0x8] sm:$0xff] }
 0xefe   : > { %2669 = vst [vmem:[%s2635_s17 + $0x10] sm:$0xff] %v2668_v1 }
 0xeff PF: > { %s19_s11 = sadd.s32 1, %s3124_s11   ;;  %s4424_s27 = smov %s3104_s28 }
 0xf00   : > { %p16_p12 = scmp.ge.s32.totalorder %s19_s11, 6   ;;  %s4425_s28 = smov %s3247_s20 }
 0xf01   : > { %s4426_s29 = smov %s3116_s9  ;;  %s4427_s30 = smov %s3120_s10 }
 0xf02   : > { %s4428_s9 = smov %s4431_s12  ;;  %s4429_s10 = smov %s4435_s13 }
 0xf03   :  { %18 = sbr.rel (!%p16_p12) target bundleno = 8 (0x8), region = 143 }

// kernel: reverse.8
= control target key start
LH: loop header
LB: loop body
LE: loop exit
PB: predicated region body
PF: predicated region fallthrough
CT: control target
= control target key end

     0   :  { %v2_v0 = vlaneseq  ;;  %s343_s0 = inlined_call_operand.vmem [shape: f32[2,8,256], index: 0, kind: input, shape index: {}]   ;;  %s344_s1 = inlined_call_operand.vmem [shape: f32[2,8,256], index: 1, kind: output, shape index: {}]  }
   0x2   :  { %v3_v1 = vsub.s32 127, %v2_v0 }
   0x4   :  { %4 = vset.pattern.permute.xlu0 %v3_v1 }
   0x5   :  { %s303_s6 = smov 0   ;;  %s305_s7 = smov 0  }
   0x6   :  { %s307_s8 = smov 0  }
   0x7 LB: > { %s231_s9 = sadd.s32 4294967295, %s291_s8   ;;  %s22_s10 = sadd.s32 1, %s287_s7  ;;  %s291_s8 = sphi %s307_s8, %s10_s8   ;;  %s287_s7 = sphi %s305_s7, %s346_s7   ;;  %s283_s6 = sphi %s303_s6, %s345_s6  }
   0x8   : > { %p23_p0 = scmp.ge.s32.totalorder %s22_s10, 2  ;;  %p233_p1 = scmp.ge.s32.totalorder %s291_s8, 2 }
   0x9   : > { %s45_s11 = sand.u32 (!%p233_p1), 1, %s291_s8   ;;  %s48_s12 = ssub.s32 (!%p233_p1), 1, %s287_s7 }
   0xa   : > { %s348_s10 = smov (%p23_p0, %s22_s10), 0  ;;  %43 = sbr.rel (%p233_p1) target bundleno = 17 (0x11), region = 16 }
   0xb   : > { %s234_s13 = sshll.u32 (!%p233_p1), %s45_s11, 4  ;;  %s235_s14 = sshll.u32 (!%p233_p1), %s48_s12, 3 }
   0xc   : > { %s55_s17 = scalar_lea.vmem (!%p233_p1), %s343_s0, %s235_s14  ;;  %s47_s18 = scalar_lea.vmem (!%p233_p1), [#allocation0], %s234_s13 }
   0xf   : > { %v86_v2 = vld [vmem:[%s55_s17] sm:$0xff]  ;;  %v88_v3 = vld [vmem:[%s55_s17 + $0x10] sm:$0xff] }
  0x10   : > { %87 = vst [vmem:[%s47_s18] sm:$0xff] %v86_v2  ;;  %89 = vst [vmem:[%s47_s18 + $0x8] sm:$0xff] %v88_v3 }
  0x11 PF: > { %p236_p2 = scmp.ge.s32.totalorder %s291_s8, 1  ;;  %p94_p3 = scmp.lt.s32.totalorder %s291_s8, 3 }
  0x13   : > { %p95_p4 = pnand %p236_p2, %p94_p3 }
  0x14   : > { %s101_s19 = sand.u32 (!%p95_p4), 1, %s231_s9   ;;  %s242_s22 = sshll.u32 (!%p95_p4), %s283_s6, 3 }
  0x15   : > { %98 = sbr.rel (%p95_p4) target bundleno = 156 (0x9c), region = 54  ;;  %s237_s20 = sshll.u32 (!%p95_p4), %s101_s19, 4 }
  0x16   : > { %s103_s21 = scalar_lea.vmem (!%p95_p4), [#allocation0], %s237_s20  ;;  %s135_s25 = scalar_lea.vmem (!%p95_p4), %s344_s1, %s242_s22 }
  0x1a   : > { %v115_v4 = vld [vmem:[%s103_s21] sm:$0xff]  ;;  %v239_v5 = vld [vmem:[%s103_s21 + $0x8] sm:$0xff] }
  0x1b   : > { %116 = vperm.xlu0 %4, %v115_v4  }
  0x1f   : > { %122 = vperm.xlu0 %4, %v239_v5  }
  0x96   : > { %v117_v6 = vpop.permute.xlu0 %116 }
  0x97   : > { %167 = vst [vmem:[%s135_s25] sm:$0xff] %v117_v6 }
  0x9a   : > { %v123_v7 = vpop.permute.xlu0 %122 }
  0x9b   : > { %169 = vst [vmem:[%s135_s25 + $0x10] sm:$0xff] %v123_v7 }
  0x9c PF: > { %s10_s8 = sadd.s32 1, %s291_s8   ;;  %s345_s6 = smov %s287_s7 }
  0x9d   : > { %p7_p5 = scmp.ge.s32.totalorder %s10_s8, 4   ;;  %s346_s7 = smov %s348_s10 }
  0x9f   :  { %9 = sbr.rel (!%p7_p5) target bundleno = 7 (0x7), region = 120 }

</bundles_post_ra>
